<compile_context>
chip_gen: v5e
topology: v5e:2x2
jax: 0.10.0
libtpu: 0.0.40
codegen_flags: <defaults>
</compile_context>

<pallas_src>
import math
from functools import partial

import numpy as np
import jax
import jax.numpy as jnp
from jax.experimental import pallas as pl
from jax.experimental.pallas import tpu as pltpu


# ----------------------------------------------------------------------------
# Fused Pallas kernel: input LN -> [SincConv |.| pool LN act] -> [Conv pool LN act]
# ----------------------------------------------------------------------------
def _sincnet_fused_kernel(xe_ref, xo_ref, ge_ref, go_ref, be_ref, bo_ref,
                          w0_ref, g0_ref, b0_ref, w1_ref, bias1_ref,
                          g1_ref, b1_ref, o_ref, p0_ref, p1_ref,
                          *, B, L, N0, K0, T0, N1, C1, K1, OL1, T1, eps, slope):
    f32 = jnp.float32

    # ---- input LayerNorm (torch semantics: unbiased std, eps added to std) ----
    # Applied to the even/odd deinterleaved waveform; stats use both halves.
    xe = xe_ref[...]                                   # (B, L//2)
    xo = xo_ref[...]                                   # (B, L//2)
    total = jnp.sum(xe, axis=-1, keepdims=True) + jnp.sum(xo, axis=-1, keepdims=True)
    mean = total / L
    de = xe - mean
    do = xo - mean
    var = (jnp.sum(de * de, axis=-1, keepdims=True)
           + jnp.sum(do * do, axis=-1, keepdims=True)) / (L - 1)
    rstd = pl.reciprocal(jnp.sqrt(var) + eps, approx=True)
    xe_ln = ge_ref[...] * (de * rstd) + be_ref[...]
    xo_ln = go_ref[...] * (do * rstd) + bo_ref[...]

    w0 = w0_ref[...]          # (2*N0, K0+1) phase-stacked sinc filters
    w1 = w1_ref[...]          # (N1, K1*C1)  k-major flattened conv1 weights
    bias1 = bias1_ref[...]    # (N1, 1)
    g0 = g0_ref[...]          # (N0, T0)
    b0 = b0_ref[...]
    g1 = g1_ref[...]          # (N1, T1)
    b1 = b1_ref[...]

    # pool-2 selection matrices for layer 1 (even / odd conv output positions)
    u = jax.lax.broadcasted_iota(jnp.int32, (OL1, T1), 0)
    t = jax.lax.broadcasted_iota(jnp.int32, (OL1, T1), 1)
    sel_e = (u == 2 * t).astype(f32)
    sel_o = (u == 2 * t + 1).astype(f32)

    for bi in range(B):
        # ---- layer 0: SincConv(K0) -> |.| -> maxpool(2), one MXU matmul ----
        # Stride-2 patches P0[k, t] = x_ln[bi, 2*t + k], built from contiguous
        # slices of the even/odd halves (no gather, no strided loads).
        row_e = xe_ln[bi:bi + 1, :]
        row_o = xo_ln[bi:bi + 1, :]
        for k in range(K0 + 1):
            m, r = divmod(k, 2)
            src = row_e if r == 0 else row_o
            p0_ref[pl.ds(k, 1), :] = src[:, m:m + T0]
        y = jnp.dot(w0, p0_ref[...], preferred_element_type=f32)   # (2*N0, T0)
        y = jnp.abs(y)                                             # SincConv: no bias
        pooled0 = jnp.maximum(y[:N0, :], y[N0:, :])                # maxpool via phase halves
        mu0 = jnp.mean(pooled0, axis=-1, keepdims=True)
        d0 = pooled0 - mu0
        v0 = jnp.sum(d0 * d0, axis=-1, keepdims=True) / (T0 - 1)
        r0 = pl.reciprocal(jnp.sqrt(v0) + eps, approx=True)
        h0 = g0 * (d0 * r0) + b0
        h0 = jnp.where(h0 >= 0.0, h0, slope * h0)                  # (N0, T0)

        # ---- layer 1: Conv1d(C1 -> N1, K1) -> maxpool(2) ----
        # k-major im2col: only K1 block copies of the VMEM-resident h0.
        for k in range(K1):
            p1_ref[pl.ds(k * C1, C1), :] = h0[:, k:k + OL1]
        c1 = jnp.dot(w1, p1_ref[...], preferred_element_type=f32)  # (N1, OL1)
        pooled1 = jnp.maximum(
            jnp.dot(c1, sel_e, preferred_element_type=f32),
            jnp.dot(c1, sel_o, preferred_element_type=f32)) + bias1
        mu1 = jnp.mean(pooled1, axis=-1, keepdims=True)
        d1 = pooled1 - mu1
        v1 = jnp.sum(d1 * d1, axis=-1, keepdims=True) / (T1 - 1)
        r1 = pl.reciprocal(jnp.sqrt(v1) + eps, approx=True)
        h1 = g1 * (d1 * r1) + b1
        h1 = jnp.where(h1 >= 0.0, h1, slope * h1)                  # (N1, T1)

        # ---- lane-dense flatten: out[bi, n*T1 + t] = h1[n, t] ----
        for n in range(N1):
            o_ref[pl.ds(bi, 1), pl.ds(n * T1, T1)] = h1[n:n + 1, :]


# ----------------------------------------------------------------------------
# Host-side helpers (parameter init, filter synthesis)
# ----------------------------------------------------------------------------
def _to_mel(hz):
    return 2595.0 * np.log10(1.0 + hz / 700.0)


def _to_hz(mel):
    return 700.0 * (10.0 ** (mel / 2595.0) - 1.0)


def sinc_filterbank(params, *, fs, min_low_hz=50.0, min_band_hz=50.0):
    # TODO(synk): sinc filter-bank synthesis (tiny 16x65, parameter-derived)
    # stays in plain JAX; flip/concat along lanes has no useful Mosaic win.
    low = min_low_hz + jnp.abs(params['sinc_low_hz'])                       # (N, 1)
    high = jnp.clip(low + min_band_hz + jnp.abs(params['sinc_band_hz']),
                    min_low_hz, fs / 2.0)                                   # (N, 1)
    band = (high - low)[:, 0]                                               # (N,)
    n_ = params['sinc_n']                                                   # (1, ks//2)
    window = params['sinc_window']                                          # (ks//2,)
    f_t_low = low @ n_
    f_t_high = high @ n_
    bp_left = (jnp.sin(f_t_high) - jnp.sin(f_t_low)) / (n_ / 2.0) * window
    bp_center = 2.0 * band.reshape(-1, 1)
    bp_right = jnp.flip(bp_left, axis=1)
    bp = jnp.concatenate([bp_left, bp_center, bp_right], axis=1)            # (N, ks)
    return bp / (2.0 * band[:, None])


def build_params(k_w, opts):
    fs = float(opts['fs'])
    input_dim = int(opts['input_dim'])
    params = {
        'ln_inp_gamma': jnp.ones((input_dim,), jnp.float32),
        'ln_inp_beta': jnp.zeros((input_dim,), jnp.float32),
    }
    # SincConv_fast buffers + trainable cutoff params (layer 0), as in __init__.
    N0 = int(opts['cnn_N_filt'][0])
    ks0 = int(opts['cnn_len_filt'][0])
    if ks0 % 2 == 0:
        ks0 += 1
    min_low_hz, min_band_hz = 50.0, 50.0
    mel = np.linspace(_to_mel(30.0), _to_mel(fs / 2 - (min_low_hz + min_band_hz)), N0 + 1)
    hz = _to_hz(mel)
    params['sinc_low_hz'] = jnp.asarray(hz[:-1], jnp.float32).reshape(-1, 1)
    params['sinc_band_hz'] = jnp.asarray(np.diff(hz), jnp.float32).reshape(-1, 1)
    n_lin = np.linspace(0.0, ks0 / 2 - 1.0, int(ks0 / 2))
    params['sinc_window'] = jnp.asarray(
        0.54 - 0.46 * np.cos(2.0 * math.pi * n_lin / ks0), jnp.float32)
    n_half = (ks0 - 1) / 2.0
    params['sinc_n'] = jnp.asarray(
        2.0 * math.pi * np.arange(-n_half, 0.0) / fs, jnp.float32).reshape(1, -1)

    current = input_dim
    for i in range(len(opts['cnn_N_filt'])):
        N = int(opts['cnn_N_filt'][i])
        ks = int(opts['cnn_len_filt'][i])
        if i == 0 and ks % 2 == 0:
            ks += 1
        pool = int(opts['cnn_max_pool_len'][i])
        current = int((current - ks + 1) / pool)
        params[f'ln{i}_gamma'] = jnp.ones((N, current), jnp.float32)
        params[f'ln{i}_beta'] = jnp.zeros((N, current), jnp.float32)
        if i > 0:
            C_in = int(opts['cnn_N_filt'][i - 1])
            kw, kb = jax.random.split(jax.random.fold_in(k_w, i))
            bound = 1.0 / math.sqrt(C_in * ks)
            params[f'conv{i}_w'] = jax.random.uniform(kw, (N, C_in, ks), jnp.float32, -bound, bound)
            params[f'conv{i}_b'] = jax.random.uniform(kb, (N,), jnp.float32, -bound, bound)
    return params


# ----------------------------------------------------------------------------
# Forward pass (single fused Pallas kernel) and pure-JAX reference
# ----------------------------------------------------------------------------
def sincnet_forward(x, params, *, opts):
    eps, slope = 1e-6, 0.2
    B, L = x.shape
    fs = float(opts['fs'])

    assert opts['cnn_use_laynorm_inp'] and not opts['cnn_use_batchnorm_inp']
    assert len(opts['cnn_N_filt']) == 2
    for i in range(2):
        assert opts['cnn_use_laynorm'][i] and not opts['cnn_use_batchnorm'][i]
        assert opts['cnn_act'][i] == 'leaky_relu'
        assert int(opts['cnn_max_pool_len'][i]) == 2
    # TODO(synk): nn.Dropout (p=0 here) is an inference-time identity; omitted.

    N0 = int(opts['cnn_N_filt'][0])
    K0 = int(opts['cnn_len_filt'][0])
    if K0 % 2 == 0:
        K0 += 1
    N1 = int(opts['cnn_N_filt'][1])
    K1 = int(opts['cnn_len_filt'][1])
    C1 = N0
    assert L % 2 == 0 and K0 % 2 == 1
    T0 = (L - K0 + 1) // 2          # layer-0 length after pool
    OL1 = T0 - K1 + 1               # layer-1 conv output length
    T1 = OL1 // 2                   # layer-1 length after pool

    f32 = jnp.float32
    # layer-0 sinc filters, phase-stacked for the single pool-2 matmul:
    #   rows [0:N0]  -> conv at even positions, rows [N0:2N0] -> odd positions.
    w0 = sinc_filterbank(params, fs=fs).astype(f32)                      # (N0, K0)
    w0cat = jnp.zeros((2 * N0, K0 + 1), f32)
    w0cat = w0cat.at[:N0, :K0].set(w0)
    w0cat = w0cat.at[N0:, 1:].set(w0)
    # layer-1 conv weights, k-major flatten to match the in-kernel im2col rows.
    w1flat = jnp.transpose(params['conv1_w'], (0, 2, 1)).reshape(N1, K1 * C1)
    bias1 = params['conv1_b'].reshape(N1, 1).astype(f32)

    # even/odd (stride-2) deinterleave of the tiny waveform + input-LN affine.
    xe, xo = x[:, 0::2], x[:, 1::2]
    g_in = params['ln_inp_gamma'].reshape(1, L)
    b_in = params['ln_inp_beta'].reshape(1, L)
    ge, go = g_in[:, 0::2], g_in[:, 1::2]
    be, bo = b_in[:, 0::2], b_in[:, 1::2]

    inputs = (xe, xo, ge, go, be, bo, w0cat,
              params['ln0_gamma'], params['ln0_beta'],
              w1flat, bias1,
              params['ln1_gamma'], params['ln1_beta'])

    kern = partial(_sincnet_fused_kernel, B=B, L=L, N0=N0, K0=K0, T0=T0,
                   N1=N1, C1=C1, K1=K1, OL1=OL1, T1=T1, eps=eps, slope=slope)
    return pl.pallas_call(
        kern,
        out_shape=jax.ShapeDtypeStruct((B, N1 * T1), f32),
        grid=(1,),
        in_specs=[pl.BlockSpec(a.shape, lambda i: (0, 0)) for a in inputs],
        out_specs=pl.BlockSpec((B, N1 * T1), lambda i: (0, 0)),
        scratch_shapes=[pltpu.VMEM((K0 + 1, T0), f32),     # layer-0 stride-2 patches
                        pltpu.VMEM((K1 * C1, OL1), f32)],  # layer-1 k-major patches
        compiler_params=pltpu.CompilerParams(dimension_semantics=("arbitrary",)),
    )(*inputs)


def sincnet_reference(x, params, opts):
    """Pure-JAX (non-Pallas) port of the PyTorch forward, for validation."""
    eps, slope = 1e-6, 0.2
    B, L = x.shape
    fs = float(opts['fs'])
    if opts['cnn_use_laynorm_inp']:
        mean = x.mean(-1, keepdims=True)
        std = jnp.sqrt(jnp.sum((x - mean) ** 2, -1, keepdims=True) / (L - 1))
        x = params['ln_inp_gamma'] * (x - mean) / (std + eps) + params['ln_inp_beta']
    x = x.reshape(B, 1, L)
    for i in range(len(opts['cnn_N_filt'])):
        N = int(opts['cnn_N_filt'][i])
        ks = int(opts['cnn_len_filt'][i])
        if i == 0 and ks % 2 == 0:
            ks += 1
        pool = int(opts['cnn_max_pool_len'][i])
        if i == 0:
            w_flat = sinc_filterbank(params, fs=fs)
            bias = jnp.zeros((N,), jnp.float32)
        else:
            w_flat = params[f'conv{i}_w'].reshape(N, -1)
            bias = params[f'conv{i}_b']
        C, Lc = x.shape[1], x.shape[2]
        out_len = Lc - ks + 1
        kidx = jnp.arange(out_len)[None, :] + jnp.arange(ks)[:, None]        # (ks, out_len)
        pat = x[:, :, kidx].reshape(B, C * ks, out_len)
        y = jnp.einsum('nk,bkt->bnt', w_flat, pat,
                       preferred_element_type=jnp.float32) + bias[None, :, None]
        if i == 0:
            y = jnp.abs(y)
        T = out_len // pool
        y = y[:, :, :T * pool].reshape(B, N, T, pool).max(-1)
        mean = y.mean(-1, keepdims=True)
        std = jnp.sqrt(jnp.sum((y - mean) ** 2, -1, keepdims=True) / (T - 1))
        y = params[f'ln{i}_gamma'][None] * (y - mean) / (std + eps) + params[f'ln{i}_beta'][None]
        y = jnp.where(y >= 0.0, y, slope * y)
        x = y
    return x.reshape(B, -1)


# ----------------------------------------------------------------------------
if __name__ == "__main__":
    key = jax.random.PRNGKey(0)
    k_x, k_w = jax.random.split(key)

    opts = dict(
        cnn_N_filt=[16, 16],
        cnn_len_filt=[65, 5],
        cnn_max_pool_len=[2, 2],
        cnn_act=['leaky_relu', 'leaky_relu'],
        cnn_drop=[0.0, 0.0],
        cnn_use_laynorm=[True, True],
        cnn_use_batchnorm=[False, False],
        cnn_use_laynorm_inp=True,
        cnn_use_batchnorm_inp=False,
        input_dim=512,
        fs=16000,
    )

    x = jax.random.normal(k_x, (2, opts['input_dim']), dtype=jnp.float32)
    params = build_params(k_w, opts)

    fwd = jax.jit(partial(sincnet_forward, opts=opts))
    y = fwd(x, params)
    jax.block_until_ready(y)

    assert y.shape == (2, 16 * 110), y.shape
    assert y.dtype == jnp.float32
    assert bool(jnp.all(jnp.isfinite(y)))

    y_ref = sincnet_reference(x, params, opts)
    err = float(jnp.max(jnp.abs(y - y_ref)))
    assert err < 2e-2, f"mismatch vs reference: max abs err = {err}"

    print("KERNEL_OK")
</pallas_src>

<mosaic_0001>
module attributes {stable_mosaic.version = 11 : i64} {
  func.func @_sincnet_fused_kernel(%arg0: i32, %arg1: memref<2x256xf32, #tpu.memory_space<vmem>>, %arg2: memref<2x256xf32, #tpu.memory_space<vmem>>, %arg3: memref<1x256xf32, #tpu.memory_space<vmem>>, %arg4: memref<1x256xf32, #tpu.memory_space<vmem>>, %arg5: memref<1x256xf32, #tpu.memory_space<vmem>>, %arg6: memref<1x256xf32, #tpu.memory_space<vmem>>, %arg7: memref<32x66xf32, #tpu.memory_space<vmem>>, %arg8: memref<16x224xf32, #tpu.memory_space<vmem>>, %arg9: memref<16x224xf32, #tpu.memory_space<vmem>>, %arg10: memref<16x80xf32, #tpu.memory_space<vmem>>, %arg11: memref<16x1xf32, #tpu.memory_space<vmem>>, %arg12: memref<16x110xf32, #tpu.memory_space<vmem>>, %arg13: memref<16x110xf32, #tpu.memory_space<vmem>>, %arg14: memref<2x1760xf32, #tpu.memory_space<vmem>>, %arg15: memref<66x224xf32, #tpu.memory_space<vmem>>, %arg16: memref<80x220xf32, #tpu.memory_space<vmem>>) attributes {dimension_semantics = [#tpu.dimension_semantics<arbitrary>], iteration_bounds = array<i64: 1>, scalar_prefetch = 0 : i64, scratch_operands = 2 : i64, tpu.core_type = #tpu.core_type<tc>, window_params = [{pipeline_mode = #tpu.pipeline_mode<synchronous>, transform_indices = @transform_0, window_bounds = array<i64: 2, 256>}, {pipeline_mode = #tpu.pipeline_mode<synchronous>, transform_indices = @transform_1, window_bounds = array<i64: 2, 256>}, {pipeline_mode = #tpu.pipeline_mode<synchronous>, transform_indices = @transform_2, window_bounds = array<i64: 1, 256>}, {pipeline_mode = #tpu.pipeline_mode<synchronous>, transform_indices = @transform_3, window_bounds = array<i64: 1, 256>}, {pipeline_mode = #tpu.pipeline_mode<synchronous>, transform_indices = @transform_4, window_bounds = array<i64: 1, 256>}, {pipeline_mode = #tpu.pipeline_mode<synchronous>, transform_indices = @transform_5, window_bounds = array<i64: 1, 256>}, {pipeline_mode = #tpu.pipeline_mode<synchronous>, transform_indices = @transform_6, window_bounds = array<i64: 32, 66>}, {pipeline_mode = #tpu.pipeline_mode<synchronous>, transform_indices = @transform_7, window_bounds = array<i64: 16, 224>}, {pipeline_mode = #tpu.pipeline_mode<synchronous>, transform_indices = @transform_8, window_bounds = array<i64: 16, 224>}, {pipeline_mode = #tpu.pipeline_mode<synchronous>, transform_indices = @transform_9, window_bounds = array<i64: 16, 80>}, {pipeline_mode = #tpu.pipeline_mode<synchronous>, transform_indices = @transform_10, window_bounds = array<i64: 16, 1>}, {pipeline_mode = #tpu.pipeline_mode<synchronous>, transform_indices = @transform_11, window_bounds = array<i64: 16, 110>}, {pipeline_mode = #tpu.pipeline_mode<synchronous>, transform_indices = @transform_12, window_bounds = array<i64: 16, 110>}, {pipeline_mode = #tpu.pipeline_mode<synchronous>, transform_indices = @transform_13, window_bounds = array<i64: 2, 1760>}]} {
    %c0 = arith.constant 0 : index
    %c0_0 = arith.constant 0 : index
    %0 = vector.load %arg1[%c0, %c0_0] : memref<2x256xf32, #tpu.memory_space<vmem>>, vector<2x256xf32>
    %c0_1 = arith.constant 0 : index
    %c0_2 = arith.constant 0 : index
    %1 = vector.load %arg2[%c0_1, %c0_2] : memref<2x256xf32, #tpu.memory_space<vmem>>, vector<2x256xf32>
    %cst = arith.constant dense<0.000000e+00> : vector<2xf32>
    %2 = vector.multi_reduction <add>, %0, %cst [1] : vector<2x256xf32> to vector<2xf32>
    %3 = vector.shape_cast %2 : vector<2xf32> to vector<2x1xf32>
    %cst_3 = arith.constant dense<0.000000e+00> : vector<2xf32>
    %4 = vector.multi_reduction <add>, %1, %cst_3 [1] : vector<2x256xf32> to vector<2xf32>
    %5 = vector.shape_cast %4 : vector<2xf32> to vector<2x1xf32>
    %6 = arith.addf %3, %5 : vector<2x1xf32>
    %cst_4 = arith.constant 5.120000e+02 : f32
    %7 = vector.broadcast %cst_4 : f32 to vector<2x1xf32>
    %8 = arith.divf %6, %7 : vector<2x1xf32>
    %9 = vector.broadcast %8 : vector<2x1xf32> to vector<2x256xf32>
    %10 = arith.subf %0, %9 : vector<2x256xf32>
    %11 = vector.broadcast %8 : vector<2x1xf32> to vector<2x256xf32>
    %12 = arith.subf %1, %11 : vector<2x256xf32>
    %13 = arith.mulf %10, %10 : vector<2x256xf32>
    %cst_5 = arith.constant dense<0.000000e+00> : vector<2xf32>
    %14 = vector.multi_reduction <add>, %13, %cst_5 [1] : vector<2x256xf32> to vector<2xf32>
    %15 = vector.shape_cast %14 : vector<2xf32> to vector<2x1xf32>
    %16 = arith.mulf %12, %12 : vector<2x256xf32>
    %cst_6 = arith.constant dense<0.000000e+00> : vector<2xf32>
    %17 = vector.multi_reduction <add>, %16, %cst_6 [1] : vector<2x256xf32> to vector<2xf32>
    %18 = vector.shape_cast %17 : vector<2xf32> to vector<2x1xf32>
    %19 = arith.addf %15, %18 : vector<2x1xf32>
    %cst_7 = arith.constant 5.110000e+02 : f32
    %20 = vector.broadcast %cst_7 : f32 to vector<2x1xf32>
    %21 = arith.divf %19, %20 : vector<2x1xf32>
    %22 = math.sqrt %21 : vector<2x1xf32>
    %cst_8 = arith.constant 9.99999997E-7 : f32
    %23 = vector.broadcast %cst_8 : f32 to vector<2x1xf32>
    %24 = arith.addf %22, %23 : vector<2x1xf32>
    %25 = tpu.reciprocal %24 {approx = true} : vector<2x1xf32> -> vector<2x1xf32>
    %c0_9 = arith.constant 0 : index
    %c0_10 = arith.constant 0 : index
    %26 = vector.load %arg3[%c0_9, %c0_10] : memref<1x256xf32, #tpu.memory_space<vmem>>, vector<1x256xf32>
    %27 = vector.broadcast %25 : vector<2x1xf32> to vector<2x256xf32>
    %28 = arith.mulf %10, %27 : vector<2x256xf32>
    %29 = vector.broadcast %26 : vector<1x256xf32> to vector<2x256xf32>
    %30 = arith.mulf %29, %28 : vector<2x256xf32>
    %c0_11 = arith.constant 0 : index
    %c0_12 = arith.constant 0 : index
    %31 = vector.load %arg5[%c0_11, %c0_12] : memref<1x256xf32, #tpu.memory_space<vmem>>, vector<1x256xf32>
    %32 = vector.broadcast %31 : vector<1x256xf32> to vector<2x256xf32>
    %33 = arith.addf %30, %32 : vector<2x256xf32>
    %c0_13 = arith.constant 0 : index
    %c0_14 = arith.constant 0 : index
    %34 = vector.load %arg4[%c0_13, %c0_14] : memref<1x256xf32, #tpu.memory_space<vmem>>, vector<1x256xf32>
    %35 = vector.broadcast %25 : vector<2x1xf32> to vector<2x256xf32>
    %36 = arith.mulf %12, %35 : vector<2x256xf32>
    %37 = vector.broadcast %34 : vector<1x256xf32> to vector<2x256xf32>
    %38 = arith.mulf %37, %36 : vector<2x256xf32>
    %c0_15 = arith.constant 0 : index
    %c0_16 = arith.constant 0 : index
    %39 = vector.load %arg6[%c0_15, %c0_16] : memref<1x256xf32, #tpu.memory_space<vmem>>, vector<1x256xf32>
    %40 = vector.broadcast %39 : vector<1x256xf32> to vector<2x256xf32>
    %41 = arith.addf %38, %40 : vector<2x256xf32>
    %c0_17 = arith.constant 0 : index
    %c0_18 = arith.constant 0 : index
    %42 = vector.load %arg7[%c0_17, %c0_18] : memref<32x66xf32, #tpu.memory_space<vmem>>, vector<32x66xf32>
    %c0_19 = arith.constant 0 : index
    %c0_20 = arith.constant 0 : index
    %43 = vector.load %arg10[%c0_19, %c0_20] : memref<16x80xf32, #tpu.memory_space<vmem>>, vector<16x80xf32>
    %c0_21 = arith.constant 0 : index
    %c0_22 = arith.constant 0 : index
    %44 = vector.load %arg11[%c0_21, %c0_22] : memref<16x1xf32, #tpu.memory_space<vmem>>, vector<16x1xf32>
    %c0_23 = arith.constant 0 : index
    %c0_24 = arith.constant 0 : index
    %45 = vector.load %arg8[%c0_23, %c0_24] : memref<16x224xf32, #tpu.memory_space<vmem>>, vector<16x224xf32>
    %c0_25 = arith.constant 0 : index
    %c0_26 = arith.constant 0 : index
    %46 = vector.load %arg9[%c0_25, %c0_26] : memref<16x224xf32, #tpu.memory_space<vmem>>, vector<16x224xf32>
    %c0_27 = arith.constant 0 : index
    %c0_28 = arith.constant 0 : index
    %47 = vector.load %arg12[%c0_27, %c0_28] : memref<16x110xf32, #tpu.memory_space<vmem>>, vector<16x110xf32>
    %c0_29 = arith.constant 0 : index
    %c0_30 = arith.constant 0 : index
    %48 = vector.load %arg13[%c0_29, %c0_30] : memref<16x110xf32, #tpu.memory_space<vmem>>, vector<16x110xf32>
    %49 = tpu.iota {dimensions = array<i32: 0>} : vector<220x110xi32>
    %50 = tpu.iota {dimensions = array<i32: 1>} : vector<220x110xi32>
    %c2_i32 = arith.constant 2 : i32
    %51 = vector.broadcast %c2_i32 : i32 to vector<220x110xi32>
    %52 = arith.muli %51, %50 : vector<220x110xi32>
    %53 = arith.cmpi eq, %49, %52 : vector<220x110xi32>
    %54 = arith.extui %53 : vector<220x110xi1> to vector<220x110xi32>
    %55 = arith.sitofp %54 : vector<220x110xi32> to vector<220x110xf32>
    %c2_i32_31 = arith.constant 2 : i32
    %56 = vector.broadcast %c2_i32_31 : i32 to vector<220x110xi32>
    %57 = arith.muli %56, %50 : vector<220x110xi32>
    %c1_i32 = arith.constant 1 : i32
    %58 = vector.broadcast %c1_i32 : i32 to vector<220x110xi32>
    %59 = arith.addi %57, %58 : vector<220x110xi32>
    %60 = arith.cmpi eq, %49, %59 : vector<220x110xi32>
    %61 = arith.extui %60 : vector<220x110xi1> to vector<220x110xi32>
    %62 = arith.sitofp %61 : vector<220x110xi32> to vector<220x110xf32>
    %63 = vector.extract_strided_slice %33 {offsets = [0, 0], sizes = [1, 256], strides = [1, 1]} : vector<2x256xf32> to vector<1x256xf32>
    %64 = vector.extract_strided_slice %41 {offsets = [0, 0], sizes = [1, 256], strides = [1, 1]} : vector<2x256xf32> to vector<1x256xf32>
    %65 = vector.extract_strided_slice %63 {offsets = [0, 0], sizes = [1, 224], strides = [1, 1]} : vector<1x256xf32> to vector<1x224xf32>
    %c0_32 = arith.constant 0 : index
    %c0_33 = arith.constant 0 : index
    %66 = vector.load %arg15[%c0_32, %c0_33] : memref<66x224xf32, #tpu.memory_space<vmem>>, vector<1x224xf32>
    tpu.vector_store %arg15[%c0_32, %c0_33], %65 {strides = array<i32>} : memref<66x224xf32, #tpu.memory_space<vmem>>, vector<1x224xf32>,
    %67 = vector.extract_strided_slice %64 {offsets = [0, 0], sizes = [1, 224], strides = [1, 1]} : vector<1x256xf32> to vector<1x224xf32>
    %c1 = arith.constant 1 : index
    %c0_34 = arith.constant 0 : index
    %68 = vector.load %arg15[%c1, %c0_34] : memref<66x224xf32, #tpu.memory_space<vmem>>, vector<1x224xf32>
    tpu.vector_store %arg15[%c1, %c0_34], %67 {strides = array<i32>} : memref<66x224xf32, #tpu.memory_space<vmem>>, vector<1x224xf32>,
    %69 = vector.extract_strided_slice %63 {offsets = [0, 1], sizes = [1, 224], strides = [1, 1]} : vector<1x256xf32> to vector<1x224xf32>
    %c2 = arith.constant 2 : index
    %c0_35 = arith.constant 0 : index
    %70 = vector.load %arg15[%c2, %c0_35] : memref<66x224xf32, #tpu.memory_space<vmem>>, vector<1x224xf32>
    tpu.vector_store %arg15[%c2, %c0_35], %69 {strides = array<i32>} : memref<66x224xf32, #tpu.memory_space<vmem>>, vector<1x224xf32>,
    %71 = vector.extract_strided_slice %64 {offsets = [0, 1], sizes = [1, 224], strides = [1, 1]} : vector<1x256xf32> to vector<1x224xf32>
    %c3 = arith.constant 3 : index
    %c0_36 = arith.constant 0 : index
    %72 = vector.load %arg15[%c3, %c0_36] : memref<66x224xf32, #tpu.memory_space<vmem>>, vector<1x224xf32>
    tpu.vector_store %arg15[%c3, %c0_36], %71 {strides = array<i32>} : memref<66x224xf32, #tpu.memory_space<vmem>>, vector<1x224xf32>,
    %73 = vector.extract_strided_slice %63 {offsets = [0, 2], sizes = [1, 224], strides = [1, 1]} : vector<1x256xf32> to vector<1x224xf32>
    %c4 = arith.constant 4 : index
    %c0_37 = arith.constant 0 : index
    %74 = vector.load %arg15[%c4, %c0_37] : memref<66x224xf32, #tpu.memory_space<vmem>>, vector<1x224xf32>
    tpu.vector_store %arg15[%c4, %c0_37], %73 {strides = array<i32>} : memref<66x224xf32, #tpu.memory_space<vmem>>, vector<1x224xf32>,
    %75 = vector.extract_strided_slice %64 {offsets = [0, 2], sizes = [1, 224], strides = [1, 1]} : vector<1x256xf32> to vector<1x224xf32>
    %c5 = arith.constant 5 : index
    %c0_38 = arith.constant 0 : index
    %76 = vector.load %arg15[%c5, %c0_38] : memref<66x224xf32, #tpu.memory_space<vmem>>, vector<1x224xf32>
    tpu.vector_store %arg15[%c5, %c0_38], %75 {strides = array<i32>} : memref<66x224xf32, #tpu.memory_space<vmem>>, vector<1x224xf32>,
    %77 = vector.extract_strided_slice %63 {offsets = [0, 3], sizes = [1, 224], strides = [1, 1]} : vector<1x256xf32> to vector<1x224xf32>
    %c6 = arith.constant 6 : index
    %c0_39 = arith.constant 0 : index
    %78 = vector.load %arg15[%c6, %c0_39] : memref<66x224xf32, #tpu.memory_space<vmem>>, vector<1x224xf32>
    tpu.vector_store %arg15[%c6, %c0_39], %77 {strides = array<i32>} : memref<66x224xf32, #tpu.memory_space<vmem>>, vector<1x224xf32>,
    %79 = vector.extract_strided_slice %64 {offsets = [0, 3], sizes = [1, 224], strides = [1, 1]} : vector<1x256xf32> to vector<1x224xf32>
    %c7 = arith.constant 7 : index
    %c0_40 = arith.constant 0 : index
    %80 = vector.load %arg15[%c7, %c0_40] : memref<66x224xf32, #tpu.memory_space<vmem>>, vector<1x224xf32>
    tpu.vector_store %arg15[%c7, %c0_40], %79 {strides = array<i32>} : memref<66x224xf32, #tpu.memory_space<vmem>>, vector<1x224xf32>,
    %81 = vector.extract_strided_slice %63 {offsets = [0, 4], sizes = [1, 224], strides = [1, 1]} : vector<1x256xf32> to vector<1x224xf32>
    %c8 = arith.constant 8 : index
    %c0_41 = arith.constant 0 : index
    %82 = vector.load %arg15[%c8, %c0_41] : memref<66x224xf32, #tpu.memory_space<vmem>>, vector<1x224xf32>
    tpu.vector_store %arg15[%c8, %c0_41], %81 {strides = array<i32>} : memref<66x224xf32, #tpu.memory_space<vmem>>, vector<1x224xf32>,
    %83 = vector.extract_strided_slice %64 {offsets = [0, 4], sizes = [1, 224], strides = [1, 1]} : vector<1x256xf32> to vector<1x224xf32>
    %c9 = arith.constant 9 : index
    %c0_42 = arith.constant 0 : index
    %84 = vector.load %arg15[%c9, %c0_42] : memref<66x224xf32, #tpu.memory_space<vmem>>, vector<1x224xf32>
    tpu.vector_store %arg15[%c9, %c0_42], %83 {strides = array<i32>} : memref<66x224xf32, #tpu.memory_space<vmem>>, vector<1x224xf32>,
    %85 = vector.extract_strided_slice %63 {offsets = [0, 5], sizes = [1, 224], strides = [1, 1]} : vector<1x256xf32> to vector<1x224xf32>
    %c10 = arith.constant 10 : index
    %c0_43 = arith.constant 0 : index
    %86 = vector.load %arg15[%c10, %c0_43] : memref<66x224xf32, #tpu.memory_space<vmem>>, vector<1x224xf32>
    tpu.vector_store %arg15[%c10, %c0_43], %85 {strides = array<i32>} : memref<66x224xf32, #tpu.memory_space<vmem>>, vector<1x224xf32>,
    %87 = vector.extract_strided_slice %64 {offsets = [0, 5], sizes = [1, 224], strides = [1, 1]} : vector<1x256xf32> to vector<1x224xf32>
    %c11 = arith.constant 11 : index
    %c0_44 = arith.constant 0 : index
    %88 = vector.load %arg15[%c11, %c0_44] : memref<66x224xf32, #tpu.memory_space<vmem>>, vector<1x224xf32>
    tpu.vector_store %arg15[%c11, %c0_44], %87 {strides = array<i32>} : memref<66x224xf32, #tpu.memory_space<vmem>>, vector<1x224xf32>,
    %89 = vector.extract_strided_slice %63 {offsets = [0, 6], sizes = [1, 224], strides = [1, 1]} : vector<1x256xf32> to vector<1x224xf32>
    %c12 = arith.constant 12 : index
    %c0_45 = arith.constant 0 : index
    %90 = vector.load %arg15[%c12, %c0_45] : memref<66x224xf32, #tpu.memory_space<vmem>>, vector<1x224xf32>
    tpu.vector_store %arg15[%c12, %c0_45], %89 {strides = array<i32>} : memref<66x224xf32, #tpu.memory_space<vmem>>, vector<1x224xf32>,
    %91 = vector.extract_strided_slice %64 {offsets = [0, 6], sizes = [1, 224], strides = [1, 1]} : vector<1x256xf32> to vector<1x224xf32>
    %c13 = arith.constant 13 : index
    %c0_46 = arith.constant 0 : index
    %92 = vector.load %arg15[%c13, %c0_46] : memref<66x224xf32, #tpu.memory_space<vmem>>, vector<1x224xf32>
    tpu.vector_store %arg15[%c13, %c0_46], %91 {strides = array<i32>} : memref<66x224xf32, #tpu.memory_space<vmem>>, vector<1x224xf32>,
    %93 = vector.extract_strided_slice %63 {offsets = [0, 7], sizes = [1, 224], strides = [1, 1]} : vector<1x256xf32> to vector<1x224xf32>
    %c14 = arith.constant 14 : index
    %c0_47 = arith.constant 0 : index
    %94 = vector.load %arg15[%c14, %c0_47] : memref<66x224xf32, #tpu.memory_space<vmem>>, vector<1x224xf32>
    tpu.vector_store %arg15[%c14, %c0_47], %93 {strides = array<i32>} : memref<66x224xf32, #tpu.memory_space<vmem>>, vector<1x224xf32>,
    %95 = vector.extract_strided_slice %64 {offsets = [0, 7], sizes = [1, 224], strides = [1, 1]} : vector<1x256xf32> to vector<1x224xf32>
    %c15 = arith.constant 15 : index
    %c0_48 = arith.constant 0 : index
    %96 = vector.load %arg15[%c15, %c0_48] : memref<66x224xf32, #tpu.memory_space<vmem>>, vector<1x224xf32>
    tpu.vector_store %arg15[%c15, %c0_48], %95 {strides = array<i32>} : memref<66x224xf32, #tpu.memory_space<vmem>>, vector<1x224xf32>,
    %97 = vector.extract_strided_slice %63 {offsets = [0, 8], sizes = [1, 224], strides = [1, 1]} : vector<1x256xf32> to vector<1x224xf32>
    %c16 = arith.constant 16 : index
    %c0_49 = arith.constant 0 : index
    %98 = vector.load %arg15[%c16, %c0_49] : memref<66x224xf32, #tpu.memory_space<vmem>>, vector<1x224xf32>
    tpu.vector_store %arg15[%c16, %c0_49], %97 {strides = array<i32>} : memref<66x224xf32, #tpu.memory_space<vmem>>, vector<1x224xf32>,
    %99 = vector.extract_strided_slice %64 {offsets = [0, 8], sizes = [1, 224], strides = [1, 1]} : vector<1x256xf32> to vector<1x224xf32>
    %c17 = arith.constant 17 : index
    %c0_50 = arith.constant 0 : index
    %100 = vector.load %arg15[%c17, %c0_50] : memref<66x224xf32, #tpu.memory_space<vmem>>, vector<1x224xf32>
    tpu.vector_store %arg15[%c17, %c0_50], %99 {strides = array<i32>} : memref<66x224xf32, #tpu.memory_space<vmem>>, vector<1x224xf32>,
    %101 = vector.extract_strided_slice %63 {offsets = [0, 9], sizes = [1, 224], strides = [1, 1]} : vector<1x256xf32> to vector<1x224xf32>
    %c18 = arith.constant 18 : index
    %c0_51 = arith.constant 0 : index
    %102 = vector.load %arg15[%c18, %c0_51] : memref<66x224xf32, #tpu.memory_space<vmem>>, vector<1x224xf32>
    tpu.vector_store %arg15[%c18, %c0_51], %101 {strides = array<i32>} : memref<66x224xf32, #tpu.memory_space<vmem>>, vector<1x224xf32>,
    %103 = vector.extract_strided_slice %64 {offsets = [0, 9], sizes = [1, 224], strides = [1, 1]} : vector<1x256xf32> to vector<1x224xf32>
    %c19 = arith.constant 19 : index
    %c0_52 = arith.constant 0 : index
    %104 = vector.load %arg15[%c19, %c0_52] : memref<66x224xf32, #tpu.memory_space<vmem>>, vector<1x224xf32>
    tpu.vector_store %arg15[%c19, %c0_52], %103 {strides = array<i32>} : memref<66x224xf32, #tpu.memory_space<vmem>>, vector<1x224xf32>,
    %105 = vector.extract_strided_slice %63 {offsets = [0, 10], sizes = [1, 224], strides = [1, 1]} : vector<1x256xf32> to vector<1x224xf32>
    %c20 = arith.constant 20 : index
    %c0_53 = arith.constant 0 : index
    %106 = vector.load %arg15[%c20, %c0_53] : memref<66x224xf32, #tpu.memory_space<vmem>>, vector<1x224xf32>
    tpu.vector_store %arg15[%c20, %c0_53], %105 {strides = array<i32>} : memref<66x224xf32, #tpu.memory_space<vmem>>, vector<1x224xf32>,
    %107 = vector.extract_strided_slice %64 {offsets = [0, 10], sizes = [1, 224], strides = [1, 1]} : vector<1x256xf32> to vector<1x224xf32>
    %c21 = arith.constant 21 : index
    %c0_54 = arith.constant 0 : index
    %108 = vector.load %arg15[%c21, %c0_54] : memref<66x224xf32, #tpu.memory_space<vmem>>, vector<1x224xf32>
    tpu.vector_store %arg15[%c21, %c0_54], %107 {strides = array<i32>} : memref<66x224xf32, #tpu.memory_space<vmem>>, vector<1x224xf32>,
    %109 = vector.extract_strided_slice %63 {offsets = [0, 11], sizes = [1, 224], strides = [1, 1]} : vector<1x256xf32> to vector<1x224xf32>
    %c22 = arith.constant 22 : index
    %c0_55 = arith.constant 0 : index
    %110 = vector.load %arg15[%c22, %c0_55] : memref<66x224xf32, #tpu.memory_space<vmem>>, vector<1x224xf32>
    tpu.vector_store %arg15[%c22, %c0_55], %109 {strides = array<i32>} : memref<66x224xf32, #tpu.memory_space<vmem>>, vector<1x224xf32>,
    %111 = vector.extract_strided_slice %64 {offsets = [0, 11], sizes = [1, 224], strides = [1, 1]} : vector<1x256xf32> to vector<1x224xf32>
    %c23 = arith.constant 23 : index
    %c0_56 = arith.constant 0 : index
    %112 = vector.load %arg15[%c23, %c0_56] : memref<66x224xf32, #tpu.memory_space<vmem>>, vector<1x224xf32>
    tpu.vector_store %arg15[%c23, %c0_56], %111 {strides = array<i32>} : memref<66x224xf32, #tpu.memory_space<vmem>>, vector<1x224xf32>,
    %113 = vector.extract_strided_slice %63 {offsets = [0, 12], sizes = [1, 224], strides = [1, 1]} : vector<1x256xf32> to vector<1x224xf32>
    %c24 = arith.constant 24 : index
    %c0_57 = arith.constant 0 : index
    %114 = vector.load %arg15[%c24, %c0_57] : memref<66x224xf32, #tpu.memory_space<vmem>>, vector<1x224xf32>
    tpu.vector_store %arg15[%c24, %c0_57], %113 {strides = array<i32>} : memref<66x224xf32, #tpu.memory_space<vmem>>, vector<1x224xf32>,
    %115 = vector.extract_strided_slice %64 {offsets = [0, 12], sizes = [1, 224], strides = [1, 1]} : vector<1x256xf32> to vector<1x224xf32>
    %c25 = arith.constant 25 : index
    %c0_58 = arith.constant 0 : index
    %116 = vector.load %arg15[%c25, %c0_58] : memref<66x224xf32, #tpu.memory_space<vmem>>, vector<1x224xf32>
    tpu.vector_store %arg15[%c25, %c0_58], %115 {strides = array<i32>} : memref<66x224xf32, #tpu.memory_space<vmem>>, vector<1x224xf32>,
    %117 = vector.extract_strided_slice %63 {offsets = [0, 13], sizes = [1, 224], strides = [1, 1]} : vector<1x256xf32> to vector<1x224xf32>
    %c26 = arith.constant 26 : index
    %c0_59 = arith.constant 0 : index
    %118 = vector.load %arg15[%c26, %c0_59] : memref<66x224xf32, #tpu.memory_space<vmem>>, vector<1x224xf32>
    tpu.vector_store %arg15[%c26, %c0_59], %117 {strides = array<i32>} : memref<66x224xf32, #tpu.memory_space<vmem>>, vector<1x224xf32>,
    %119 = vector.extract_strided_slice %64 {offsets = [0, 13], sizes = [1, 224], strides = [1, 1]} : vector<1x256xf32> to vector<1x224xf32>
    %c27 = arith.constant 27 : index
    %c0_60 = arith.constant 0 : index
    %120 = vector.load %arg15[%c27, %c0_60] : memref<66x224xf32, #tpu.memory_space<vmem>>, vector<1x224xf32>
    tpu.vector_store %arg15[%c27, %c0_60], %119 {strides = array<i32>} : memref<66x224xf32, #tpu.memory_space<vmem>>, vector<1x224xf32>,
    %121 = vector.extract_strided_slice %63 {offsets = [0, 14], sizes = [1, 224], strides = [1, 1]} : vector<1x256xf32> to vector<1x224xf32>
    %c28 = arith.constant 28 : index
    %c0_61 = arith.constant 0 : index
    %122 = vector.load %arg15[%c28, %c0_61] : memref<66x224xf32, #tpu.memory_space<vmem>>, vector<1x224xf32>
    tpu.vector_store %arg15[%c28, %c0_61], %121 {strides = array<i32>} : memref<66x224xf32, #tpu.memory_space<vmem>>, vector<1x224xf32>,
    %123 = vector.extract_strided_slice %64 {offsets = [0, 14], sizes = [1, 224], strides = [1, 1]} : vector<1x256xf32> to vector<1x224xf32>
    %c29 = arith.constant 29 : index
    %c0_62 = arith.constant 0 : index
    %124 = vector.load %arg15[%c29, %c0_62] : memref<66x224xf32, #tpu.memory_space<vmem>>, vector<1x224xf32>
    tpu.vector_store %arg15[%c29, %c0_62], %123 {strides = array<i32>} : memref<66x224xf32, #tpu.memory_space<vmem>>, vector<1x224xf32>,
    %125 = vector.extract_strided_slice %63 {offsets = [0, 15], sizes = [1, 224], strides = [1, 1]} : vector<1x256xf32> to vector<1x224xf32>
    %c30 = arith.constant 30 : index
    %c0_63 = arith.constant 0 : index
    %126 = vector.load %arg15[%c30, %c0_63] : memref<66x224xf32, #tpu.memory_space<vmem>>, vector<1x224xf32>
    tpu.vector_store %arg15[%c30, %c0_63], %125 {strides = array<i32>} : memref<66x224xf32, #tpu.memory_space<vmem>>, vector<1x224xf32>,
    %127 = vector.extract_strided_slice %64 {offsets = [0, 15], sizes = [1, 224], strides = [1, 1]} : vector<1x256xf32> to vector<1x224xf32>
    %c31 = arith.constant 31 : index
    %c0_64 = arith.constant 0 : index
    %128 = vector.load %arg15[%c31, %c0_64] : memref<66x224xf32, #tpu.memory_space<vmem>>, vector<1x224xf32>
    tpu.vector_store %arg15[%c31, %c0_64], %127 {strides = array<i32>} : memref<66x224xf32, #tpu.memory_space<vmem>>, vector<1x224xf32>,
    %129 = vector.extract_strided_slice %63 {offsets = [0, 16], sizes = [1, 224], strides = [1, 1]} : vector<1x256xf32> to vector<1x224xf32>
    %c32 = arith.constant 32 : index
    %c0_65 = arith.constant 0 : index
    %130 = vector.load %arg15[%c32, %c0_65] : memref<66x224xf32, #tpu.memory_space<vmem>>, vector<1x224xf32>
    tpu.vector_store %arg15[%c32, %c0_65], %129 {strides = array<i32>} : memref<66x224xf32, #tpu.memory_space<vmem>>, vector<1x224xf32>,
    %131 = vector.extract_strided_slice %64 {offsets = [0, 16], sizes = [1, 224], strides = [1, 1]} : vector<1x256xf32> to vector<1x224xf32>
    %c33 = arith.constant 33 : index
    %c0_66 = arith.constant 0 : index
    %132 = vector.load %arg15[%c33, %c0_66] : memref<66x224xf32, #tpu.memory_space<vmem>>, vector<1x224xf32>
    tpu.vector_store %arg15[%c33, %c0_66], %131 {strides = array<i32>} : memref<66x224xf32, #tpu.memory_space<vmem>>, vector<1x224xf32>,
    %133 = vector.extract_strided_slice %63 {offsets = [0, 17], sizes = [1, 224], strides = [1, 1]} : vector<1x256xf32> to vector<1x224xf32>
    %c34 = arith.constant 34 : index
    %c0_67 = arith.constant 0 : index
    %134 = vector.load %arg15[%c34, %c0_67] : memref<66x224xf32, #tpu.memory_space<vmem>>, vector<1x224xf32>
    tpu.vector_store %arg15[%c34, %c0_67], %133 {strides = array<i32>} : memref<66x224xf32, #tpu.memory_space<vmem>>, vector<1x224xf32>,
    %135 = vector.extract_strided_slice %64 {offsets = [0, 17], sizes = [1, 224], strides = [1, 1]} : vector<1x256xf32> to vector<1x224xf32>
    %c35 = arith.constant 35 : index
    %c0_68 = arith.constant 0 : index
    %136 = vector.load %arg15[%c35, %c0_68] : memref<66x224xf32, #tpu.memory_space<vmem>>, vector<1x224xf32>
    tpu.vector_store %arg15[%c35, %c0_68], %135 {strides = array<i32>} : memref<66x224xf32, #tpu.memory_space<vmem>>, vector<1x224xf32>,
    %137 = vector.extract_strided_slice %63 {offsets = [0, 18], sizes = [1, 224], strides = [1, 1]} : vector<1x256xf32> to vector<1x224xf32>
    %c36 = arith.constant 36 : index
    %c0_69 = arith.constant 0 : index
    %138 = vector.load %arg15[%c36, %c0_69] : memref<66x224xf32, #tpu.memory_space<vmem>>, vector<1x224xf32>
    tpu.vector_store %arg15[%c36, %c0_69], %137 {strides = array<i32>} : memref<66x224xf32, #tpu.memory_space<vmem>>, vector<1x224xf32>,
    %139 = vector.extract_strided_slice %64 {offsets = [0, 18], sizes = [1, 224], strides = [1, 1]} : vector<1x256xf32> to vector<1x224xf32>
    %c37 = arith.constant 37 : index
    %c0_70 = arith.constant 0 : index
    %140 = vector.load %arg15[%c37, %c0_70] : memref<66x224xf32, #tpu.memory_space<vmem>>, vector<1x224xf32>
    tpu.vector_store %arg15[%c37, %c0_70], %139 {strides = array<i32>} : memref<66x224xf32, #tpu.memory_space<vmem>>, vector<1x224xf32>,
    %141 = vector.extract_strided_slice %63 {offsets = [0, 19], sizes = [1, 224], strides = [1, 1]} : vector<1x256xf32> to vector<1x224xf32>
    %c38 = arith.constant 38 : index
    %c0_71 = arith.constant 0 : index
    %142 = vector.load %arg15[%c38, %c0_71] : memref<66x224xf32, #tpu.memory_space<vmem>>, vector<1x224xf32>
    tpu.vector_store %arg15[%c38, %c0_71], %141 {strides = array<i32>} : memref<66x224xf32, #tpu.memory_space<vmem>>, vector<1x224xf32>,
    %143 = vector.extract_strided_slice %64 {offsets = [0, 19], sizes = [1, 224], strides = [1, 1]} : vector<1x256xf32> to vector<1x224xf32>
    %c39 = arith.constant 39 : index
    %c0_72 = arith.constant 0 : index
    %144 = vector.load %arg15[%c39, %c0_72] : memref<66x224xf32, #tpu.memory_space<vmem>>, vector<1x224xf32>
    tpu.vector_store %arg15[%c39, %c0_72], %143 {strides = array<i32>} : memref<66x224xf32, #tpu.memory_space<vmem>>, vector<1x224xf32>,
    %145 = vector.extract_strided_slice %63 {offsets = [0, 20], sizes = [1, 224], strides = [1, 1]} : vector<1x256xf32> to vector<1x224xf32>
    %c40 = arith.constant 40 : index
    %c0_73 = arith.constant 0 : index
    %146 = vector.load %arg15[%c40, %c0_73] : memref<66x224xf32, #tpu.memory_space<vmem>>, vector<1x224xf32>
    tpu.vector_store %arg15[%c40, %c0_73], %145 {strides = array<i32>} : memref<66x224xf32, #tpu.memory_space<vmem>>, vector<1x224xf32>,
    %147 = vector.extract_strided_slice %64 {offsets = [0, 20], sizes = [1, 224], strides = [1, 1]} : vector<1x256xf32> to vector<1x224xf32>
    %c41 = arith.constant 41 : index
    %c0_74 = arith.constant 0 : index
    %148 = vector.load %arg15[%c41, %c0_74] : memref<66x224xf32, #tpu.memory_space<vmem>>, vector<1x224xf32>
    tpu.vector_store %arg15[%c41, %c0_74], %147 {strides = array<i32>} : memref<66x224xf32, #tpu.memory_space<vmem>>, vector<1x224xf32>,
    %149 = vector.extract_strided_slice %63 {offsets = [0, 21], sizes = [1, 224], strides = [1, 1]} : vector<1x256xf32> to vector<1x224xf32>
    %c42 = arith.constant 42 : index
    %c0_75 = arith.constant 0 : index
    %150 = vector.load %arg15[%c42, %c0_75] : memref<66x224xf32, #tpu.memory_space<vmem>>, vector<1x224xf32>
    tpu.vector_store %arg15[%c42, %c0_75], %149 {strides = array<i32>} : memref<66x224xf32, #tpu.memory_space<vmem>>, vector<1x224xf32>,
    %151 = vector.extract_strided_slice %64 {offsets = [0, 21], sizes = [1, 224], strides = [1, 1]} : vector<1x256xf32> to vector<1x224xf32>
    %c43 = arith.constant 43 : index
    %c0_76 = arith.constant 0 : index
    %152 = vector.load %arg15[%c43, %c0_76] : memref<66x224xf32, #tpu.memory_space<vmem>>, vector<1x224xf32>
    tpu.vector_store %arg15[%c43, %c0_76], %151 {strides = array<i32>} : memref<66x224xf32, #tpu.memory_space<vmem>>, vector<1x224xf32>,
    %153 = vector.extract_strided_slice %63 {offsets = [0, 22], sizes = [1, 224], strides = [1, 1]} : vector<1x256xf32> to vector<1x224xf32>
    %c44 = arith.constant 44 : index
    %c0_77 = arith.constant 0 : index
    %154 = vector.load %arg15[%c44, %c0_77] : memref<66x224xf32, #tpu.memory_space<vmem>>, vector<1x224xf32>
    tpu.vector_store %arg15[%c44, %c0_77], %153 {strides = array<i32>} : memref<66x224xf32, #tpu.memory_space<vmem>>, vector<1x224xf32>,
    %155 = vector.extract_strided_slice %64 {offsets = [0, 22], sizes = [1, 224], strides = [1, 1]} : vector<1x256xf32> to vector<1x224xf32>
    %c45 = arith.constant 45 : index
    %c0_78 = arith.constant 0 : index
    %156 = vector.load %arg15[%c45, %c0_78] : memref<66x224xf32, #tpu.memory_space<vmem>>, vector<1x224xf32>
    tpu.vector_store %arg15[%c45, %c0_78], %155 {strides = array<i32>} : memref<66x224xf32, #tpu.memory_space<vmem>>, vector<1x224xf32>,
    %157 = vector.extract_strided_slice %63 {offsets = [0, 23], sizes = [1, 224], strides = [1, 1]} : vector<1x256xf32> to vector<1x224xf32>
    %c46 = arith.constant 46 : index
    %c0_79 = arith.constant 0 : index
    %158 = vector.load %arg15[%c46, %c0_79] : memref<66x224xf32, #tpu.memory_space<vmem>>, vector<1x224xf32>
    tpu.vector_store %arg15[%c46, %c0_79], %157 {strides = array<i32>} : memref<66x224xf32, #tpu.memory_space<vmem>>, vector<1x224xf32>,
    %159 = vector.extract_strided_slice %64 {offsets = [0, 23], sizes = [1, 224], strides = [1, 1]} : vector<1x256xf32> to vector<1x224xf32>
    %c47 = arith.constant 47 : index
    %c0_80 = arith.constant 0 : index
    %160 = vector.load %arg15[%c47, %c0_80] : memref<66x224xf32, #tpu.memory_space<vmem>>, vector<1x224xf32>
    tpu.vector_store %arg15[%c47, %c0_80], %159 {strides = array<i32>} : memref<66x224xf32, #tpu.memory_space<vmem>>, vector<1x224xf32>,
    %161 = vector.extract_strided_slice %63 {offsets = [0, 24], sizes = [1, 224], strides = [1, 1]} : vector<1x256xf32> to vector<1x224xf32>
    %c48 = arith.constant 48 : index
    %c0_81 = arith.constant 0 : index
    %162 = vector.load %arg15[%c48, %c0_81] : memref<66x224xf32, #tpu.memory_space<vmem>>, vector<1x224xf32>
    tpu.vector_store %arg15[%c48, %c0_81], %161 {strides = array<i32>} : memref<66x224xf32, #tpu.memory_space<vmem>>, vector<1x224xf32>,
    %163 = vector.extract_strided_slice %64 {offsets = [0, 24], sizes = [1, 224], strides = [1, 1]} : vector<1x256xf32> to vector<1x224xf32>
    %c49 = arith.constant 49 : index
    %c0_82 = arith.constant 0 : index
    %164 = vector.load %arg15[%c49, %c0_82] : memref<66x224xf32, #tpu.memory_space<vmem>>, vector<1x224xf32>
    tpu.vector_store %arg15[%c49, %c0_82], %163 {strides = array<i32>} : memref<66x224xf32, #tpu.memory_space<vmem>>, vector<1x224xf32>,
    %165 = vector.extract_strided_slice %63 {offsets = [0, 25], sizes = [1, 224], strides = [1, 1]} : vector<1x256xf32> to vector<1x224xf32>
    %c50 = arith.constant 50 : index
    %c0_83 = arith.constant 0 : index
    %166 = vector.load %arg15[%c50, %c0_83] : memref<66x224xf32, #tpu.memory_space<vmem>>, vector<1x224xf32>
    tpu.vector_store %arg15[%c50, %c0_83], %165 {strides = array<i32>} : memref<66x224xf32, #tpu.memory_space<vmem>>, vector<1x224xf32>,
    %167 = vector.extract_strided_slice %64 {offsets = [0, 25], sizes = [1, 224], strides = [1, 1]} : vector<1x256xf32> to vector<1x224xf32>
    %c51 = arith.constant 51 : index
    %c0_84 = arith.constant 0 : index
    %168 = vector.load %arg15[%c51, %c0_84] : memref<66x224xf32, #tpu.memory_space<vmem>>, vector<1x224xf32>
    tpu.vector_store %arg15[%c51, %c0_84], %167 {strides = array<i32>} : memref<66x224xf32, #tpu.memory_space<vmem>>, vector<1x224xf32>,
    %169 = vector.extract_strided_slice %63 {offsets = [0, 26], sizes = [1, 224], strides = [1, 1]} : vector<1x256xf32> to vector<1x224xf32>
    %c52 = arith.constant 52 : index
    %c0_85 = arith.constant 0 : index
    %170 = vector.load %arg15[%c52, %c0_85] : memref<66x224xf32, #tpu.memory_space<vmem>>, vector<1x224xf32>
    tpu.vector_store %arg15[%c52, %c0_85], %169 {strides = array<i32>} : memref<66x224xf32, #tpu.memory_space<vmem>>, vector<1x224xf32>,
    %171 = vector.extract_strided_slice %64 {offsets = [0, 26], sizes = [1, 224], strides = [1, 1]} : vector<1x256xf32> to vector<1x224xf32>
    %c53 = arith.constant 53 : index
    %c0_86 = arith.constant 0 : index
    %172 = vector.load %arg15[%c53, %c0_86] : memref<66x224xf32, #tpu.memory_space<vmem>>, vector<1x224xf32>
    tpu.vector_store %arg15[%c53, %c0_86], %171 {strides = array<i32>} : memref<66x224xf32, #tpu.memory_space<vmem>>, vector<1x224xf32>,
    %173 = vector.extract_strided_slice %63 {offsets = [0, 27], sizes = [1, 224], strides = [1, 1]} : vector<1x256xf32> to vector<1x224xf32>
    %c54 = arith.constant 54 : index
    %c0_87 = arith.constant 0 : index
    %174 = vector.load %arg15[%c54, %c0_87] : memref<66x224xf32, #tpu.memory_space<vmem>>, vector<1x224xf32>
    tpu.vector_store %arg15[%c54, %c0_87], %173 {strides = array<i32>} : memref<66x224xf32, #tpu.memory_space<vmem>>, vector<1x224xf32>,
    %175 = vector.extract_strided_slice %64 {offsets = [0, 27], sizes = [1, 224], strides = [1, 1]} : vector<1x256xf32> to vector<1x224xf32>
    %c55 = arith.constant 55 : index
    %c0_88 = arith.constant 0 : index
    %176 = vector.load %arg15[%c55, %c0_88] : memref<66x224xf32, #tpu.memory_space<vmem>>, vector<1x224xf32>
    tpu.vector_store %arg15[%c55, %c0_88], %175 {strides = array<i32>} : memref<66x224xf32, #tpu.memory_space<vmem>>, vector<1x224xf32>,
    %177 = vector.extract_strided_slice %63 {offsets = [0, 28], sizes = [1, 224], strides = [1, 1]} : vector<1x256xf32> to vector<1x224xf32>
    %c56 = arith.constant 56 : index
    %c0_89 = arith.constant 0 : index
    %178 = vector.load %arg15[%c56, %c0_89] : memref<66x224xf32, #tpu.memory_space<vmem>>, vector<1x224xf32>
    tpu.vector_store %arg15[%c56, %c0_89], %177 {strides = array<i32>} : memref<66x224xf32, #tpu.memory_space<vmem>>, vector<1x224xf32>,
    %179 = vector.extract_strided_slice %64 {offsets = [0, 28], sizes = [1, 224], strides = [1, 1]} : vector<1x256xf32> to vector<1x224xf32>
    %c57 = arith.constant 57 : index
    %c0_90 = arith.constant 0 : index
    %180 = vector.load %arg15[%c57, %c0_90] : memref<66x224xf32, #tpu.memory_space<vmem>>, vector<1x224xf32>
    tpu.vector_store %arg15[%c57, %c0_90], %179 {strides = array<i32>} : memref<66x224xf32, #tpu.memory_space<vmem>>, vector<1x224xf32>,
    %181 = vector.extract_strided_slice %63 {offsets = [0, 29], sizes = [1, 224], strides = [1, 1]} : vector<1x256xf32> to vector<1x224xf32>
    %c58 = arith.constant 58 : index
    %c0_91 = arith.constant 0 : index
    %182 = vector.load %arg15[%c58, %c0_91] : memref<66x224xf32, #tpu.memory_space<vmem>>, vector<1x224xf32>
    tpu.vector_store %arg15[%c58, %c0_91], %181 {strides = array<i32>} : memref<66x224xf32, #tpu.memory_space<vmem>>, vector<1x224xf32>,
    %183 = vector.extract_strided_slice %64 {offsets = [0, 29], sizes = [1, 224], strides = [1, 1]} : vector<1x256xf32> to vector<1x224xf32>
    %c59 = arith.constant 59 : index
    %c0_92 = arith.constant 0 : index
    %184 = vector.load %arg15[%c59, %c0_92] : memref<66x224xf32, #tpu.memory_space<vmem>>, vector<1x224xf32>
    tpu.vector_store %arg15[%c59, %c0_92], %183 {strides = array<i32>} : memref<66x224xf32, #tpu.memory_space<vmem>>, vector<1x224xf32>,
    %185 = vector.extract_strided_slice %63 {offsets = [0, 30], sizes = [1, 224], strides = [1, 1]} : vector<1x256xf32> to vector<1x224xf32>
    %c60 = arith.constant 60 : index
    %c0_93 = arith.constant 0 : index
    %186 = vector.load %arg15[%c60, %c0_93] : memref<66x224xf32, #tpu.memory_space<vmem>>, vector<1x224xf32>
    tpu.vector_store %arg15[%c60, %c0_93], %185 {strides = array<i32>} : memref<66x224xf32, #tpu.memory_space<vmem>>, vector<1x224xf32>,
    %187 = vector.extract_strided_slice %64 {offsets = [0, 30], sizes = [1, 224], strides = [1, 1]} : vector<1x256xf32> to vector<1x224xf32>
    %c61 = arith.constant 61 : index
    %c0_94 = arith.constant 0 : index
    %188 = vector.load %arg15[%c61, %c0_94] : memref<66x224xf32, #tpu.memory_space<vmem>>, vector<1x224xf32>
    tpu.vector_store %arg15[%c61, %c0_94], %187 {strides = array<i32>} : memref<66x224xf32, #tpu.memory_space<vmem>>, vector<1x224xf32>,
    %189 = vector.extract_strided_slice %63 {offsets = [0, 31], sizes = [1, 224], strides = [1, 1]} : vector<1x256xf32> to vector<1x224xf32>
    %c62 = arith.constant 62 : index
    %c0_95 = arith.constant 0 : index
    %190 = vector.load %arg15[%c62, %c0_95] : memref<66x224xf32, #tpu.memory_space<vmem>>, vector<1x224xf32>
    tpu.vector_store %arg15[%c62, %c0_95], %189 {strides = array<i32>} : memref<66x224xf32, #tpu.memory_space<vmem>>, vector<1x224xf32>,
    %191 = vector.extract_strided_slice %64 {offsets = [0, 31], sizes = [1, 224], strides = [1, 1]} : vector<1x256xf32> to vector<1x224xf32>
    %c63 = arith.constant 63 : index
    %c0_96 = arith.constant 0 : index
    %192 = vector.load %arg15[%c63, %c0_96] : memref<66x224xf32, #tpu.memory_space<vmem>>, vector<1x224xf32>
    tpu.vector_store %arg15[%c63, %c0_96], %191 {strides = array<i32>} : memref<66x224xf32, #tpu.memory_space<vmem>>, vector<1x224xf32>,
    %193 = vector.extract_strided_slice %63 {offsets = [0, 32], sizes = [1, 224], strides = [1, 1]} : vector<1x256xf32> to vector<1x224xf32>
    %c64 = arith.constant 64 : index
    %c0_97 = arith.constant 0 : index
    %194 = vector.load %arg15[%c64, %c0_97] : memref<66x224xf32, #tpu.memory_space<vmem>>, vector<1x224xf32>
    tpu.vector_store %arg15[%c64, %c0_97], %193 {strides = array<i32>} : memref<66x224xf32, #tpu.memory_space<vmem>>, vector<1x224xf32>,
    %195 = vector.extract_strided_slice %64 {offsets = [0, 32], sizes = [1, 224], strides = [1, 1]} : vector<1x256xf32> to vector<1x224xf32>
    %c65 = arith.constant 65 : index
    %c0_98 = arith.constant 0 : index
    %196 = vector.load %arg15[%c65, %c0_98] : memref<66x224xf32, #tpu.memory_space<vmem>>, vector<1x224xf32>
    tpu.vector_store %arg15[%c65, %c0_98], %195 {strides = array<i32>} : memref<66x224xf32, #tpu.memory_space<vmem>>, vector<1x224xf32>,
    %c0_99 = arith.constant 0 : index
    %c0_100 = arith.constant 0 : index
    %197 = vector.load %arg15[%c0_99, %c0_100] : memref<66x224xf32, #tpu.memory_space<vmem>>, vector<66x224xf32>
    %cst_101 = arith.constant dense<0.000000e+00> : vector<32x224xf32>
    %198 = tpu.matmul %42, %197, %cst_101 {dimension_numbers = #tpu.dot_dimension_numbers<[1], [0], [0], [1], [0, 0, 1, 1], [], []>} : vector<32x66xf32>, vector<66x224xf32>, vector<32x224xf32> -> vector<32x224xf32>
    %199 = math.absf %198 : vector<32x224xf32>
    %200 = vector.extract_strided_slice %199 {offsets = [0, 0], sizes = [16, 224], strides = [1, 1]} : vector<32x224xf32> to vector<16x224xf32>
    %201 = vector.extract_strided_slice %199 {offsets = [16, 0], sizes = [16, 224], strides = [1, 1]} : vector<32x224xf32> to vector<16x224xf32>
    %202 = arith.maximumf %200, %201 : vector<16x224xf32>
    %cst_102 = arith.constant dense<0.000000e+00> : vector<16xf32>
    %203 = vector.multi_reduction <add>, %202, %cst_102 [1] : vector<16x224xf32> to vector<16xf32>
    %204 = vector.shape_cast %203 : vector<16xf32> to vector<16x1xf32>
    %cst_103 = arith.constant 2.240000e+02 : f32
    %205 = vector.broadcast %cst_103 : f32 to vector<16x1xf32>
    %206 = arith.divf %204, %205 : vector<16x1xf32>
    %207 = vector.broadcast %206 : vector<16x1xf32> to vector<16x224xf32>
    %208 = arith.subf %202, %207 : vector<16x224xf32>
    %209 = arith.mulf %208, %208 : vector<16x224xf32>
    %cst_104 = arith.constant dense<0.000000e+00> : vector<16xf32>
    %210 = vector.multi_reduction <add>, %209, %cst_104 [1] : vector<16x224xf32> to vector<16xf32>
    %211 = vector.shape_cast %210 : vector<16xf32> to vector<16x1xf32>
    %cst_105 = arith.constant 2.230000e+02 : f32
    %212 = vector.broadcast %cst_105 : f32 to vector<16x1xf32>
    %213 = arith.divf %211, %212 : vector<16x1xf32>
    %214 = math.sqrt %213 : vector<16x1xf32>
    %cst_106 = arith.constant 9.99999997E-7 : f32
    %215 = vector.broadcast %cst_106 : f32 to vector<16x1xf32>
    %216 = arith.addf %214, %215 : vector<16x1xf32>
    %217 = tpu.reciprocal %216 {approx = true} : vector<16x1xf32> -> vector<16x1xf32>
    %218 = vector.broadcast %217 : vector<16x1xf32> to vector<16x224xf32>
    %219 = arith.mulf %208, %218 : vector<16x224xf32>
    %220 = arith.mulf %45, %219 : vector<16x224xf32>
    %221 = arith.addf %220, %46 : vector<16x224xf32>
    %cst_107 = arith.constant 0.000000e+00 : f32
    %222 = vector.broadcast %cst_107 : f32 to vector<16x224xf32>
    %223 = arith.cmpf oge, %221, %222 : vector<16x224xf32>
    %cst_108 = arith.constant 2.000000e-01 : f32
    %224 = vector.broadcast %cst_108 : f32 to vector<16x224xf32>
    %225 = arith.mulf %224, %221 : vector<16x224xf32>
    %226 = arith.select %223, %221, %225 : vector<16x224xi1>, vector<16x224xf32>
    %227 = vector.extract_strided_slice %226 {offsets = [0, 0], sizes = [16, 220], strides = [1, 1]} : vector<16x224xf32> to vector<16x220xf32>
    %c0_109 = arith.constant 0 : index
    %c0_110 = arith.constant 0 : index
    %228 = vector.load %arg16[%c0_109, %c0_110] : memref<80x220xf32, #tpu.memory_space<vmem>>, vector<16x220xf32>
    tpu.vector_store %arg16[%c0_109, %c0_110], %227 {strides = array<i32>} : memref<80x220xf32, #tpu.memory_space<vmem>>, vector<16x220xf32>,
    %229 = vector.extract_strided_slice %226 {offsets = [0, 1], sizes = [16, 220], strides = [1, 1]} : vector<16x224xf32> to vector<16x220xf32>
    %c16_111 = arith.constant 16 : index
    %c0_112 = arith.constant 0 : index
    %230 = vector.load %arg16[%c16_111, %c0_112] : memref<80x220xf32, #tpu.memory_space<vmem>>, vector<16x220xf32>
    tpu.vector_store %arg16[%c16_111, %c0_112], %229 {strides = array<i32>} : memref<80x220xf32, #tpu.memory_space<vmem>>, vector<16x220xf32>,
    %231 = vector.extract_strided_slice %226 {offsets = [0, 2], sizes = [16, 220], strides = [1, 1]} : vector<16x224xf32> to vector<16x220xf32>
    %c32_113 = arith.constant 32 : index
    %c0_114 = arith.constant 0 : index
    %232 = vector.load %arg16[%c32_113, %c0_114] : memref<80x220xf32, #tpu.memory_space<vmem>>, vector<16x220xf32>
    tpu.vector_store %arg16[%c32_113, %c0_114], %231 {strides = array<i32>} : memref<80x220xf32, #tpu.memory_space<vmem>>, vector<16x220xf32>,
    %233 = vector.extract_strided_slice %226 {offsets = [0, 3], sizes = [16, 220], strides = [1, 1]} : vector<16x224xf32> to vector<16x220xf32>
    %c48_115 = arith.constant 48 : index
    %c0_116 = arith.constant 0 : index
    %234 = vector.load %arg16[%c48_115, %c0_116] : memref<80x220xf32, #tpu.memory_space<vmem>>, vector<16x220xf32>
    tpu.vector_store %arg16[%c48_115, %c0_116], %233 {strides = array<i32>} : memref<80x220xf32, #tpu.memory_space<vmem>>, vector<16x220xf32>,
    %235 = vector.extract_strided_slice %226 {offsets = [0, 4], sizes = [16, 220], strides = [1, 1]} : vector<16x224xf32> to vector<16x220xf32>
    %c64_117 = arith.constant 64 : index
    %c0_118 = arith.constant 0 : index
    %236 = vector.load %arg16[%c64_117, %c0_118] : memref<80x220xf32, #tpu.memory_space<vmem>>, vector<16x220xf32>
    tpu.vector_store %arg16[%c64_117, %c0_118], %235 {strides = array<i32>} : memref<80x220xf32, #tpu.memory_space<vmem>>, vector<16x220xf32>,
    %c0_119 = arith.constant 0 : index
    %c0_120 = arith.constant 0 : index
    %237 = vector.load %arg16[%c0_119, %c0_120] : memref<80x220xf32, #tpu.memory_space<vmem>>, vector<80x220xf32>
    %cst_121 = arith.constant dense<0.000000e+00> : vector<16x220xf32>
    %238 = tpu.matmul %43, %237, %cst_121 {dimension_numbers = #tpu.dot_dimension_numbers<[1], [0], [0], [1], [0, 0, 1, 1], [], []>} : vector<16x80xf32>, vector<80x220xf32>, vector<16x220xf32> -> vector<16x220xf32>
    %cst_122 = arith.constant dense<0.000000e+00> : vector<16x110xf32>
    %239 = tpu.matmul %238, %55, %cst_122 {dimension_numbers = #tpu.dot_dimension_numbers<[1], [0], [0], [1], [0, 0, 1, 1], [], []>} : vector<16x220xf32>, vector<220x110xf32>, vector<16x110xf32> -> vector<16x110xf32>
    %cst_123 = arith.constant dense<0.000000e+00> : vector<16x110xf32>
    %240 = tpu.matmul %238, %62, %cst_123 {dimension_numbers = #tpu.dot_dimension_numbers<[1], [0], [0], [1], [0, 0, 1, 1], [], []>} : vector<16x220xf32>, vector<220x110xf32>, vector<16x110xf32> -> vector<16x110xf32>
    %241 = arith.maximumf %239, %240 : vector<16x110xf32>
    %242 = vector.broadcast %44 : vector<16x1xf32> to vector<16x110xf32>
    %243 = arith.addf %241, %242 : vector<16x110xf32>
    %cst_124 = arith.constant dense<0.000000e+00> : vector<16xf32>
    %244 = vector.multi_reduction <add>, %243, %cst_124 [1] : vector<16x110xf32> to vector<16xf32>
    %245 = vector.shape_cast %244 : vector<16xf32> to vector<16x1xf32>
    %cst_125 = arith.constant 1.100000e+02 : f32
    %246 = vector.broadcast %cst_125 : f32 to vector<16x1xf32>
    %247 = arith.divf %245, %246 : vector<16x1xf32>
    %248 = vector.broadcast %247 : vector<16x1xf32> to vector<16x110xf32>
    %249 = arith.subf %243, %248 : vector<16x110xf32>
    %250 = arith.mulf %249, %249 : vector<16x110xf32>
    %cst_126 = arith.constant dense<0.000000e+00> : vector<16xf32>
    %251 = vector.multi_reduction <add>, %250, %cst_126 [1] : vector<16x110xf32> to vector<16xf32>
    %252 = vector.shape_cast %251 : vector<16xf32> to vector<16x1xf32>
    %cst_127 = arith.constant 1.090000e+02 : f32
    %253 = vector.broadcast %cst_127 : f32 to vector<16x1xf32>
    %254 = arith.divf %252, %253 : vector<16x1xf32>
    %255 = math.sqrt %254 : vector<16x1xf32>
    %cst_128 = arith.constant 9.99999997E-7 : f32
    %256 = vector.broadcast %cst_128 : f32 to vector<16x1xf32>
    %257 = arith.addf %255, %256 : vector<16x1xf32>
    %258 = tpu.reciprocal %257 {approx = true} : vector<16x1xf32> -> vector<16x1xf32>
    %259 = vector.broadcast %258 : vector<16x1xf32> to vector<16x110xf32>
    %260 = arith.mulf %249, %259 : vector<16x110xf32>
    %261 = arith.mulf %47, %260 : vector<16x110xf32>
    %262 = arith.addf %261, %48 : vector<16x110xf32>
    %cst_129 = arith.constant 0.000000e+00 : f32
    %263 = vector.broadcast %cst_129 : f32 to vector<16x110xf32>
    %264 = arith.cmpf oge, %262, %263 : vector<16x110xf32>
    %cst_130 = arith.constant 2.000000e-01 : f32
    %265 = vector.broadcast %cst_130 : f32 to vector<16x110xf32>
    %266 = arith.mulf %265, %262 : vector<16x110xf32>
    %267 = arith.select %264, %262, %266 : vector<16x110xi1>, vector<16x110xf32>
    %268 = vector.extract_strided_slice %267 {offsets = [0, 0], sizes = [1, 110], strides = [1, 1]} : vector<16x110xf32> to vector<1x110xf32>
    %c0_131 = arith.constant 0 : index
    %c0_132 = arith.constant 0 : index
    %269 = vector.load %arg14[%c0_131, %c0_132] : memref<2x1760xf32, #tpu.memory_space<vmem>>, vector<1x110xf32>
    tpu.vector_store %arg14[%c0_131, %c0_132], %268 {strides = array<i32>} : memref<2x1760xf32, #tpu.memory_space<vmem>>, vector<1x110xf32>,
    %270 = vector.extract_strided_slice %267 {offsets = [1, 0], sizes = [1, 110], strides = [1, 1]} : vector<16x110xf32> to vector<1x110xf32>
    %c0_133 = arith.constant 0 : index
    %c110 = arith.constant 110 : index
    %271 = vector.load %arg14[%c0_133, %c110] : memref<2x1760xf32, #tpu.memory_space<vmem>>, vector<1x110xf32>
    tpu.vector_store %arg14[%c0_133, %c110], %270 {strides = array<i32>} : memref<2x1760xf32, #tpu.memory_space<vmem>>, vector<1x110xf32>,
    %272 = vector.extract_strided_slice %267 {offsets = [2, 0], sizes = [1, 110], strides = [1, 1]} : vector<16x110xf32> to vector<1x110xf32>
    %c0_134 = arith.constant 0 : index
    %c220 = arith.constant 220 : index
    %273 = vector.load %arg14[%c0_134, %c220] : memref<2x1760xf32, #tpu.memory_space<vmem>>, vector<1x110xf32>
    tpu.vector_store %arg14[%c0_134, %c220], %272 {strides = array<i32>} : memref<2x1760xf32, #tpu.memory_space<vmem>>, vector<1x110xf32>,
    %274 = vector.extract_strided_slice %267 {offsets = [3, 0], sizes = [1, 110], strides = [1, 1]} : vector<16x110xf32> to vector<1x110xf32>
    %c0_135 = arith.constant 0 : index
    %c330 = arith.constant 330 : index
    %275 = vector.load %arg14[%c0_135, %c330] : memref<2x1760xf32, #tpu.memory_space<vmem>>, vector<1x110xf32>
    tpu.vector_store %arg14[%c0_135, %c330], %274 {strides = array<i32>} : memref<2x1760xf32, #tpu.memory_space<vmem>>, vector<1x110xf32>,
    %276 = vector.extract_strided_slice %267 {offsets = [4, 0], sizes = [1, 110], strides = [1, 1]} : vector<16x110xf32> to vector<1x110xf32>
    %c0_136 = arith.constant 0 : index
    %c440 = arith.constant 440 : index
    %277 = vector.load %arg14[%c0_136, %c440] : memref<2x1760xf32, #tpu.memory_space<vmem>>, vector<1x110xf32>
    tpu.vector_store %arg14[%c0_136, %c440], %276 {strides = array<i32>} : memref<2x1760xf32, #tpu.memory_space<vmem>>, vector<1x110xf32>,
    %278 = vector.extract_strided_slice %267 {offsets = [5, 0], sizes = [1, 110], strides = [1, 1]} : vector<16x110xf32> to vector<1x110xf32>
    %c0_137 = arith.constant 0 : index
    %c550 = arith.constant 550 : index
    %279 = vector.load %arg14[%c0_137, %c550] : memref<2x1760xf32, #tpu.memory_space<vmem>>, vector<1x110xf32>
    tpu.vector_store %arg14[%c0_137, %c550], %278 {strides = array<i32>} : memref<2x1760xf32, #tpu.memory_space<vmem>>, vector<1x110xf32>,
    %280 = vector.extract_strided_slice %267 {offsets = [6, 0], sizes = [1, 110], strides = [1, 1]} : vector<16x110xf32> to vector<1x110xf32>
    %c0_138 = arith.constant 0 : index
    %c660 = arith.constant 660 : index
    %281 = vector.load %arg14[%c0_138, %c660] : memref<2x1760xf32, #tpu.memory_space<vmem>>, vector<1x110xf32>
    tpu.vector_store %arg14[%c0_138, %c660], %280 {strides = array<i32>} : memref<2x1760xf32, #tpu.memory_space<vmem>>, vector<1x110xf32>,
    %282 = vector.extract_strided_slice %267 {offsets = [7, 0], sizes = [1, 110], strides = [1, 1]} : vector<16x110xf32> to vector<1x110xf32>
    %c0_139 = arith.constant 0 : index
    %c770 = arith.constant 770 : index
    %283 = vector.load %arg14[%c0_139, %c770] : memref<2x1760xf32, #tpu.memory_space<vmem>>, vector<1x110xf32>
    tpu.vector_store %arg14[%c0_139, %c770], %282 {strides = array<i32>} : memref<2x1760xf32, #tpu.memory_space<vmem>>, vector<1x110xf32>,
    %284 = vector.extract_strided_slice %267 {offsets = [8, 0], sizes = [1, 110], strides = [1, 1]} : vector<16x110xf32> to vector<1x110xf32>
    %c0_140 = arith.constant 0 : index
    %c880 = arith.constant 880 : index
    %285 = vector.load %arg14[%c0_140, %c880] : memref<2x1760xf32, #tpu.memory_space<vmem>>, vector<1x110xf32>
    tpu.vector_store %arg14[%c0_140, %c880], %284 {strides = array<i32>} : memref<2x1760xf32, #tpu.memory_space<vmem>>, vector<1x110xf32>,
    %286 = vector.extract_strided_slice %267 {offsets = [9, 0], sizes = [1, 110], strides = [1, 1]} : vector<16x110xf32> to vector<1x110xf32>
    %c0_141 = arith.constant 0 : index
    %c990 = arith.constant 990 : index
    %287 = vector.load %arg14[%c0_141, %c990] : memref<2x1760xf32, #tpu.memory_space<vmem>>, vector<1x110xf32>
    tpu.vector_store %arg14[%c0_141, %c990], %286 {strides = array<i32>} : memref<2x1760xf32, #tpu.memory_space<vmem>>, vector<1x110xf32>,
    %288 = vector.extract_strided_slice %267 {offsets = [10, 0], sizes = [1, 110], strides = [1, 1]} : vector<16x110xf32> to vector<1x110xf32>
    %c0_142 = arith.constant 0 : index
    %c1100 = arith.constant 1100 : index
    %289 = vector.load %arg14[%c0_142, %c1100] : memref<2x1760xf32, #tpu.memory_space<vmem>>, vector<1x110xf32>
    tpu.vector_store %arg14[%c0_142, %c1100], %288 {strides = array<i32>} : memref<2x1760xf32, #tpu.memory_space<vmem>>, vector<1x110xf32>,
    %290 = vector.extract_strided_slice %267 {offsets = [11, 0], sizes = [1, 110], strides = [1, 1]} : vector<16x110xf32> to vector<1x110xf32>
    %c0_143 = arith.constant 0 : index
    %c1210 = arith.constant 1210 : index
    %291 = vector.load %arg14[%c0_143, %c1210] : memref<2x1760xf32, #tpu.memory_space<vmem>>, vector<1x110xf32>
    tpu.vector_store %arg14[%c0_143, %c1210], %290 {strides = array<i32>} : memref<2x1760xf32, #tpu.memory_space<vmem>>, vector<1x110xf32>,
    %292 = vector.extract_strided_slice %267 {offsets = [12, 0], sizes = [1, 110], strides = [1, 1]} : vector<16x110xf32> to vector<1x110xf32>
    %c0_144 = arith.constant 0 : index
    %c1320 = arith.constant 1320 : index
    %293 = vector.load %arg14[%c0_144, %c1320] : memref<2x1760xf32, #tpu.memory_space<vmem>>, vector<1x110xf32>
    tpu.vector_store %arg14[%c0_144, %c1320], %292 {strides = array<i32>} : memref<2x1760xf32, #tpu.memory_space<vmem>>, vector<1x110xf32>,
    %294 = vector.extract_strided_slice %267 {offsets = [13, 0], sizes = [1, 110], strides = [1, 1]} : vector<16x110xf32> to vector<1x110xf32>
    %c0_145 = arith.constant 0 : index
    %c1430 = arith.constant 1430 : index
    %295 = vector.load %arg14[%c0_145, %c1430] : memref<2x1760xf32, #tpu.memory_space<vmem>>, vector<1x110xf32>
    tpu.vector_store %arg14[%c0_145, %c1430], %294 {strides = array<i32>} : memref<2x1760xf32, #tpu.memory_space<vmem>>, vector<1x110xf32>,
    %296 = vector.extract_strided_slice %267 {offsets = [14, 0], sizes = [1, 110], strides = [1, 1]} : vector<16x110xf32> to vector<1x110xf32>
    %c0_146 = arith.constant 0 : index
    %c1540 = arith.constant 1540 : index
    %297 = vector.load %arg14[%c0_146, %c1540] : memref<2x1760xf32, #tpu.memory_space<vmem>>, vector<1x110xf32>
    tpu.vector_store %arg14[%c0_146, %c1540], %296 {strides = array<i32>} : memref<2x1760xf32, #tpu.memory_space<vmem>>, vector<1x110xf32>,
    %298 = vector.extract_strided_slice %267 {offsets = [15, 0], sizes = [1, 110], strides = [1, 1]} : vector<16x110xf32> to vector<1x110xf32>
    %c0_147 = arith.constant 0 : index
    %c1650 = arith.constant 1650 : index
    %299 = vector.load %arg14[%c0_147, %c1650] : memref<2x1760xf32, #tpu.memory_space<vmem>>, vector<1x110xf32>
    tpu.vector_store %arg14[%c0_147, %c1650], %298 {strides = array<i32>} : memref<2x1760xf32, #tpu.memory_space<vmem>>, vector<1x110xf32>,
    %300 = vector.extract_strided_slice %33 {offsets = [1, 0], sizes = [1, 256], strides = [1, 1]} : vector<2x256xf32> to vector<1x256xf32>
    %301 = vector.extract_strided_slice %41 {offsets = [1, 0], sizes = [1, 256], strides = [1, 1]} : vector<2x256xf32> to vector<1x256xf32>
    %302 = vector.extract_strided_slice %300 {offsets = [0, 0], sizes = [1, 224], strides = [1, 1]} : vector<1x256xf32> to vector<1x224xf32>
    %c0_148 = arith.constant 0 : index
    %c0_149 = arith.constant 0 : index
    %303 = vector.load %arg15[%c0_148, %c0_149] : memref<66x224xf32, #tpu.memory_space<vmem>>, vector<1x224xf32>
    tpu.vector_store %arg15[%c0_148, %c0_149], %302 {strides = array<i32>} : memref<66x224xf32, #tpu.memory_space<vmem>>, vector<1x224xf32>,
    %304 = vector.extract_strided_slice %301 {offsets = [0, 0], sizes = [1, 224], strides = [1, 1]} : vector<1x256xf32> to vector<1x224xf32>
    %c1_150 = arith.constant 1 : index
    %c0_151 = arith.constant 0 : index
    %305 = vector.load %arg15[%c1_150, %c0_151] : memref<66x224xf32, #tpu.memory_space<vmem>>, vector<1x224xf32>
    tpu.vector_store %arg15[%c1_150, %c0_151], %304 {strides = array<i32>} : memref<66x224xf32, #tpu.memory_space<vmem>>, vector<1x224xf32>,
    %306 = vector.extract_strided_slice %300 {offsets = [0, 1], sizes = [1, 224], strides = [1, 1]} : vector<1x256xf32> to vector<1x224xf32>
    %c2_152 = arith.constant 2 : index
    %c0_153 = arith.constant 0 : index
    %307 = vector.load %arg15[%c2_152, %c0_153] : memref<66x224xf32, #tpu.memory_space<vmem>>, vector<1x224xf32>
    tpu.vector_store %arg15[%c2_152, %c0_153], %306 {strides = array<i32>} : memref<66x224xf32, #tpu.memory_space<vmem>>, vector<1x224xf32>,
    %308 = vector.extract_strided_slice %301 {offsets = [0, 1], sizes = [1, 224], strides = [1, 1]} : vector<1x256xf32> to vector<1x224xf32>
    %c3_154 = arith.constant 3 : index
    %c0_155 = arith.constant 0 : index
    %309 = vector.load %arg15[%c3_154, %c0_155] : memref<66x224xf32, #tpu.memory_space<vmem>>, vector<1x224xf32>
    tpu.vector_store %arg15[%c3_154, %c0_155], %308 {strides = array<i32>} : memref<66x224xf32, #tpu.memory_space<vmem>>, vector<1x224xf32>,
    %310 = vector.extract_strided_slice %300 {offsets = [0, 2], sizes = [1, 224], strides = [1, 1]} : vector<1x256xf32> to vector<1x224xf32>
    %c4_156 = arith.constant 4 : index
    %c0_157 = arith.constant 0 : index
    %311 = vector.load %arg15[%c4_156, %c0_157] : memref<66x224xf32, #tpu.memory_space<vmem>>, vector<1x224xf32>
    tpu.vector_store %arg15[%c4_156, %c0_157], %310 {strides = array<i32>} : memref<66x224xf32, #tpu.memory_space<vmem>>, vector<1x224xf32>,
    %312 = vector.extract_strided_slice %301 {offsets = [0, 2], sizes = [1, 224], strides = [1, 1]} : vector<1x256xf32> to vector<1x224xf32>
    %c5_158 = arith.constant 5 : index
    %c0_159 = arith.constant 0 : index
    %313 = vector.load %arg15[%c5_158, %c0_159] : memref<66x224xf32, #tpu.memory_space<vmem>>, vector<1x224xf32>
    tpu.vector_store %arg15[%c5_158, %c0_159], %312 {strides = array<i32>} : memref<66x224xf32, #tpu.memory_space<vmem>>, vector<1x224xf32>,
    %314 = vector.extract_strided_slice %300 {offsets = [0, 3], sizes = [1, 224], strides = [1, 1]} : vector<1x256xf32> to vector<1x224xf32>
    %c6_160 = arith.constant 6 : index
    %c0_161 = arith.constant 0 : index
    %315 = vector.load %arg15[%c6_160, %c0_161] : memref<66x224xf32, #tpu.memory_space<vmem>>, vector<1x224xf32>
    tpu.vector_store %arg15[%c6_160, %c0_161], %314 {strides = array<i32>} : memref<66x224xf32, #tpu.memory_space<vmem>>, vector<1x224xf32>,
    %316 = vector.extract_strided_slice %301 {offsets = [0, 3], sizes = [1, 224], strides = [1, 1]} : vector<1x256xf32> to vector<1x224xf32>
    %c7_162 = arith.constant 7 : index
    %c0_163 = arith.constant 0 : index
    %317 = vector.load %arg15[%c7_162, %c0_163] : memref<66x224xf32, #tpu.memory_space<vmem>>, vector<1x224xf32>
    tpu.vector_store %arg15[%c7_162, %c0_163], %316 {strides = array<i32>} : memref<66x224xf32, #tpu.memory_space<vmem>>, vector<1x224xf32>,
    %318 = vector.extract_strided_slice %300 {offsets = [0, 4], sizes = [1, 224], strides = [1, 1]} : vector<1x256xf32> to vector<1x224xf32>
    %c8_164 = arith.constant 8 : index
    %c0_165 = arith.constant 0 : index
    %319 = vector.load %arg15[%c8_164, %c0_165] : memref<66x224xf32, #tpu.memory_space<vmem>>, vector<1x224xf32>
    tpu.vector_store %arg15[%c8_164, %c0_165], %318 {strides = array<i32>} : memref<66x224xf32, #tpu.memory_space<vmem>>, vector<1x224xf32>,
    %320 = vector.extract_strided_slice %301 {offsets = [0, 4], sizes = [1, 224], strides = [1, 1]} : vector<1x256xf32> to vector<1x224xf32>
    %c9_166 = arith.constant 9 : index
    %c0_167 = arith.constant 0 : index
    %321 = vector.load %arg15[%c9_166, %c0_167] : memref<66x224xf32, #tpu.memory_space<vmem>>, vector<1x224xf32>
    tpu.vector_store %arg15[%c9_166, %c0_167], %320 {strides = array<i32>} : memref<66x224xf32, #tpu.memory_space<vmem>>, vector<1x224xf32>,
    %322 = vector.extract_strided_slice %300 {offsets = [0, 5], sizes = [1, 224], strides = [1, 1]} : vector<1x256xf32> to vector<1x224xf32>
    %c10_168 = arith.constant 10 : index
    %c0_169 = arith.constant 0 : index
    %323 = vector.load %arg15[%c10_168, %c0_169] : memref<66x224xf32, #tpu.memory_space<vmem>>, vector<1x224xf32>
    tpu.vector_store %arg15[%c10_168, %c0_169], %322 {strides = array<i32>} : memref<66x224xf32, #tpu.memory_space<vmem>>, vector<1x224xf32>,
    %324 = vector.extract_strided_slice %301 {offsets = [0, 5], sizes = [1, 224], strides = [1, 1]} : vector<1x256xf32> to vector<1x224xf32>
    %c11_170 = arith.constant 11 : index
    %c0_171 = arith.constant 0 : index
    %325 = vector.load %arg15[%c11_170, %c0_171] : memref<66x224xf32, #tpu.memory_space<vmem>>, vector<1x224xf32>
    tpu.vector_store %arg15[%c11_170, %c0_171], %324 {strides = array<i32>} : memref<66x224xf32, #tpu.memory_space<vmem>>, vector<1x224xf32>,
    %326 = vector.extract_strided_slice %300 {offsets = [0, 6], sizes = [1, 224], strides = [1, 1]} : vector<1x256xf32> to vector<1x224xf32>
    %c12_172 = arith.constant 12 : index
    %c0_173 = arith.constant 0 : index
    %327 = vector.load %arg15[%c12_172, %c0_173] : memref<66x224xf32, #tpu.memory_space<vmem>>, vector<1x224xf32>
    tpu.vector_store %arg15[%c12_172, %c0_173], %326 {strides = array<i32>} : memref<66x224xf32, #tpu.memory_space<vmem>>, vector<1x224xf32>,
    %328 = vector.extract_strided_slice %301 {offsets = [0, 6], sizes = [1, 224], strides = [1, 1]} : vector<1x256xf32> to vector<1x224xf32>
    %c13_174 = arith.constant 13 : index
    %c0_175 = arith.constant 0 : index
    %329 = vector.load %arg15[%c13_174, %c0_175] : memref<66x224xf32, #tpu.memory_space<vmem>>, vector<1x224xf32>
    tpu.vector_store %arg15[%c13_174, %c0_175], %328 {strides = array<i32>} : memref<66x224xf32, #tpu.memory_space<vmem>>, vector<1x224xf32>,
    %330 = vector.extract_strided_slice %300 {offsets = [0, 7], sizes = [1, 224], strides = [1, 1]} : vector<1x256xf32> to vector<1x224xf32>
    %c14_176 = arith.constant 14 : index
    %c0_177 = arith.constant 0 : index
    %331 = vector.load %arg15[%c14_176, %c0_177] : memref<66x224xf32, #tpu.memory_space<vmem>>, vector<1x224xf32>
    tpu.vector_store %arg15[%c14_176, %c0_177], %330 {strides = array<i32>} : memref<66x224xf32, #tpu.memory_space<vmem>>, vector<1x224xf32>,
    %332 = vector.extract_strided_slice %301 {offsets = [0, 7], sizes = [1, 224], strides = [1, 1]} : vector<1x256xf32> to vector<1x224xf32>
    %c15_178 = arith.constant 15 : index
    %c0_179 = arith.constant 0 : index
    %333 = vector.load %arg15[%c15_178, %c0_179] : memref<66x224xf32, #tpu.memory_space<vmem>>, vector<1x224xf32>
    tpu.vector_store %arg15[%c15_178, %c0_179], %332 {strides = array<i32>} : memref<66x224xf32, #tpu.memory_space<vmem>>, vector<1x224xf32>,
    %334 = vector.extract_strided_slice %300 {offsets = [0, 8], sizes = [1, 224], strides = [1, 1]} : vector<1x256xf32> to vector<1x224xf32>
    %c16_180 = arith.constant 16 : index
    %c0_181 = arith.constant 0 : index
    %335 = vector.load %arg15[%c16_180, %c0_181] : memref<66x224xf32, #tpu.memory_space<vmem>>, vector<1x224xf32>
    tpu.vector_store %arg15[%c16_180, %c0_181], %334 {strides = array<i32>} : memref<66x224xf32, #tpu.memory_space<vmem>>, vector<1x224xf32>,
    %336 = vector.extract_strided_slice %301 {offsets = [0, 8], sizes = [1, 224], strides = [1, 1]} : vector<1x256xf32> to vector<1x224xf32>
    %c17_182 = arith.constant 17 : index
    %c0_183 = arith.constant 0 : index
    %337 = vector.load %arg15[%c17_182, %c0_183] : memref<66x224xf32, #tpu.memory_space<vmem>>, vector<1x224xf32>
    tpu.vector_store %arg15[%c17_182, %c0_183], %336 {strides = array<i32>} : memref<66x224xf32, #tpu.memory_space<vmem>>, vector<1x224xf32>,
    %338 = vector.extract_strided_slice %300 {offsets = [0, 9], sizes = [1, 224], strides = [1, 1]} : vector<1x256xf32> to vector<1x224xf32>
    %c18_184 = arith.constant 18 : index
    %c0_185 = arith.constant 0 : index
    %339 = vector.load %arg15[%c18_184, %c0_185] : memref<66x224xf32, #tpu.memory_space<vmem>>, vector<1x224xf32>
    tpu.vector_store %arg15[%c18_184, %c0_185], %338 {strides = array<i32>} : memref<66x224xf32, #tpu.memory_space<vmem>>, vector<1x224xf32>,
    %340 = vector.extract_strided_slice %301 {offsets = [0, 9], sizes = [1, 224], strides = [1, 1]} : vector<1x256xf32> to vector<1x224xf32>
    %c19_186 = arith.constant 19 : index
    %c0_187 = arith.constant 0 : index
    %341 = vector.load %arg15[%c19_186, %c0_187] : memref<66x224xf32, #tpu.memory_space<vmem>>, vector<1x224xf32>
    tpu.vector_store %arg15[%c19_186, %c0_187], %340 {strides = array<i32>} : memref<66x224xf32, #tpu.memory_space<vmem>>, vector<1x224xf32>,
    %342 = vector.extract_strided_slice %300 {offsets = [0, 10], sizes = [1, 224], strides = [1, 1]} : vector<1x256xf32> to vector<1x224xf32>
    %c20_188 = arith.constant 20 : index
    %c0_189 = arith.constant 0 : index
    %343 = vector.load %arg15[%c20_188, %c0_189] : memref<66x224xf32, #tpu.memory_space<vmem>>, vector<1x224xf32>
    tpu.vector_store %arg15[%c20_188, %c0_189], %342 {strides = array<i32>} : memref<66x224xf32, #tpu.memory_space<vmem>>, vector<1x224xf32>,
    %344 = vector.extract_strided_slice %301 {offsets = [0, 10], sizes = [1, 224], strides = [1, 1]} : vector<1x256xf32> to vector<1x224xf32>
    %c21_190 = arith.constant 21 : index
    %c0_191 = arith.constant 0 : index
    %345 = vector.load %arg15[%c21_190, %c0_191] : memref<66x224xf32, #tpu.memory_space<vmem>>, vector<1x224xf32>
    tpu.vector_store %arg15[%c21_190, %c0_191], %344 {strides = array<i32>} : memref<66x224xf32, #tpu.memory_space<vmem>>, vector<1x224xf32>,
    %346 = vector.extract_strided_slice %300 {offsets = [0, 11], sizes = [1, 224], strides = [1, 1]} : vector<1x256xf32> to vector<1x224xf32>
    %c22_192 = arith.constant 22 : index
    %c0_193 = arith.constant 0 : index
    %347 = vector.load %arg15[%c22_192, %c0_193] : memref<66x224xf32, #tpu.memory_space<vmem>>, vector<1x224xf32>
    tpu.vector_store %arg15[%c22_192, %c0_193], %346 {strides = array<i32>} : memref<66x224xf32, #tpu.memory_space<vmem>>, vector<1x224xf32>,
    %348 = vector.extract_strided_slice %301 {offsets = [0, 11], sizes = [1, 224], strides = [1, 1]} : vector<1x256xf32> to vector<1x224xf32>
    %c23_194 = arith.constant 23 : index
    %c0_195 = arith.constant 0 : index
    %349 = vector.load %arg15[%c23_194, %c0_195] : memref<66x224xf32, #tpu.memory_space<vmem>>, vector<1x224xf32>
    tpu.vector_store %arg15[%c23_194, %c0_195], %348 {strides = array<i32>} : memref<66x224xf32, #tpu.memory_space<vmem>>, vector<1x224xf32>,
    %350 = vector.extract_strided_slice %300 {offsets = [0, 12], sizes = [1, 224], strides = [1, 1]} : vector<1x256xf32> to vector<1x224xf32>
    %c24_196 = arith.constant 24 : index
    %c0_197 = arith.constant 0 : index
    %351 = vector.load %arg15[%c24_196, %c0_197] : memref<66x224xf32, #tpu.memory_space<vmem>>, vector<1x224xf32>
    tpu.vector_store %arg15[%c24_196, %c0_197], %350 {strides = array<i32>} : memref<66x224xf32, #tpu.memory_space<vmem>>, vector<1x224xf32>,
    %352 = vector.extract_strided_slice %301 {offsets = [0, 12], sizes = [1, 224], strides = [1, 1]} : vector<1x256xf32> to vector<1x224xf32>
    %c25_198 = arith.constant 25 : index
    %c0_199 = arith.constant 0 : index
    %353 = vector.load %arg15[%c25_198, %c0_199] : memref<66x224xf32, #tpu.memory_space<vmem>>, vector<1x224xf32>
    tpu.vector_store %arg15[%c25_198, %c0_199], %352 {strides = array<i32>} : memref<66x224xf32, #tpu.memory_space<vmem>>, vector<1x224xf32>,
    %354 = vector.extract_strided_slice %300 {offsets = [0, 13], sizes = [1, 224], strides = [1, 1]} : vector<1x256xf32> to vector<1x224xf32>
    %c26_200 = arith.constant 26 : index
    %c0_201 = arith.constant 0 : index
    %355 = vector.load %arg15[%c26_200, %c0_201] : memref<66x224xf32, #tpu.memory_space<vmem>>, vector<1x224xf32>
    tpu.vector_store %arg15[%c26_200, %c0_201], %354 {strides = array<i32>} : memref<66x224xf32, #tpu.memory_space<vmem>>, vector<1x224xf32>,
    %356 = vector.extract_strided_slice %301 {offsets = [0, 13], sizes = [1, 224], strides = [1, 1]} : vector<1x256xf32> to vector<1x224xf32>
    %c27_202 = arith.constant 27 : index
    %c0_203 = arith.constant 0 : index
    %357 = vector.load %arg15[%c27_202, %c0_203] : memref<66x224xf32, #tpu.memory_space<vmem>>, vector<1x224xf32>
    tpu.vector_store %arg15[%c27_202, %c0_203], %356 {strides = array<i32>} : memref<66x224xf32, #tpu.memory_space<vmem>>, vector<1x224xf32>,
    %358 = vector.extract_strided_slice %300 {offsets = [0, 14], sizes = [1, 224], strides = [1, 1]} : vector<1x256xf32> to vector<1x224xf32>
    %c28_204 = arith.constant 28 : index
    %c0_205 = arith.constant 0 : index
    %359 = vector.load %arg15[%c28_204, %c0_205] : memref<66x224xf32, #tpu.memory_space<vmem>>, vector<1x224xf32>
    tpu.vector_store %arg15[%c28_204, %c0_205], %358 {strides = array<i32>} : memref<66x224xf32, #tpu.memory_space<vmem>>, vector<1x224xf32>,
    %360 = vector.extract_strided_slice %301 {offsets = [0, 14], sizes = [1, 224], strides = [1, 1]} : vector<1x256xf32> to vector<1x224xf32>
    %c29_206 = arith.constant 29 : index
    %c0_207 = arith.constant 0 : index
    %361 = vector.load %arg15[%c29_206, %c0_207] : memref<66x224xf32, #tpu.memory_space<vmem>>, vector<1x224xf32>
    tpu.vector_store %arg15[%c29_206, %c0_207], %360 {strides = array<i32>} : memref<66x224xf32, #tpu.memory_space<vmem>>, vector<1x224xf32>,
    %362 = vector.extract_strided_slice %300 {offsets = [0, 15], sizes = [1, 224], strides = [1, 1]} : vector<1x256xf32> to vector<1x224xf32>
    %c30_208 = arith.constant 30 : index
    %c0_209 = arith.constant 0 : index
    %363 = vector.load %arg15[%c30_208, %c0_209] : memref<66x224xf32, #tpu.memory_space<vmem>>, vector<1x224xf32>
    tpu.vector_store %arg15[%c30_208, %c0_209], %362 {strides = array<i32>} : memref<66x224xf32, #tpu.memory_space<vmem>>, vector<1x224xf32>,
    %364 = vector.extract_strided_slice %301 {offsets = [0, 15], sizes = [1, 224], strides = [1, 1]} : vector<1x256xf32> to vector<1x224xf32>
    %c31_210 = arith.constant 31 : index
    %c0_211 = arith.constant 0 : index
    %365 = vector.load %arg15[%c31_210, %c0_211] : memref<66x224xf32, #tpu.memory_space<vmem>>, vector<1x224xf32>
    tpu.vector_store %arg15[%c31_210, %c0_211], %364 {strides = array<i32>} : memref<66x224xf32, #tpu.memory_space<vmem>>, vector<1x224xf32>,
    %366 = vector.extract_strided_slice %300 {offsets = [0, 16], sizes = [1, 224], strides = [1, 1]} : vector<1x256xf32> to vector<1x224xf32>
    %c32_212 = arith.constant 32 : index
    %c0_213 = arith.constant 0 : index
    %367 = vector.load %arg15[%c32_212, %c0_213] : memref<66x224xf32, #tpu.memory_space<vmem>>, vector<1x224xf32>
    tpu.vector_store %arg15[%c32_212, %c0_213], %366 {strides = array<i32>} : memref<66x224xf32, #tpu.memory_space<vmem>>, vector<1x224xf32>,
    %368 = vector.extract_strided_slice %301 {offsets = [0, 16], sizes = [1, 224], strides = [1, 1]} : vector<1x256xf32> to vector<1x224xf32>
    %c33_214 = arith.constant 33 : index
    %c0_215 = arith.constant 0 : index
    %369 = vector.load %arg15[%c33_214, %c0_215] : memref<66x224xf32, #tpu.memory_space<vmem>>, vector<1x224xf32>
    tpu.vector_store %arg15[%c33_214, %c0_215], %368 {strides = array<i32>} : memref<66x224xf32, #tpu.memory_space<vmem>>, vector<1x224xf32>,
    %370 = vector.extract_strided_slice %300 {offsets = [0, 17], sizes = [1, 224], strides = [1, 1]} : vector<1x256xf32> to vector<1x224xf32>
    %c34_216 = arith.constant 34 : index
    %c0_217 = arith.constant 0 : index
    %371 = vector.load %arg15[%c34_216, %c0_217] : memref<66x224xf32, #tpu.memory_space<vmem>>, vector<1x224xf32>
    tpu.vector_store %arg15[%c34_216, %c0_217], %370 {strides = array<i32>} : memref<66x224xf32, #tpu.memory_space<vmem>>, vector<1x224xf32>,
    %372 = vector.extract_strided_slice %301 {offsets = [0, 17], sizes = [1, 224], strides = [1, 1]} : vector<1x256xf32> to vector<1x224xf32>
    %c35_218 = arith.constant 35 : index
    %c0_219 = arith.constant 0 : index
    %373 = vector.load %arg15[%c35_218, %c0_219] : memref<66x224xf32, #tpu.memory_space<vmem>>, vector<1x224xf32>
    tpu.vector_store %arg15[%c35_218, %c0_219], %372 {strides = array<i32>} : memref<66x224xf32, #tpu.memory_space<vmem>>, vector<1x224xf32>,
    %374 = vector.extract_strided_slice %300 {offsets = [0, 18], sizes = [1, 224], strides = [1, 1]} : vector<1x256xf32> to vector<1x224xf32>
    %c36_220 = arith.constant 36 : index
    %c0_221 = arith.constant 0 : index
    %375 = vector.load %arg15[%c36_220, %c0_221] : memref<66x224xf32, #tpu.memory_space<vmem>>, vector<1x224xf32>
    tpu.vector_store %arg15[%c36_220, %c0_221], %374 {strides = array<i32>} : memref<66x224xf32, #tpu.memory_space<vmem>>, vector<1x224xf32>,
    %376 = vector.extract_strided_slice %301 {offsets = [0, 18], sizes = [1, 224], strides = [1, 1]} : vector<1x256xf32> to vector<1x224xf32>
    %c37_222 = arith.constant 37 : index
    %c0_223 = arith.constant 0 : index
    %377 = vector.load %arg15[%c37_222, %c0_223] : memref<66x224xf32, #tpu.memory_space<vmem>>, vector<1x224xf32>
    tpu.vector_store %arg15[%c37_222, %c0_223], %376 {strides = array<i32>} : memref<66x224xf32, #tpu.memory_space<vmem>>, vector<1x224xf32>,
    %378 = vector.extract_strided_slice %300 {offsets = [0, 19], sizes = [1, 224], strides = [1, 1]} : vector<1x256xf32> to vector<1x224xf32>
    %c38_224 = arith.constant 38 : index
    %c0_225 = arith.constant 0 : index
    %379 = vector.load %arg15[%c38_224, %c0_225] : memref<66x224xf32, #tpu.memory_space<vmem>>, vector<1x224xf32>
    tpu.vector_store %arg15[%c38_224, %c0_225], %378 {strides = array<i32>} : memref<66x224xf32, #tpu.memory_space<vmem>>, vector<1x224xf32>,
    %380 = vector.extract_strided_slice %301 {offsets = [0, 19], sizes = [1, 224], strides = [1, 1]} : vector<1x256xf32> to vector<1x224xf32>
    %c39_226 = arith.constant 39 : index
    %c0_227 = arith.constant 0 : index
    %381 = vector.load %arg15[%c39_226, %c0_227] : memref<66x224xf32, #tpu.memory_space<vmem>>, vector<1x224xf32>
    tpu.vector_store %arg15[%c39_226, %c0_227], %380 {strides = array<i32>} : memref<66x224xf32, #tpu.memory_space<vmem>>, vector<1x224xf32>,
    %382 = vector.extract_strided_slice %300 {offsets = [0, 20], sizes = [1, 224], strides = [1, 1]} : vector<1x256xf32> to vector<1x224xf32>
    %c40_228 = arith.constant 40 : index
    %c0_229 = arith.constant 0 : index
    %383 = vector.load %arg15[%c40_228, %c0_229] : memref<66x224xf32, #tpu.memory_space<vmem>>, vector<1x224xf32>
    tpu.vector_store %arg15[%c40_228, %c0_229], %382 {strides = array<i32>} : memref<66x224xf32, #tpu.memory_space<vmem>>, vector<1x224xf32>,
    %384 = vector.extract_strided_slice %301 {offsets = [0, 20], sizes = [1, 224], strides = [1, 1]} : vector<1x256xf32> to vector<1x224xf32>
    %c41_230 = arith.constant 41 : index
    %c0_231 = arith.constant 0 : index
    %385 = vector.load %arg15[%c41_230, %c0_231] : memref<66x224xf32, #tpu.memory_space<vmem>>, vector<1x224xf32>
    tpu.vector_store %arg15[%c41_230, %c0_231], %384 {strides = array<i32>} : memref<66x224xf32, #tpu.memory_space<vmem>>, vector<1x224xf32>,
    %386 = vector.extract_strided_slice %300 {offsets = [0, 21], sizes = [1, 224], strides = [1, 1]} : vector<1x256xf32> to vector<1x224xf32>
    %c42_232 = arith.constant 42 : index
    %c0_233 = arith.constant 0 : index
    %387 = vector.load %arg15[%c42_232, %c0_233] : memref<66x224xf32, #tpu.memory_space<vmem>>, vector<1x224xf32>
    tpu.vector_store %arg15[%c42_232, %c0_233], %386 {strides = array<i32>} : memref<66x224xf32, #tpu.memory_space<vmem>>, vector<1x224xf32>,
    %388 = vector.extract_strided_slice %301 {offsets = [0, 21], sizes = [1, 224], strides = [1, 1]} : vector<1x256xf32> to vector<1x224xf32>
    %c43_234 = arith.constant 43 : index
    %c0_235 = arith.constant 0 : index
    %389 = vector.load %arg15[%c43_234, %c0_235] : memref<66x224xf32, #tpu.memory_space<vmem>>, vector<1x224xf32>
    tpu.vector_store %arg15[%c43_234, %c0_235], %388 {strides = array<i32>} : memref<66x224xf32, #tpu.memory_space<vmem>>, vector<1x224xf32>,
    %390 = vector.extract_strided_slice %300 {offsets = [0, 22], sizes = [1, 224], strides = [1, 1]} : vector<1x256xf32> to vector<1x224xf32>
    %c44_236 = arith.constant 44 : index
    %c0_237 = arith.constant 0 : index
    %391 = vector.load %arg15[%c44_236, %c0_237] : memref<66x224xf32, #tpu.memory_space<vmem>>, vector<1x224xf32>
    tpu.vector_store %arg15[%c44_236, %c0_237], %390 {strides = array<i32>} : memref<66x224xf32, #tpu.memory_space<vmem>>, vector<1x224xf32>,
    %392 = vector.extract_strided_slice %301 {offsets = [0, 22], sizes = [1, 224], strides = [1, 1]} : vector<1x256xf32> to vector<1x224xf32>
    %c45_238 = arith.constant 45 : index
    %c0_239 = arith.constant 0 : index
    %393 = vector.load %arg15[%c45_238, %c0_239] : memref<66x224xf32, #tpu.memory_space<vmem>>, vector<1x224xf32>
    tpu.vector_store %arg15[%c45_238, %c0_239], %392 {strides = array<i32>} : memref<66x224xf32, #tpu.memory_space<vmem>>, vector<1x224xf32>,
    %394 = vector.extract_strided_slice %300 {offsets = [0, 23], sizes = [1, 224], strides = [1, 1]} : vector<1x256xf32> to vector<1x224xf32>
    %c46_240 = arith.constant 46 : index
    %c0_241 = arith.constant 0 : index
    %395 = vector.load %arg15[%c46_240, %c0_241] : memref<66x224xf32, #tpu.memory_space<vmem>>, vector<1x224xf32>
    tpu.vector_store %arg15[%c46_240, %c0_241], %394 {strides = array<i32>} : memref<66x224xf32, #tpu.memory_space<vmem>>, vector<1x224xf32>,
    %396 = vector.extract_strided_slice %301 {offsets = [0, 23], sizes = [1, 224], strides = [1, 1]} : vector<1x256xf32> to vector<1x224xf32>
    %c47_242 = arith.constant 47 : index
    %c0_243 = arith.constant 0 : index
    %397 = vector.load %arg15[%c47_242, %c0_243] : memref<66x224xf32, #tpu.memory_space<vmem>>, vector<1x224xf32>
    tpu.vector_store %arg15[%c47_242, %c0_243], %396 {strides = array<i32>} : memref<66x224xf32, #tpu.memory_space<vmem>>, vector<1x224xf32>,
    %398 = vector.extract_strided_slice %300 {offsets = [0, 24], sizes = [1, 224], strides = [1, 1]} : vector<1x256xf32> to vector<1x224xf32>
    %c48_244 = arith.constant 48 : index
    %c0_245 = arith.constant 0 : index
    %399 = vector.load %arg15[%c48_244, %c0_245] : memref<66x224xf32, #tpu.memory_space<vmem>>, vector<1x224xf32>
    tpu.vector_store %arg15[%c48_244, %c0_245], %398 {strides = array<i32>} : memref<66x224xf32, #tpu.memory_space<vmem>>, vector<1x224xf32>,
    %400 = vector.extract_strided_slice %301 {offsets = [0, 24], sizes = [1, 224], strides = [1, 1]} : vector<1x256xf32> to vector<1x224xf32>
    %c49_246 = arith.constant 49 : index
    %c0_247 = arith.constant 0 : index
    %401 = vector.load %arg15[%c49_246, %c0_247] : memref<66x224xf32, #tpu.memory_space<vmem>>, vector<1x224xf32>
    tpu.vector_store %arg15[%c49_246, %c0_247], %400 {strides = array<i32>} : memref<66x224xf32, #tpu.memory_space<vmem>>, vector<1x224xf32>,
    %402 = vector.extract_strided_slice %300 {offsets = [0, 25], sizes = [1, 224], strides = [1, 1]} : vector<1x256xf32> to vector<1x224xf32>
    %c50_248 = arith.constant 50 : index
    %c0_249 = arith.constant 0 : index
    %403 = vector.load %arg15[%c50_248, %c0_249] : memref<66x224xf32, #tpu.memory_space<vmem>>, vector<1x224xf32>
    tpu.vector_store %arg15[%c50_248, %c0_249], %402 {strides = array<i32>} : memref<66x224xf32, #tpu.memory_space<vmem>>, vector<1x224xf32>,
    %404 = vector.extract_strided_slice %301 {offsets = [0, 25], sizes = [1, 224], strides = [1, 1]} : vector<1x256xf32> to vector<1x224xf32>
    %c51_250 = arith.constant 51 : index
    %c0_251 = arith.constant 0 : index
    %405 = vector.load %arg15[%c51_250, %c0_251] : memref<66x224xf32, #tpu.memory_space<vmem>>, vector<1x224xf32>
    tpu.vector_store %arg15[%c51_250, %c0_251], %404 {strides = array<i32>} : memref<66x224xf32, #tpu.memory_space<vmem>>, vector<1x224xf32>,
    %406 = vector.extract_strided_slice %300 {offsets = [0, 26], sizes = [1, 224], strides = [1, 1]} : vector<1x256xf32> to vector<1x224xf32>
    %c52_252 = arith.constant 52 : index
    %c0_253 = arith.constant 0 : index
    %407 = vector.load %arg15[%c52_252, %c0_253] : memref<66x224xf32, #tpu.memory_space<vmem>>, vector<1x224xf32>
    tpu.vector_store %arg15[%c52_252, %c0_253], %406 {strides = array<i32>} : memref<66x224xf32, #tpu.memory_space<vmem>>, vector<1x224xf32>,
    %408 = vector.extract_strided_slice %301 {offsets = [0, 26], sizes = [1, 224], strides = [1, 1]} : vector<1x256xf32> to vector<1x224xf32>
    %c53_254 = arith.constant 53 : index
    %c0_255 = arith.constant 0 : index
    %409 = vector.load %arg15[%c53_254, %c0_255] : memref<66x224xf32, #tpu.memory_space<vmem>>, vector<1x224xf32>
    tpu.vector_store %arg15[%c53_254, %c0_255], %408 {strides = array<i32>} : memref<66x224xf32, #tpu.memory_space<vmem>>, vector<1x224xf32>,
    %410 = vector.extract_strided_slice %300 {offsets = [0, 27], sizes = [1, 224], strides = [1, 1]} : vector<1x256xf32> to vector<1x224xf32>
    %c54_256 = arith.constant 54 : index
    %c0_257 = arith.constant 0 : index
    %411 = vector.load %arg15[%c54_256, %c0_257] : memref<66x224xf32, #tpu.memory_space<vmem>>, vector<1x224xf32>
    tpu.vector_store %arg15[%c54_256, %c0_257], %410 {strides = array<i32>} : memref<66x224xf32, #tpu.memory_space<vmem>>, vector<1x224xf32>,
    %412 = vector.extract_strided_slice %301 {offsets = [0, 27], sizes = [1, 224], strides = [1, 1]} : vector<1x256xf32> to vector<1x224xf32>
    %c55_258 = arith.constant 55 : index
    %c0_259 = arith.constant 0 : index
    %413 = vector.load %arg15[%c55_258, %c0_259] : memref<66x224xf32, #tpu.memory_space<vmem>>, vector<1x224xf32>
    tpu.vector_store %arg15[%c55_258, %c0_259], %412 {strides = array<i32>} : memref<66x224xf32, #tpu.memory_space<vmem>>, vector<1x224xf32>,
    %414 = vector.extract_strided_slice %300 {offsets = [0, 28], sizes = [1, 224], strides = [1, 1]} : vector<1x256xf32> to vector<1x224xf32>
    %c56_260 = arith.constant 56 : index
    %c0_261 = arith.constant 0 : index
    %415 = vector.load %arg15[%c56_260, %c0_261] : memref<66x224xf32, #tpu.memory_space<vmem>>, vector<1x224xf32>
    tpu.vector_store %arg15[%c56_260, %c0_261], %414 {strides = array<i32>} : memref<66x224xf32, #tpu.memory_space<vmem>>, vector<1x224xf32>,
    %416 = vector.extract_strided_slice %301 {offsets = [0, 28], sizes = [1, 224], strides = [1, 1]} : vector<1x256xf32> to vector<1x224xf32>
    %c57_262 = arith.constant 57 : index
    %c0_263 = arith.constant 0 : index
    %417 = vector.load %arg15[%c57_262, %c0_263] : memref<66x224xf32, #tpu.memory_space<vmem>>, vector<1x224xf32>
    tpu.vector_store %arg15[%c57_262, %c0_263], %416 {strides = array<i32>} : memref<66x224xf32, #tpu.memory_space<vmem>>, vector<1x224xf32>,
    %418 = vector.extract_strided_slice %300 {offsets = [0, 29], sizes = [1, 224], strides = [1, 1]} : vector<1x256xf32> to vector<1x224xf32>
    %c58_264 = arith.constant 58 : index
    %c0_265 = arith.constant 0 : index
    %419 = vector.load %arg15[%c58_264, %c0_265] : memref<66x224xf32, #tpu.memory_space<vmem>>, vector<1x224xf32>
    tpu.vector_store %arg15[%c58_264, %c0_265], %418 {strides = array<i32>} : memref<66x224xf32, #tpu.memory_space<vmem>>, vector<1x224xf32>,
    %420 = vector.extract_strided_slice %301 {offsets = [0, 29], sizes = [1, 224], strides = [1, 1]} : vector<1x256xf32> to vector<1x224xf32>
    %c59_266 = arith.constant 59 : index
    %c0_267 = arith.constant 0 : index
    %421 = vector.load %arg15[%c59_266, %c0_267] : memref<66x224xf32, #tpu.memory_space<vmem>>, vector<1x224xf32>
    tpu.vector_store %arg15[%c59_266, %c0_267], %420 {strides = array<i32>} : memref<66x224xf32, #tpu.memory_space<vmem>>, vector<1x224xf32>,
    %422 = vector.extract_strided_slice %300 {offsets = [0, 30], sizes = [1, 224], strides = [1, 1]} : vector<1x256xf32> to vector<1x224xf32>
    %c60_268 = arith.constant 60 : index
    %c0_269 = arith.constant 0 : index
    %423 = vector.load %arg15[%c60_268, %c0_269] : memref<66x224xf32, #tpu.memory_space<vmem>>, vector<1x224xf32>
    tpu.vector_store %arg15[%c60_268, %c0_269], %422 {strides = array<i32>} : memref<66x224xf32, #tpu.memory_space<vmem>>, vector<1x224xf32>,
    %424 = vector.extract_strided_slice %301 {offsets = [0, 30], sizes = [1, 224], strides = [1, 1]} : vector<1x256xf32> to vector<1x224xf32>
    %c61_270 = arith.constant 61 : index
    %c0_271 = arith.constant 0 : index
    %425 = vector.load %arg15[%c61_270, %c0_271] : memref<66x224xf32, #tpu.memory_space<vmem>>, vector<1x224xf32>
    tpu.vector_store %arg15[%c61_270, %c0_271], %424 {strides = array<i32>} : memref<66x224xf32, #tpu.memory_space<vmem>>, vector<1x224xf32>,
    %426 = vector.extract_strided_slice %300 {offsets = [0, 31], sizes = [1, 224], strides = [1, 1]} : vector<1x256xf32> to vector<1x224xf32>
    %c62_272 = arith.constant 62 : index
    %c0_273 = arith.constant 0 : index
    %427 = vector.load %arg15[%c62_272, %c0_273] : memref<66x224xf32, #tpu.memory_space<vmem>>, vector<1x224xf32>
    tpu.vector_store %arg15[%c62_272, %c0_273], %426 {strides = array<i32>} : memref<66x224xf32, #tpu.memory_space<vmem>>, vector<1x224xf32>,
    %428 = vector.extract_strided_slice %301 {offsets = [0, 31], sizes = [1, 224], strides = [1, 1]} : vector<1x256xf32> to vector<1x224xf32>
    %c63_274 = arith.constant 63 : index
    %c0_275 = arith.constant 0 : index
    %429 = vector.load %arg15[%c63_274, %c0_275] : memref<66x224xf32, #tpu.memory_space<vmem>>, vector<1x224xf32>
    tpu.vector_store %arg15[%c63_274, %c0_275], %428 {strides = array<i32>} : memref<66x224xf32, #tpu.memory_space<vmem>>, vector<1x224xf32>,
    %430 = vector.extract_strided_slice %300 {offsets = [0, 32], sizes = [1, 224], strides = [1, 1]} : vector<1x256xf32> to vector<1x224xf32>
    %c64_276 = arith.constant 64 : index
    %c0_277 = arith.constant 0 : index
    %431 = vector.load %arg15[%c64_276, %c0_277] : memref<66x224xf32, #tpu.memory_space<vmem>>, vector<1x224xf32>
    tpu.vector_store %arg15[%c64_276, %c0_277], %430 {strides = array<i32>} : memref<66x224xf32, #tpu.memory_space<vmem>>, vector<1x224xf32>,
    %432 = vector.extract_strided_slice %301 {offsets = [0, 32], sizes = [1, 224], strides = [1, 1]} : vector<1x256xf32> to vector<1x224xf32>
    %c65_278 = arith.constant 65 : index
    %c0_279 = arith.constant 0 : index
    %433 = vector.load %arg15[%c65_278, %c0_279] : memref<66x224xf32, #tpu.memory_space<vmem>>, vector<1x224xf32>
    tpu.vector_store %arg15[%c65_278, %c0_279], %432 {strides = array<i32>} : memref<66x224xf32, #tpu.memory_space<vmem>>, vector<1x224xf32>,
    %c0_280 = arith.constant 0 : index
    %c0_281 = arith.constant 0 : index
    %434 = vector.load %arg15[%c0_280, %c0_281] : memref<66x224xf32, #tpu.memory_space<vmem>>, vector<66x224xf32>
    %cst_282 = arith.constant dense<0.000000e+00> : vector<32x224xf32>
    %435 = tpu.matmul %42, %434, %cst_282 {dimension_numbers = #tpu.dot_dimension_numbers<[1], [0], [0], [1], [0, 0, 1, 1], [], []>} : vector<32x66xf32>, vector<66x224xf32>, vector<32x224xf32> -> vector<32x224xf32>
    %436 = math.absf %435 : vector<32x224xf32>
    %437 = vector.extract_strided_slice %436 {offsets = [0, 0], sizes = [16, 224], strides = [1, 1]} : vector<32x224xf32> to vector<16x224xf32>
    %438 = vector.extract_strided_slice %436 {offsets = [16, 0], sizes = [16, 224], strides = [1, 1]} : vector<32x224xf32> to vector<16x224xf32>
    %439 = arith.maximumf %437, %438 : vector<16x224xf32>
    %cst_283 = arith.constant dense<0.000000e+00> : vector<16xf32>
    %440 = vector.multi_reduction <add>, %439, %cst_283 [1] : vector<16x224xf32> to vector<16xf32>
    %441 = vector.shape_cast %440 : vector<16xf32> to vector<16x1xf32>
    %cst_284 = arith.constant 2.240000e+02 : f32
    %442 = vector.broadcast %cst_284 : f32 to vector<16x1xf32>
    %443 = arith.divf %441, %442 : vector<16x1xf32>
    %444 = vector.broadcast %443 : vector<16x1xf32> to vector<16x224xf32>
    %445 = arith.subf %439, %444 : vector<16x224xf32>
    %446 = arith.mulf %445, %445 : vector<16x224xf32>
    %cst_285 = arith.constant dense<0.000000e+00> : vector<16xf32>
    %447 = vector.multi_reduction <add>, %446, %cst_285 [1] : vector<16x224xf32> to vector<16xf32>
    %448 = vector.shape_cast %447 : vector<16xf32> to vector<16x1xf32>
    %cst_286 = arith.constant 2.230000e+02 : f32
    %449 = vector.broadcast %cst_286 : f32 to vector<16x1xf32>
    %450 = arith.divf %448, %449 : vector<16x1xf32>
    %451 = math.sqrt %450 : vector<16x1xf32>
    %cst_287 = arith.constant 9.99999997E-7 : f32
    %452 = vector.broadcast %cst_287 : f32 to vector<16x1xf32>
    %453 = arith.addf %451, %452 : vector<16x1xf32>
    %454 = tpu.reciprocal %453 {approx = true} : vector<16x1xf32> -> vector<16x1xf32>
    %455 = vector.broadcast %454 : vector<16x1xf32> to vector<16x224xf32>
    %456 = arith.mulf %445, %455 : vector<16x224xf32>
    %457 = arith.mulf %45, %456 : vector<16x224xf32>
    %458 = arith.addf %457, %46 : vector<16x224xf32>
    %cst_288 = arith.constant 0.000000e+00 : f32
    %459 = vector.broadcast %cst_288 : f32 to vector<16x224xf32>
    %460 = arith.cmpf oge, %458, %459 : vector<16x224xf32>
    %cst_289 = arith.constant 2.000000e-01 : f32
    %461 = vector.broadcast %cst_289 : f32 to vector<16x224xf32>
    %462 = arith.mulf %461, %458 : vector<16x224xf32>
    %463 = arith.select %460, %458, %462 : vector<16x224xi1>, vector<16x224xf32>
    %464 = vector.extract_strided_slice %463 {offsets = [0, 0], sizes = [16, 220], strides = [1, 1]} : vector<16x224xf32> to vector<16x220xf32>
    %c0_290 = arith.constant 0 : index
    %c0_291 = arith.constant 0 : index
    %465 = vector.load %arg16[%c0_290, %c0_291] : memref<80x220xf32, #tpu.memory_space<vmem>>, vector<16x220xf32>
    tpu.vector_store %arg16[%c0_290, %c0_291], %464 {strides = array<i32>} : memref<80x220xf32, #tpu.memory_space<vmem>>, vector<16x220xf32>,
    %466 = vector.extract_strided_slice %463 {offsets = [0, 1], sizes = [16, 220], strides = [1, 1]} : vector<16x224xf32> to vector<16x220xf32>
    %c16_292 = arith.constant 16 : index
    %c0_293 = arith.constant 0 : index
    %467 = vector.load %arg16[%c16_292, %c0_293] : memref<80x220xf32, #tpu.memory_space<vmem>>, vector<16x220xf32>
    tpu.vector_store %arg16[%c16_292, %c0_293], %466 {strides = array<i32>} : memref<80x220xf32, #tpu.memory_space<vmem>>, vector<16x220xf32>,
    %468 = vector.extract_strided_slice %463 {offsets = [0, 2], sizes = [16, 220], strides = [1, 1]} : vector<16x224xf32> to vector<16x220xf32>
    %c32_294 = arith.constant 32 : index
    %c0_295 = arith.constant 0 : index
    %469 = vector.load %arg16[%c32_294, %c0_295] : memref<80x220xf32, #tpu.memory_space<vmem>>, vector<16x220xf32>
    tpu.vector_store %arg16[%c32_294, %c0_295], %468 {strides = array<i32>} : memref<80x220xf32, #tpu.memory_space<vmem>>, vector<16x220xf32>,
    %470 = vector.extract_strided_slice %463 {offsets = [0, 3], sizes = [16, 220], strides = [1, 1]} : vector<16x224xf32> to vector<16x220xf32>
    %c48_296 = arith.constant 48 : index
    %c0_297 = arith.constant 0 : index
    %471 = vector.load %arg16[%c48_296, %c0_297] : memref<80x220xf32, #tpu.memory_space<vmem>>, vector<16x220xf32>
    tpu.vector_store %arg16[%c48_296, %c0_297], %470 {strides = array<i32>} : memref<80x220xf32, #tpu.memory_space<vmem>>, vector<16x220xf32>,
    %472 = vector.extract_strided_slice %463 {offsets = [0, 4], sizes = [16, 220], strides = [1, 1]} : vector<16x224xf32> to vector<16x220xf32>
    %c64_298 = arith.constant 64 : index
    %c0_299 = arith.constant 0 : index
    %473 = vector.load %arg16[%c64_298, %c0_299] : memref<80x220xf32, #tpu.memory_space<vmem>>, vector<16x220xf32>
    tpu.vector_store %arg16[%c64_298, %c0_299], %472 {strides = array<i32>} : memref<80x220xf32, #tpu.memory_space<vmem>>, vector<16x220xf32>,
    %c0_300 = arith.constant 0 : index
    %c0_301 = arith.constant 0 : index
    %474 = vector.load %arg16[%c0_300, %c0_301] : memref<80x220xf32, #tpu.memory_space<vmem>>, vector<80x220xf32>
    %cst_302 = arith.constant dense<0.000000e+00> : vector<16x220xf32>
    %475 = tpu.matmul %43, %474, %cst_302 {dimension_numbers = #tpu.dot_dimension_numbers<[1], [0], [0], [1], [0, 0, 1, 1], [], []>} : vector<16x80xf32>, vector<80x220xf32>, vector<16x220xf32> -> vector<16x220xf32>
    %cst_303 = arith.constant dense<0.000000e+00> : vector<16x110xf32>
    %476 = tpu.matmul %475, %55, %cst_303 {dimension_numbers = #tpu.dot_dimension_numbers<[1], [0], [0], [1], [0, 0, 1, 1], [], []>} : vector<16x220xf32>, vector<220x110xf32>, vector<16x110xf32> -> vector<16x110xf32>
    %cst_304 = arith.constant dense<0.000000e+00> : vector<16x110xf32>
    %477 = tpu.matmul %475, %62, %cst_304 {dimension_numbers = #tpu.dot_dimension_numbers<[1], [0], [0], [1], [0, 0, 1, 1], [], []>} : vector<16x220xf32>, vector<220x110xf32>, vector<16x110xf32> -> vector<16x110xf32>
    %478 = arith.maximumf %476, %477 : vector<16x110xf32>
    %479 = vector.broadcast %44 : vector<16x1xf32> to vector<16x110xf32>
    %480 = arith.addf %478, %479 : vector<16x110xf32>
    %cst_305 = arith.constant dense<0.000000e+00> : vector<16xf32>
    %481 = vector.multi_reduction <add>, %480, %cst_305 [1] : vector<16x110xf32> to vector<16xf32>
    %482 = vector.shape_cast %481 : vector<16xf32> to vector<16x1xf32>
    %cst_306 = arith.constant 1.100000e+02 : f32
    %483 = vector.broadcast %cst_306 : f32 to vector<16x1xf32>
    %484 = arith.divf %482, %483 : vector<16x1xf32>
    %485 = vector.broadcast %484 : vector<16x1xf32> to vector<16x110xf32>
    %486 = arith.subf %480, %485 : vector<16x110xf32>
    %487 = arith.mulf %486, %486 : vector<16x110xf32>
    %cst_307 = arith.constant dense<0.000000e+00> : vector<16xf32>
    %488 = vector.multi_reduction <add>, %487, %cst_307 [1] : vector<16x110xf32> to vector<16xf32>
    %489 = vector.shape_cast %488 : vector<16xf32> to vector<16x1xf32>
    %cst_308 = arith.constant 1.090000e+02 : f32
    %490 = vector.broadcast %cst_308 : f32 to vector<16x1xf32>
    %491 = arith.divf %489, %490 : vector<16x1xf32>
    %492 = math.sqrt %491 : vector<16x1xf32>
    %cst_309 = arith.constant 9.99999997E-7 : f32
    %493 = vector.broadcast %cst_309 : f32 to vector<16x1xf32>
    %494 = arith.addf %492, %493 : vector<16x1xf32>
    %495 = tpu.reciprocal %494 {approx = true} : vector<16x1xf32> -> vector<16x1xf32>
    %496 = vector.broadcast %495 : vector<16x1xf32> to vector<16x110xf32>
    %497 = arith.mulf %486, %496 : vector<16x110xf32>
    %498 = arith.mulf %47, %497 : vector<16x110xf32>
    %499 = arith.addf %498, %48 : vector<16x110xf32>
    %cst_310 = arith.constant 0.000000e+00 : f32
    %500 = vector.broadcast %cst_310 : f32 to vector<16x110xf32>
    %501 = arith.cmpf oge, %499, %500 : vector<16x110xf32>
    %cst_311 = arith.constant 2.000000e-01 : f32
    %502 = vector.broadcast %cst_311 : f32 to vector<16x110xf32>
    %503 = arith.mulf %502, %499 : vector<16x110xf32>
    %504 = arith.select %501, %499, %503 : vector<16x110xi1>, vector<16x110xf32>
    %505 = vector.extract_strided_slice %504 {offsets = [0, 0], sizes = [1, 110], strides = [1, 1]} : vector<16x110xf32> to vector<1x110xf32>
    %c1_312 = arith.constant 1 : index
    %c0_313 = arith.constant 0 : index
    %506 = vector.load %arg14[%c1_312, %c0_313] : memref<2x1760xf32, #tpu.memory_space<vmem>>, vector<1x110xf32>
    tpu.vector_store %arg14[%c1_312, %c0_313], %505 {strides = array<i32>} : memref<2x1760xf32, #tpu.memory_space<vmem>>, vector<1x110xf32>,
    %507 = vector.extract_strided_slice %504 {offsets = [1, 0], sizes = [1, 110], strides = [1, 1]} : vector<16x110xf32> to vector<1x110xf32>
    %c1_314 = arith.constant 1 : index
    %c110_315 = arith.constant 110 : index
    %508 = vector.load %arg14[%c1_314, %c110_315] : memref<2x1760xf32, #tpu.memory_space<vmem>>, vector<1x110xf32>
    tpu.vector_store %arg14[%c1_314, %c110_315], %507 {strides = array<i32>} : memref<2x1760xf32, #tpu.memory_space<vmem>>, vector<1x110xf32>,
    %509 = vector.extract_strided_slice %504 {offsets = [2, 0], sizes = [1, 110], strides = [1, 1]} : vector<16x110xf32> to vector<1x110xf32>
    %c1_316 = arith.constant 1 : index
    %c220_317 = arith.constant 220 : index
    %510 = vector.load %arg14[%c1_316, %c220_317] : memref<2x1760xf32, #tpu.memory_space<vmem>>, vector<1x110xf32>
    tpu.vector_store %arg14[%c1_316, %c220_317], %509 {strides = array<i32>} : memref<2x1760xf32, #tpu.memory_space<vmem>>, vector<1x110xf32>,
    %511 = vector.extract_strided_slice %504 {offsets = [3, 0], sizes = [1, 110], strides = [1, 1]} : vector<16x110xf32> to vector<1x110xf32>
    %c1_318 = arith.constant 1 : index
    %c330_319 = arith.constant 330 : index
    %512 = vector.load %arg14[%c1_318, %c330_319] : memref<2x1760xf32, #tpu.memory_space<vmem>>, vector<1x110xf32>
    tpu.vector_store %arg14[%c1_318, %c330_319], %511 {strides = array<i32>} : memref<2x1760xf32, #tpu.memory_space<vmem>>, vector<1x110xf32>,
    %513 = vector.extract_strided_slice %504 {offsets = [4, 0], sizes = [1, 110], strides = [1, 1]} : vector<16x110xf32> to vector<1x110xf32>
    %c1_320 = arith.constant 1 : index
    %c440_321 = arith.constant 440 : index
    %514 = vector.load %arg14[%c1_320, %c440_321] : memref<2x1760xf32, #tpu.memory_space<vmem>>, vector<1x110xf32>
    tpu.vector_store %arg14[%c1_320, %c440_321], %513 {strides = array<i32>} : memref<2x1760xf32, #tpu.memory_space<vmem>>, vector<1x110xf32>,
    %515 = vector.extract_strided_slice %504 {offsets = [5, 0], sizes = [1, 110], strides = [1, 1]} : vector<16x110xf32> to vector<1x110xf32>
    %c1_322 = arith.constant 1 : index
    %c550_323 = arith.constant 550 : index
    %516 = vector.load %arg14[%c1_322, %c550_323] : memref<2x1760xf32, #tpu.memory_space<vmem>>, vector<1x110xf32>
    tpu.vector_store %arg14[%c1_322, %c550_323], %515 {strides = array<i32>} : memref<2x1760xf32, #tpu.memory_space<vmem>>, vector<1x110xf32>,
    %517 = vector.extract_strided_slice %504 {offsets = [6, 0], sizes = [1, 110], strides = [1, 1]} : vector<16x110xf32> to vector<1x110xf32>
    %c1_324 = arith.constant 1 : index
    %c660_325 = arith.constant 660 : index
    %518 = vector.load %arg14[%c1_324, %c660_325] : memref<2x1760xf32, #tpu.memory_space<vmem>>, vector<1x110xf32>
    tpu.vector_store %arg14[%c1_324, %c660_325], %517 {strides = array<i32>} : memref<2x1760xf32, #tpu.memory_space<vmem>>, vector<1x110xf32>,
    %519 = vector.extract_strided_slice %504 {offsets = [7, 0], sizes = [1, 110], strides = [1, 1]} : vector<16x110xf32> to vector<1x110xf32>
    %c1_326 = arith.constant 1 : index
    %c770_327 = arith.constant 770 : index
    %520 = vector.load %arg14[%c1_326, %c770_327] : memref<2x1760xf32, #tpu.memory_space<vmem>>, vector<1x110xf32>
    tpu.vector_store %arg14[%c1_326, %c770_327], %519 {strides = array<i32>} : memref<2x1760xf32, #tpu.memory_space<vmem>>, vector<1x110xf32>,
    %521 = vector.extract_strided_slice %504 {offsets = [8, 0], sizes = [1, 110], strides = [1, 1]} : vector<16x110xf32> to vector<1x110xf32>
    %c1_328 = arith.constant 1 : index
    %c880_329 = arith.constant 880 : index
    %522 = vector.load %arg14[%c1_328, %c880_329] : memref<2x1760xf32, #tpu.memory_space<vmem>>, vector<1x110xf32>
    tpu.vector_store %arg14[%c1_328, %c880_329], %521 {strides = array<i32>} : memref<2x1760xf32, #tpu.memory_space<vmem>>, vector<1x110xf32>,
    %523 = vector.extract_strided_slice %504 {offsets = [9, 0], sizes = [1, 110], strides = [1, 1]} : vector<16x110xf32> to vector<1x110xf32>
    %c1_330 = arith.constant 1 : index
    %c990_331 = arith.constant 990 : index
    %524 = vector.load %arg14[%c1_330, %c990_331] : memref<2x1760xf32, #tpu.memory_space<vmem>>, vector<1x110xf32>
    tpu.vector_store %arg14[%c1_330, %c990_331], %523 {strides = array<i32>} : memref<2x1760xf32, #tpu.memory_space<vmem>>, vector<1x110xf32>,
    %525 = vector.extract_strided_slice %504 {offsets = [10, 0], sizes = [1, 110], strides = [1, 1]} : vector<16x110xf32> to vector<1x110xf32>
    %c1_332 = arith.constant 1 : index
    %c1100_333 = arith.constant 1100 : index
    %526 = vector.load %arg14[%c1_332, %c1100_333] : memref<2x1760xf32, #tpu.memory_space<vmem>>, vector<1x110xf32>
    tpu.vector_store %arg14[%c1_332, %c1100_333], %525 {strides = array<i32>} : memref<2x1760xf32, #tpu.memory_space<vmem>>, vector<1x110xf32>,
    %527 = vector.extract_strided_slice %504 {offsets = [11, 0], sizes = [1, 110], strides = [1, 1]} : vector<16x110xf32> to vector<1x110xf32>
    %c1_334 = arith.constant 1 : index
    %c1210_335 = arith.constant 1210 : index
    %528 = vector.load %arg14[%c1_334, %c1210_335] : memref<2x1760xf32, #tpu.memory_space<vmem>>, vector<1x110xf32>
    tpu.vector_store %arg14[%c1_334, %c1210_335], %527 {strides = array<i32>} : memref<2x1760xf32, #tpu.memory_space<vmem>>, vector<1x110xf32>,
    %529 = vector.extract_strided_slice %504 {offsets = [12, 0], sizes = [1, 110], strides = [1, 1]} : vector<16x110xf32> to vector<1x110xf32>
    %c1_336 = arith.constant 1 : index
    %c1320_337 = arith.constant 1320 : index
    %530 = vector.load %arg14[%c1_336, %c1320_337] : memref<2x1760xf32, #tpu.memory_space<vmem>>, vector<1x110xf32>
    tpu.vector_store %arg14[%c1_336, %c1320_337], %529 {strides = array<i32>} : memref<2x1760xf32, #tpu.memory_space<vmem>>, vector<1x110xf32>,
    %531 = vector.extract_strided_slice %504 {offsets = [13, 0], sizes = [1, 110], strides = [1, 1]} : vector<16x110xf32> to vector<1x110xf32>
    %c1_338 = arith.constant 1 : index
    %c1430_339 = arith.constant 1430 : index
    %532 = vector.load %arg14[%c1_338, %c1430_339] : memref<2x1760xf32, #tpu.memory_space<vmem>>, vector<1x110xf32>
    tpu.vector_store %arg14[%c1_338, %c1430_339], %531 {strides = array<i32>} : memref<2x1760xf32, #tpu.memory_space<vmem>>, vector<1x110xf32>,
    %533 = vector.extract_strided_slice %504 {offsets = [14, 0], sizes = [1, 110], strides = [1, 1]} : vector<16x110xf32> to vector<1x110xf32>
    %c1_340 = arith.constant 1 : index
    %c1540_341 = arith.constant 1540 : index
    %534 = vector.load %arg14[%c1_340, %c1540_341] : memref<2x1760xf32, #tpu.memory_space<vmem>>, vector<1x110xf32>
    tpu.vector_store %arg14[%c1_340, %c1540_341], %533 {strides = array<i32>} : memref<2x1760xf32, #tpu.memory_space<vmem>>, vector<1x110xf32>,
    %535 = vector.extract_strided_slice %504 {offsets = [15, 0], sizes = [1, 110], strides = [1, 1]} : vector<16x110xf32> to vector<1x110xf32>
    %c1_342 = arith.constant 1 : index
    %c1650_343 = arith.constant 1650 : index
    %536 = vector.load %arg14[%c1_342, %c1650_343] : memref<2x1760xf32, #tpu.memory_space<vmem>>, vector<1x110xf32>
    tpu.vector_store %arg14[%c1_342, %c1650_343], %535 {strides = array<i32>} : memref<2x1760xf32, #tpu.memory_space<vmem>>, vector<1x110xf32>,
    return
  }
  func.func @transform_0(%arg0: i32) -> (i32, i32) {
    %c0_i32 = arith.constant 0 : i32
    %c0_i32_0 = arith.constant 0 : i32
    %c0_i32_1 = arith.constant 0 : i32
    return %c0_i32, %c0_i32_0 : i32, i32
  }
  func.func @transform_1(%arg0: i32) -> (i32, i32) {
    %c0_i32 = arith.constant 0 : i32
    %c0_i32_0 = arith.constant 0 : i32
    %c0_i32_1 = arith.constant 0 : i32
    return %c0_i32, %c0_i32_0 : i32, i32
  }
  func.func @transform_2(%arg0: i32) -> (i32, i32) {
    %c0_i32 = arith.constant 0 : i32
    %c0_i32_0 = arith.constant 0 : i32
    %c0_i32_1 = arith.constant 0 : i32
    return %c0_i32, %c0_i32_0 : i32, i32
  }
  func.func @transform_3(%arg0: i32) -> (i32, i32) {
    %c0_i32 = arith.constant 0 : i32
    %c0_i32_0 = arith.constant 0 : i32
    %c0_i32_1 = arith.constant 0 : i32
    return %c0_i32, %c0_i32_0 : i32, i32
  }
  func.func @transform_4(%arg0: i32) -> (i32, i32) {
    %c0_i32 = arith.constant 0 : i32
    %c0_i32_0 = arith.constant 0 : i32
    %c0_i32_1 = arith.constant 0 : i32
    return %c0_i32, %c0_i32_0 : i32, i32
  }
  func.func @transform_5(%arg0: i32) -> (i32, i32) {
    %c0_i32 = arith.constant 0 : i32
    %c0_i32_0 = arith.constant 0 : i32
    %c0_i32_1 = arith.constant 0 : i32
    return %c0_i32, %c0_i32_0 : i32, i32
  }
  func.func @transform_6(%arg0: i32) -> (i32, i32) {
    %c0_i32 = arith.constant 0 : i32
    %c0_i32_0 = arith.constant 0 : i32
    %c0_i32_1 = arith.constant 0 : i32
    return %c0_i32, %c0_i32_0 : i32, i32
  }
  func.func @transform_7(%arg0: i32) -> (i32, i32) {
    %c0_i32 = arith.constant 0 : i32
    %c0_i32_0 = arith.constant 0 : i32
    %c0_i32_1 = arith.constant 0 : i32
    return %c0_i32, %c0_i32_0 : i32, i32
  }
  func.func @transform_8(%arg0: i32) -> (i32, i32) {
    %c0_i32 = arith.constant 0 : i32
    %c0_i32_0 = arith.constant 0 : i32
    %c0_i32_1 = arith.constant 0 : i32
    return %c0_i32, %c0_i32_0 : i32, i32
  }
  func.func @transform_9(%arg0: i32) -> (i32, i32) {
    %c0_i32 = arith.constant 0 : i32
    %c0_i32_0 = arith.constant 0 : i32
    %c0_i32_1 = arith.constant 0 : i32
    return %c0_i32, %c0_i32_0 : i32, i32
  }
  func.func @transform_10(%arg0: i32) -> (i32, i32) {
    %c0_i32 = arith.constant 0 : i32
    %c0_i32_0 = arith.constant 0 : i32
    %c0_i32_1 = arith.constant 0 : i32
    return %c0_i32, %c0_i32_0 : i32, i32
  }
  func.func @transform_11(%arg0: i32) -> (i32, i32) {
    %c0_i32 = arith.constant 0 : i32
    %c0_i32_0 = arith.constant 0 : i32
    %c0_i32_1 = arith.constant 0 : i32
    return %c0_i32, %c0_i32_0 : i32, i32
  }
  func.func @transform_12(%arg0: i32) -> (i32, i32) {
    %c0_i32 = arith.constant 0 : i32
    %c0_i32_0 = arith.constant 0 : i32
    %c0_i32_1 = arith.constant 0 : i32
    return %c0_i32, %c0_i32_0 : i32, i32
  }
  func.func @transform_13(%arg0: i32) -> (i32, i32) {
    %c0_i32 = arith.constant 0 : i32
    %c0_i32_0 = arith.constant 0 : i32
    %c0_i32_1 = arith.constant 0 : i32
    return %c0_i32, %c0_i32_0 : i32, i32
  }
}

</mosaic_0001>

<bundles_post_ra>
// kernel: sincnet_forward.1
= control target key start
LH: loop header
LB: loop body
LE: loop exit
PB: predicated region body
PF: predicated region fallthrough
CT: control target
= control target key end

     0   :  { %s5563_s0 = inlined_call_operand.vmem [shape: f32[2,256], index: 0, kind: input, shape index: {}]   ;;  %s5564_s1 = inlined_call_operand.vmem [shape: f32[2,256], index: 1, kind: input, shape index: {}]   ;;  %s5565_s2 = inlined_call_operand.vmem [shape: f32[1,256], index: 2, kind: input, shape index: {}]   ;;  %s5566_s3 = inlined_call_operand.vmem [shape: f32[1,256], index: 3, kind: input, shape index: {}]   ;;  %s5567_s4 = inlined_call_operand.vmem [shape: f32[1,256], index: 4, kind: input, shape index: {}]   ;;  %s5568_s5 = inlined_call_operand.vmem [shape: f32[1,256], index: 5, kind: input, shape index: {}]   ;;  %s5569_s6 = inlined_call_operand.vmem [shape: f32[32,66], index: 6, kind: input, shape index: {}]   ;;  %s5570_s7 = inlined_call_operand.vmem [shape: f32[16,224], index: 7, kind: input, shape index: {}]   ;;  %s5571_s8 = inlined_call_operand.vmem [shape: f32[16,224], index: 8, kind: input, shape index: {}]   ;;  %s5572_s9 = inlined_call_operand.vmem [shape: f32[16,80], index: 9, kind: input, shape index: {}]   ;;  %s5573_s10 = inlined_call_operand.vmem [shape: f32[16,1], index: 10, kind: input, shape index: {}]   ;;  %s5574_s11 = inlined_call_operand.vmem [shape: f32[16,110], index: 11, kind: input, shape index: {}]   ;;  %s5575_s12 = inlined_call_operand.vmem [shape: f32[16,110], index: 12, kind: input, shape index: {}]   ;;  %s5576_s13 = inlined_call_operand.hbm [shape: f32[2,1760], index: 13, kind: output, shape index: {}]  }
   0x1   :  { %v45_v0 = vld [vmem:[%s5563_s0] sm:$0xf] }
   0x2   :  { %48 = vst [vmem:[#allocation1] ss:$4 sm:$0xff] %v45_v0 }
   0x3   :  { %18 = vsyncpa [#allocation5], 0  ;;  %v46_v1 = vld [vmem:[%s5564_s1] sm:$0xf]  ;;  %vm5626_vm0 = vcmask 1041408   ;;  %v3437_v12 = vmov 512.0  }
   0x4   :  { %3345 = vrcp.f32 %v3437_v12  ;;  %v3438_v19 = vmov 269488144   ;;  %v3439_v41 = vmov 511.0   ;;  %vm410_vm5 = vcmask 1040384   ;;  %s5593_s16 = smov 96   ;;  %s5635_s17 = smov 108  }
   0x5   :  { %v81_v20 = vunpack.c.l.s4 %v3438_v19  ;;  %3347 = vrcp.f32 %v3439_v41  ;;  %s5617_s18 = smov 104   ;;  %s5600_s19 = smov 99   ;;  %vm5642_vm7 = vcmask 785408   ;;  %vm5643_vm8 = vcmask 809984  }
   0x6   :  { %s5629_s20 = smov 105   ;;  %s5605_s21 = smov 101   ;;  %vm5627_vm9 = vcmask 801792   ;;  %vm5652_vm10 = vcmask 842752   ;;  %vm5650_vm11 = vcmask 818176   ;;  %vm5628_vm12 = vcmask 793600  }
   0x7   :  { %v82_v23 = vunpack.c.0.s8 %v81_v20  ;;  %s5598_s22 = smov 98   ;;  %s5639_s23 = smov 110   ;;  %vm5615_vm13 = vcmask 883712   ;;  %vm821_vm14 = vcmask 850944   ;;  %vm5669_vm15 = vcmask 834560  }
   0x8   :  { %s5631_s24 = smov 106   ;;  %s5595_s25 = smov 97  }
   0x9   :  { %v49_v2 = vld.sshfl [vmem:[#allocation1] sm:$0xff pattern:$0x73625140]  ;;  %v50_v3 = vld.sshfl [vmem:[#allocation1 + $0x8] sm:$0xff pattern:$0x73625140] }
   0xa   :  { %v54_v4 = vsel %vm5626_vm0, %v49_v2, 0.0  ;;  %v55_v5 = vsel %vm5626_vm0, %v50_v3, 0.0  ;;  %60 = vst [vmem:[#allocation1] ss:$4 sm:$0xff] %v46_v1  ;;  %v3346_v13 = vpop.eup %3345  ;;  %v134_v2 = vld [vmem:[%s5565_s2] sm:$0x3] }
   0xb   :  { %v56_v6 = vadd.f32 %v55_v5, %v54_v4  ;;  %v72_v14 = vmul.f32 512.0, %v3346_v13  ;;  %vm76_vm1 = vweird.f32 %v3346_v13  ;;  %v3348_v42 = vpop.eup %3347  ;;  %v155_v3 = vld [vmem:[%s5567_s4] sm:$0x3]  ;;  %v143_v4 = vperm.slane %v134_v2, 0  ;;  %s3452_s26 = smov 115   ;;  %s5579_s27 = smov 111  }
   0xc   :  { %v113_v43 = vmul.f32 511.0, %v3348_v42  ;;  %vm117_vm2 = vweird.f32 %v3348_v42  ;;  %v144_v5 = vperm.slane %v134_v2, 1  ;;  %s5607_s28 = smov 102   ;;  %s3455_s0 = smov 120  }
   0xd   :  { %57 = vadd.xlane.f32.xlu0 %v56_v6  ;;  %v73_v15 = vsub.f32 1.0, %v72_v14  ;;  %v158_v6 = vperm.slane %v155_v3, 1  ;;  %v206_v14 = vlaneseq  ;;  %s5577_s1 = smov 116   ;;  %s5633_s29 = smov 107  }
   0xe   :  { %v114_v44 = vsub.f32 1.0, %v113_v43  ;;  %s5583_s30 = smov 117   ;;  %s5581_s14 = smov 113  }
   0xf   :  { %v74_v17 = vmul.f32 %v3346_v13, %v73_v15  ;;  %vm3594_vm6 = vcmp.lt.s32.totalorder %v206_v14, 224  ;;  %s5644_s15 = smov 112   ;;  %s5587_s2 = smov 122  }
  0x10   :  { %v115_v46 = vmul.f32 %v3348_v42, %v114_v44  ;;  %s5585_s4 = smov 118  }
  0x11   :  { %v62_v7 = vld.sshfl [vmem:[#allocation1 + $0x8] sm:$0xff pattern:$0x73625140]  ;;  %v61_v8 = vld.sshfl [vmem:[#allocation1] sm:$0xff pattern:$0x73625140]  ;;  %v75_v18 = vadd.f32 %v3346_v13, %v74_v17 }
  0x12   :  { %v65_v9 = vsel %vm5626_vm0, %v61_v8, 0.0  ;;  %v66_v10 = vsel %vm5626_vm0, %v62_v7, 0.0  ;;  %v116_v47 = vadd.f32 %v3348_v42, %v115_v46 }
  0x13   :  { %v67_v11 = vadd.f32 %v66_v10, %v65_v9  ;;  %v77_v21 = vsel %vm76_vm1, %v3346_v13, %v75_v18  ;;  %v157_v10 = vperm.slane %v155_v3, 0  ;;  %v163_v13 = vld [vmem:[%s5566_s3] sm:$0x3]  ;;  %s5612_s3 = smov 103   ;;  %vm5597_vm1 = vcmask 859136  }
  0x14   :  { %v118_v48 = vsel %vm117_vm2, %v3348_v42, %v116_v47  ;;  %v166_v19 = vperm.slane %v163_v13, 0  ;;  %v167_v20 = vperm.slane %v163_v13, 1  ;;  %vm5614_vm2 = vcmask 826368  }
  0x15   :  { %68 = vadd.xlane.f32.xlu0 %v67_v11 }
  0x80   :  { %v58_v16 = vpop.xlane.xlu0 %57 }
  0x88   :  { %v69_v22 = vpop.xlane.xlu0 %68 }
  0x89   :  { %v70_v24 = vadd.f32 %v69_v22, %v58_v16  ;;  %v178_v16 = vld [vmem:[%s5568_s5] sm:$0x3]  ;;  %s5591_s5 = smov 100  }
  0x8b   :  { %v78_v25 = vmul.f32 %v77_v21, %v70_v24  ;;  %v3393_v21 = vld [vmem:[%s5569_s6] sm:$0xff] }
  0x8d   :  { %v83_v26 = vperm.slane %v78_v25, %v82_v23 }
  0x8f   :  { %v85_v27 = vsub.f32 %v45_v0, %v83_v26  ;;  %v86_v29 = vsub.f32 %v46_v1, %v83_v26 }
  0x91   :  { %v87_v28 = vmul.f32 %v85_v27, %v85_v27  ;;  %v99_v30 = vmul.f32 %v86_v29, %v86_v29 }
  0x93   :  { %89 = vst [vmem:[#allocation1] ss:$4 sm:$0xff] %v87_v28  ;;  %v180_v28 = vperm.slane %v178_v16, 0 }
  0x9a   :  { %v91_v31 = vld.sshfl [vmem:[#allocation1 + $0x8] sm:$0xff pattern:$0x73625140]  ;;  %v90_v32 = vld.sshfl [vmem:[#allocation1] sm:$0xff pattern:$0x73625140] }
  0x9b   :  { %v94_v33 = vsel %vm5626_vm0, %v90_v32, 0.0  ;;  %v95_v34 = vsel %vm5626_vm0, %v91_v31, 0.0  ;;  %101 = vst [vmem:[#allocation1] ss:$4 sm:$0xff] %v99_v30 }
  0x9c   :  { %v96_v35 = vadd.f32 %v95_v34, %v94_v33 }
  0x9e   :  { %97 = vadd.xlane.f32.xlu1 %v96_v35 }
  0xa2   :  { %v103_v36 = vld.sshfl [vmem:[#allocation1 + $0x8] sm:$0xff pattern:$0x73625140]  ;;  %v102_v37 = vld.sshfl [vmem:[#allocation1] sm:$0xff pattern:$0x73625140] }
  0xa3   :  { %v106_v38 = vsel %vm5626_vm0, %v102_v37, 0.0  ;;  %v107_v39 = vsel %vm5626_vm0, %v103_v36, 0.0 }
  0xa4   :  { %v108_v40 = vadd.f32 %v107_v39, %v106_v38 }
  0xa6   :  { %109 = vadd.xlane.f32.xlu1 %v108_v40 }
 0x111   :  { %v98_v45 = vpop.xlane.xlu1 %97 }
 0x119   :  { %v110_v49 = vpop.xlane.xlu1 %109 }
 0x11a   :  { %v111_v50 = vadd.f32 %v110_v49, %v98_v45 }
 0x11c   :  { %v119_v51 = vmul.f32 %v118_v48, %v111_v50 }
 0x11e   :  { %3349 = vrsqrt.f32 %v119_v51  ;;  %vm127_vm3 = vcmp.eq.f32.partialorder %v119_v51, inf  ;;  %v130_v59 = vand.u32 2147483648, %v119_v51  ;;  %vm129_vm4 = vcmp.eq.f32.partialorder %v119_v51, 0.0 }
 0x124   :  { %v3350_v52 = vpop.eup %3349 }
 0x125   :  { %v121_v53 = vmul.f32 %v3350_v52, %v119_v51 }
 0x127   :  { %v122_v54 = vmul.f32 %v3350_v52, %v121_v53 }
 0x129   :  { %v123_v55 = vmul.f32 0.5, %v122_v54 }
 0x12b   :  { %v124_v56 = vsub.f32 1.5, %v123_v55 }
 0x12d   :  { %v125_v57 = vmul.f32 %v3350_v52, %v124_v56 }
 0x12f   :  { %v126_v58 = vmul.f32 %v125_v57, %v119_v51 }
 0x131   :  { %v128_v60 = vsel %vm127_vm3, %v119_v51, %v126_v58  ;;  %vm770_vm3 = vcmask 875520  }
 0x132   :  { %v131_v61 = vsel %vm129_vm4, %v130_v59, %v128_v60  ;;  %vm5602_vm4 = vcmask 900096  }
 0x133   :  { %v132_v62 = vadd.f32 1e-06, %v131_v61 }
 0x135   :  { %3351 = vrcp.f32 %v132_v62 }
 0x13b   :  { %v3352_v63 = vpop.eup %3351 }
 0x13c   :  { %v139_v0 = vperm.slane %v3352_v63, %v82_v23  ;;  %v181_v23 = vperm.slane %v178_v16, 1 }
 0x13e   :  { %v141_v1 = vmul.f32 %v139_v0, %v85_v27  ;;  %v164_v7 = vmul.f32 %v139_v0, %v86_v29 }
 0x140   :  { %148 = vst [vmem:[#allocation1] ss:$4 sm:$0xff] %v141_v1 }
 0x147   :  { %v149_v8 = vld.sshfl [vmem:[#allocation1] sm:$0xff pattern:$0x73625140]  ;;  %v150_v9 = vld.sshfl [vmem:[#allocation1 + $0x8] sm:$0xff pattern:$0x73625140] }
 0x148   :  { %v153_v11 = vmul.f32 %v149_v8, %v143_v4  ;;  %v154_v12 = vmul.f32 %v150_v9, %v144_v5  ;;  %171 = vst [vmem:[#allocation1] ss:$4 sm:$0xff] %v164_v7 }
 0x14a   :  { %v3585_v15 = vadd.f32 %v158_v6, %v154_v12  ;;  %v3590_v17 = vadd.f32 %v157_v10, %v153_v11 }
 0x14c   :  { %v409_v18 = vrot.slane %v3585_v15, 7 }
 0x14e   :  { %v3600_v22 = vsel %vm410_vm5, %v3590_v17, %v409_v18 }
 0x14f   :  { %835 = vrot.lane.b32.xlu1 %v3600_v22, %s5612_s3  ;;  %886 = vrot.lane.b32.xlu0 %v3600_v22, %s5591_s5  ;;  %v172_v24 = vld.sshfl [vmem:[#allocation1] sm:$0xff pattern:$0x73625140]  ;;  %v173_v25 = vld.sshfl [vmem:[#allocation1 + $0x8] sm:$0xff pattern:$0x73625140] }
 0x150   :  { %954 = vrot.lane.b32.xlu2 %v3600_v22, %s5593_s16  ;;  %v176_v26 = vmul.f32 %v172_v24, %v166_v19  ;;  %v177_v27 = vmul.f32 %v173_v25, %v167_v20  ;;  %417 = vst.msk [vmem:[#allocation2] ss:$8 sm:$0x3] %vm3594_vm6, %v3600_v22 }
 0x152   :  { %v3611_v29 = vadd.f32 %v181_v23, %v177_v27  ;;  %v3613_v30 = vadd.f32 %v180_v28, %v176_v26 }
 0x154   :  { %v421_v31 = vrot.slane %v3611_v29, 7 }
 0x156   :  { %v3618_v32 = vsel %vm410_vm5, %v3613_v30, %v421_v31  ;;  %vm5603_vm5 = vcmask 867328  }
 0x157   :  { %750 = vrot.lane.b32.xlu1 %v3600_v22, %s5635_s17  ;;  %818 = vrot.lane.b32.xlu0 %v3600_v22, %s5617_s18  ;;  %425 = vst.msk [vmem:[#allocation2 + $0x1] ss:$8 sm:$0x3] %vm3594_vm6, %v3618_v32 }
 0x158   :  { %903 = vrot.lane.b32.xlu2 %v3600_v22, %s5600_s19 }
 0x15f   :  { %801 = vrot.lane.b32.xlu1 %v3600_v22, %s5629_s20  ;;  %869 = vrot.lane.b32.xlu0 %v3600_v22, %s5605_s21 }
 0x160   :  { %920 = vrot.lane.b32.xlu2 %v3600_v22, %s5598_s22 }
 0x167   :  { %716 = vrot.lane.b32.xlu1 %v3600_v22, %s5639_s23  ;;  %784 = vrot.lane.b32.xlu0 %v3600_v22, %s5631_s24 }
 0x168   :  { %937 = vrot.lane.b32.xlu2 %v3600_v22, %s5595_s25 }
 0x16f   :  { %631 = vrot.lane.b32.xlu1 %v3600_v22, %s3452_s26  ;;  %699 = vrot.lane.b32.xlu0 %v3600_v22, %s5579_s27  ;;  %s3464_s27 = smov 126  }
 0x170   :  { %852 = vrot.lane.b32.xlu2 %v3600_v22, %s5607_s28 }
 0x177   :  { %546 = vrot.lane.b32.xlu1 %v3600_v22, %s3455_s0  ;;  %614 = vrot.lane.b32.xlu0 %v3600_v22, %s5577_s1  ;;  %s5637_s1 = smov 109  }
 0x178   :  { %767 = vrot.lane.b32.xlu2 %v3600_v22, %s5633_s29 }
 0x17f   :  { %597 = vrot.lane.b32.xlu1 %v3600_v22, %s5583_s30  ;;  %665 = vrot.lane.b32.xlu0 %v3600_v22, %s5581_s14  ;;  %s5589_s14 = smov 123   ;;  %s5646_s30 = smov 114  }
 0x180   :  { %682 = vrot.lane.b32.xlu2 %v3600_v22, %s5644_s15 }
 0x187   :  { %512 = vrot.lane.b32.xlu1 %v3600_v22, %s5587_s2  ;;  %580 = vrot.lane.b32.xlu0 %v3600_v22, %s5585_s4  ;;  %s3467_s4 = smov 127   ;;  %s3468_s2 = smov 119  }
 0x188   :  { %733 = vrot.lane.b32.xlu2 %v3600_v22, %s5637_s1 }
 0x18f   :  { %444 = vrot.lane.b32.xlu1 %v3600_v22, %s3464_s27  ;;  %495 = vrot.lane.b32.xlu0 %v3600_v22, %s5589_s14  ;;  %s3469_s14 = smov 124  }
 0x190   :  { %648 = vrot.lane.b32.xlu2 %v3600_v22, %s5646_s30 }
 0x197   :  { %895 = vrot.lane.b32.xlu1 %v3618_v32, %s5591_s5  ;;  %427 = vrot.lane.b32.xlu0 %v3600_v22, %s3467_s4  ;;  %s3470_s5 = smov 121  }
 0x198   :  { %563 = vrot.lane.b32.xlu2 %v3600_v22, %s3468_s2 }
 0x19f   :  { %946 = vrot.lane.b32.xlu1 %v3618_v32, %s5595_s25  ;;  %929 = vrot.lane.b32.xlu0 %v3618_v32, %s5598_s22  ;;  %s5723_s25 = smov 111   ;;  %s5724_s22 = smov 122  }
 0x1a0   :  { %478 = vrot.lane.b32.xlu2 %v3600_v22, %s3469_s14 }
 0x1a7   :  { %861 = vrot.lane.b32.xlu1 %v3618_v32, %s5607_s28  ;;  %844 = vrot.lane.b32.xlu0 %v3618_v32, %s5612_s3  ;;  %s5726_s28 = smov 113   ;;  %s5727_s3 = smov 118  }
 0x1a8   :  { %529 = vrot.lane.b32.xlu2 %v3600_v22, %s3470_s5 }
 0x1aa   :  { %v955_v33 = vpop.permute.xlu2 %954 }
 0x1ab   :  { %v956_v34 = vrot.slane %v955_v33, 1 }
 0x1ad   :  { %v958_v35 = vsel %vm5642_vm7, %v955_v33, %v956_v34 }
 0x1ae   :  { %961 = vst.msk [vmem:[#allocation2 + $0x80] ss:$8 sm:$0x3] %vm3594_vm6, %v958_v35 }
 0x1af   :  { %776 = vrot.lane.b32.xlu1 %v3618_v32, %s5633_s29  ;;  %759 = vrot.lane.b32.xlu0 %v3618_v32, %s5635_s17  ;;  %s5798_s17 = smov 99  }
 0x1b0   :  { %963 = vrot.lane.b32.xlu2 %v3618_v32, %s5593_s16  ;;  %s5722_s16 = smov 117  }
 0x1b2   :  { %v904_v36 = vpop.permute.xlu2 %903 }
 0x1b3   :  { %v905_v37 = vrot.slane %v904_v36, 1 }
 0x1b5   :  { %v907_v38 = vsel %vm5643_vm8, %v904_v36, %v905_v37 }
 0x1b6   :  { %910 = vst.msk [vmem:[#allocation2 + $0x72] ss:$8 sm:$0x3] %vm3594_vm6, %v907_v38 }
 0x1b7   :  { %691 = vrot.lane.b32.xlu1 %v3618_v32, %s5644_s15  ;;  %810 = vrot.lane.b32.xlu0 %v3618_v32, %s5629_s20  ;;  %s5805_s15 = smov 96  }
 0x1b8   :  { %912 = vrot.lane.b32.xlu2 %v3618_v32, %s5600_s19  ;;  %s5725_s19 = smov 116  }
 0x1ba   :  { %v921_v39 = vpop.permute.xlu2 %920 }
 0x1bb   :  { %v922_v40 = vrot.slane %v921_v39, 1 }
 0x1bd   :  { %v924_v41 = vsel %vm5627_vm9, %v921_v39, %v922_v40 }
 0x1be   :  { %927 = vst.msk [vmem:[#allocation2 + $0x74] ss:$8 sm:$0x3] %vm3594_vm6, %v924_v41 }
 0x1bf   :  { %742 = vrot.lane.b32.xlu1 %v3618_v32, %s5637_s1  ;;  %725 = vrot.lane.b32.xlu0 %v3618_v32, %s5639_s23  ;;  %s5800_s23 = smov 98  }
 0x1c0   :  { %827 = vrot.lane.b32.xlu2 %v3618_v32, %s5617_s18  ;;  %s5728_s18 = smov 123  }
 0x1c1   :  { %v836_v42 = vpop.permute.xlu1 %835  ;;  %v887_v43 = vpop.permute.xlu0 %886 }
 0x1c2   :  { %v837_v44 = vrot.slane %v836_v42, 1  ;;  %v888_v45 = vrot.slane %v887_v43, 1  ;;  %v938_v46 = vpop.permute.xlu2 %937 }
 0x1c3   :  { %v939_v47 = vrot.slane %v938_v46, 1 }
 0x1c4   :  { %v839_v48 = vsel %vm5652_vm10, %v836_v42, %v837_v44  ;;  %v890_v49 = vsel %vm5650_vm11, %v887_v43, %v888_v45 }
 0x1c5   :  { %842 = vst.msk [vmem:[#allocation2 + $0x62] ss:$8 sm:$0x3] %vm3594_vm6, %v839_v48  ;;  %v941_v50 = vsel %vm5628_vm12, %v938_v46, %v939_v47 }
 0x1c6   :  { %893 = vst.msk [vmem:[#allocation2 + $0x70] ss:$8 sm:$0x3] %vm3594_vm6, %v890_v49 }
 0x1c7   :  { %944 = vst.msk [vmem:[#allocation2 + $0x76] ss:$8 sm:$0x3] %vm3594_vm6, %v941_v50  ;;  %657 = vrot.lane.b32.xlu1 %v3618_v32, %s5646_s30  ;;  %640 = vrot.lane.b32.xlu0 %v3618_v32, %s3452_s26  ;;  %s5802_s30 = smov 97  }
 0x1c8   :  { %878 = vrot.lane.b32.xlu2 %v3618_v32, %s5605_s21  ;;  %s3471_s21 = smov 125  }
 0x1c9   :  { %v751_v51 = vpop.permute.xlu1 %750  ;;  %v819_v52 = vpop.permute.xlu0 %818 }
 0x1ca   :  { %v752_v53 = vrot.slane %v751_v51, 1  ;;  %v820_v54 = vrot.slane %v819_v52, 1  ;;  %v853_v55 = vpop.permute.xlu2 %852 }
 0x1cb   :  { %v854_v56 = vrot.slane %v853_v55, 1 }
 0x1cc   :  { %v754_v57 = vsel %vm5615_vm13, %v751_v51, %v752_v53  ;;  %v822_v58 = vsel %vm821_vm14, %v819_v52, %v820_v54  ;;  %vm5622_vm13 = vcmask 924672  }
 0x1cd   :  { %757 = vst.msk [vmem:[#allocation2 + $0x50] ss:$8 sm:$0x3] %vm3594_vm6, %v754_v57  ;;  %v856_v59 = vsel %vm5669_vm15, %v853_v55, %v854_v56 }
 0x1ce   :  { %825 = vst.msk [vmem:[#allocation2 + $0x60] ss:$8 sm:$0x3] %vm3594_vm6, %v822_v58 }
 0x1cf   :  { %859 = vst.msk [vmem:[#allocation2 + $0x64] ss:$8 sm:$0x3] %vm3594_vm6, %v856_v59  ;;  %572 = vrot.lane.b32.xlu1 %v3618_v32, %s3468_s2  ;;  %555 = vrot.lane.b32.xlu0 %v3618_v32, %s3455_s0 }
 0x1d0   :  { %793 = vrot.lane.b32.xlu2 %v3618_v32, %s5631_s24  ;;  %s5793_s24 = smov 101  }
 0x1d1   :  { %v802_v60 = vpop.permute.xlu1 %801  ;;  %v870_v61 = vpop.permute.xlu0 %869 }
 0x1d2   :  { %v803_v62 = vrot.slane %v802_v60, 1  ;;  %v871_v63 = vrot.slane %v870_v61, 1  ;;  %v768_v0 = vpop.permute.xlu2 %767 }
 0x1d3   :  { %v769_v1 = vrot.slane %v768_v0, 1 }
 0x1d4   :  { %v805_v2 = vsel %vm5597_vm1, %v802_v60, %v803_v62  ;;  %v873_v3 = vsel %vm5614_vm2, %v870_v61, %v871_v63  ;;  %vm5604_vm1 = vcmask 916480   ;;  %vm5621_vm2 = vcmask 957440  }
 0x1d5   :  { %808 = vst.msk [vmem:[#allocation2 + $0x56] ss:$8 sm:$0x3] %vm3594_vm6, %v805_v2  ;;  %v771_v4 = vsel %vm770_vm3, %v768_v0, %v769_v1 }
 0x1d6   :  { %876 = vst.msk [vmem:[#allocation2 + $0x66] ss:$8 sm:$0x3] %vm3594_vm6, %v873_v3 }
 0x1d7   :  { %774 = vst.msk [vmem:[#allocation2 + $0x52] ss:$8 sm:$0x3] %vm3594_vm6, %v771_v4  ;;  %487 = vrot.lane.b32.xlu1 %v3618_v32, %s3469_s14  ;;  %606 = vrot.lane.b32.xlu0 %v3618_v32, %s5722_s16 }
 0x1d8   :  { %708 = vrot.lane.b32.xlu2 %v3618_v32, %s5723_s25 }
 0x1d9   :  { %v717_v5 = vpop.permute.xlu1 %716  ;;  %v785_v6 = vpop.permute.xlu0 %784 }
 0x1da   :  { %v718_v7 = vrot.slane %v717_v5, 1  ;;  %v786_v8 = vrot.slane %v785_v6, 1  ;;  %v683_v9 = vpop.permute.xlu2 %682 }
 0x1db   :  { %v684_v10 = vrot.slane %v683_v9, 1 }
 0x1dc   :  { %v720_v11 = vsel %vm5602_vm4, %v717_v5, %v718_v7  ;;  %v788_v12 = vsel %vm5603_vm5, %v785_v6, %v786_v8  ;;  %vm5609_vm4 = vcmask 941056   ;;  %vm5610_vm5 = vcmask 908288  }
 0x1dd   :  { %723 = vst.msk [vmem:[#allocation2 + $0x44] ss:$8 sm:$0x3] %vm3594_vm6, %v720_v11  ;;  %v686_v13 = vsel %vm5604_vm1, %v683_v9, %v684_v10  ;;  %vm5611_vm1 = vcmask 891904  }
 0x1de   :  { %791 = vst.msk [vmem:[#allocation2 + $0x54] ss:$8 sm:$0x3] %vm3594_vm6, %v788_v12 }
 0x1df   :  { %689 = vst.msk [vmem:[#allocation2 + $0x40] ss:$8 sm:$0x3] %vm3594_vm6, %v686_v13  ;;  %538 = vrot.lane.b32.xlu1 %v3618_v32, %s3470_s5  ;;  %521 = vrot.lane.b32.xlu0 %v3618_v32, %s5724_s22 }
 0x1e0   :  { %623 = vrot.lane.b32.xlu2 %v3618_v32, %s5725_s19 }
 0x1e1   :  { %v632_v16 = vpop.permute.xlu1 %631  ;;  %v700_v18 = vpop.permute.xlu0 %699 }
 0x1e2   :  { %v633_v19 = vrot.slane %v632_v16, 1  ;;  %v701_v20 = vrot.slane %v700_v18, 1  ;;  %v734_v23 = vpop.permute.xlu2 %733 }
 0x1e3   :  { %v735_v24 = vrot.slane %v734_v23, 1 }
 0x1e4   :  { %v635_v25 = vsel %vm5609_vm4, %v632_v16, %v633_v19  ;;  %v703_v26 = vsel %vm5610_vm5, %v700_v18, %v701_v20  ;;  %vm5616_vm4 = vcmask 982016   ;;  %vm5619_vm5 = vcmask 949248  }
 0x1e5   :  { %638 = vst.msk [vmem:[#allocation2 + $0x32] ss:$8 sm:$0x3] %vm3594_vm6, %v635_v25  ;;  %v737_v27 = vsel %vm5611_vm1, %v734_v23, %v735_v24  ;;  %vm5620_vm1 = vcmask 932864  }
 0x1e6   :  { %706 = vst.msk [vmem:[#allocation2 + $0x42] ss:$8 sm:$0x3] %vm3594_vm6, %v703_v26 }
 0x1e7   :  { %740 = vst.msk [vmem:[#allocation2 + $0x46] ss:$8 sm:$0x3] %vm3594_vm6, %v737_v27  ;;  %470 = vrot.lane.b32.xlu1 %v3618_v32, %s3471_s21  ;;  %453 = vrot.lane.b32.xlu0 %v3618_v32, %s3464_s27 }
 0x1e8   :  { %674 = vrot.lane.b32.xlu2 %v3618_v32, %s5726_s28 }
 0x1e9   :  { %v547_v28 = vpop.permute.xlu1 %546  ;;  %v615_v31 = vpop.permute.xlu0 %614 }
 0x1ea   :  { %v548_v33 = vrot.slane %v547_v28, 1  ;;  %v616_v34 = vrot.slane %v615_v31, 1  ;;  %v649_v35 = vpop.permute.xlu2 %648 }
 0x1eb   :  { %v650_v36 = vrot.slane %v649_v35, 1 }
 0x1ec   :  { %v550_v37 = vsel %vm5616_vm4, %v547_v28, %v548_v33  ;;  %v618_v38 = vsel %vm5619_vm5, %v615_v31, %v616_v34  ;;  %vm5623_vm4 = vcmask 973824   ;;  %vm5624_vm5 = vcmask 998400  }
 0x1ed   :  { %553 = vst.msk [vmem:[#allocation2 + $0x20] ss:$8 sm:$0x3] %vm3594_vm6, %v550_v37  ;;  %v652_v39 = vsel %vm5620_vm1, %v649_v35, %v650_v36  ;;  %vm5625_vm1 = vcmask 965632  }
 0x1ee   :  { %621 = vst.msk [vmem:[#allocation2 + $0x30] ss:$8 sm:$0x3] %vm3594_vm6, %v618_v38 }
 0x1ef   :  { %655 = vst.msk [vmem:[#allocation2 + $0x34] ss:$8 sm:$0x3] %vm3594_vm6, %v652_v39 }
 0x1f0   :  { %589 = vrot.lane.b32.xlu2 %v3618_v32, %s5727_s3 }
 0x1f1   :  { %v598_v40 = vpop.permute.xlu1 %597  ;;  %v666_v41 = vpop.permute.xlu0 %665 }
 0x1f2   :  { %v599_v42 = vrot.slane %v598_v40, 1  ;;  %v667_v43 = vrot.slane %v666_v41, 1  ;;  %v564_v44 = vpop.permute.xlu2 %563 }
 0x1f3   :  { %v565_v45 = vrot.slane %v564_v44, 1 }
 0x1f4   :  { %v601_v46 = vsel %vm5621_vm2, %v598_v40, %v599_v42  ;;  %v669_v47 = vsel %vm5622_vm13, %v666_v41, %v667_v43  ;;  %vm481_vm2 = vcmask 1014784   ;;  %vm5662_vm13 = vcmask 1031168  }
 0x1f5   :  { %604 = vst.msk [vmem:[#allocation2 + $0x26] ss:$8 sm:$0x3] %vm3594_vm6, %v601_v46  ;;  %v567_v48 = vsel %vm5623_vm4, %v564_v44, %v565_v45  ;;  %vm498_vm4 = vcmask 1006592  }
 0x1f6   :  { %672 = vst.msk [vmem:[#allocation2 + $0x36] ss:$8 sm:$0x3] %vm3594_vm6, %v669_v47 }
 0x1f7   :  { %570 = vst.msk [vmem:[#allocation2 + $0x22] ss:$8 sm:$0x3] %vm3594_vm6, %v567_v48 }
 0x1f8   :  { %504 = vrot.lane.b32.xlu2 %v3618_v32, %s5728_s18 }
 0x1f9   :  { %v513_v49 = vpop.permute.xlu1 %512  ;;  %v581_v50 = vpop.permute.xlu0 %580 }
 0x1fa   :  { %v514_v51 = vrot.slane %v513_v49, 1  ;;  %v582_v52 = vrot.slane %v581_v50, 1  ;;  %v479_v53 = vpop.permute.xlu2 %478 }
 0x1fb   :  { %v480_v54 = vrot.slane %v479_v53, 1 }
 0x1fc   :  { %v516_v55 = vsel %vm5624_vm5, %v513_v49, %v514_v51  ;;  %v584_v56 = vsel %vm5625_vm1, %v581_v50, %v582_v52  ;;  %vm532_vm5 = vcmask 990208   ;;  %vm5664_vm1 = vcmask 1039360  }
 0x1fd   :  { %519 = vst.msk [vmem:[#allocation2 + $0x14] ss:$8 sm:$0x3] %vm3594_vm6, %v516_v55  ;;  %v482_v57 = vsel %vm481_vm2, %v479_v53, %v480_v54 }
 0x1fe   :  { %587 = vst.msk [vmem:[#allocation2 + $0x24] ss:$8 sm:$0x3] %vm3594_vm6, %v584_v56 }
 0x1ff   :  { %485 = vst.msk [vmem:[#allocation2 + $0x10] ss:$8 sm:$0x3] %vm3594_vm6, %v482_v57 }
 0x200   :  { %436 = vrot.lane.b32.xlu2 %v3618_v32, %s3467_s4 }
 0x201   :  { %v445_v58 = vpop.permute.xlu1 %444  ;;  %v496_v59 = vpop.permute.xlu0 %495 }
 0x202   :  { %v446_v60 = vrot.slane %v445_v58, 1  ;;  %v497_v61 = vrot.slane %v496_v59, 1  ;;  %v530_v62 = vpop.permute.xlu2 %529 }
 0x203   :  { %v531_v63 = vrot.slane %v530_v62, 1 }
 0x204   :  { %v448_v0 = vsel %vm5662_vm13, %v445_v58, %v446_v60  ;;  %v499_v1 = vsel %vm498_vm4, %v496_v59, %v497_v61 }
 0x205   :  { %451 = vst.msk [vmem:[#allocation2 + $0x4] ss:$8 sm:$0x3] %vm3594_vm6, %v448_v0  ;;  %v533_v2 = vsel %vm532_vm5, %v530_v62, %v531_v63 }
 0x206   :  { %502 = vst.msk [vmem:[#allocation2 + $0x12] ss:$8 sm:$0x3] %vm3594_vm6, %v499_v1 }
 0x207   :  { %536 = vst.msk [vmem:[#allocation2 + $0x16] ss:$8 sm:$0x3] %vm3594_vm6, %v533_v2 }
 0x208   :  { %461 = vrot.lane.b32.xlu2 %v3600_v22, %s3471_s21 }
 0x209   :  { %v896_v32 = vpop.permute.xlu1 %895  ;;  %v428_v3 = vpop.permute.xlu0 %427 }
 0x20a   :  { %v897_v4 = vrot.slane %v896_v32, 1  ;;  %v429_v5 = vrot.slane %v428_v3, 1  ;;  %v964_v6 = vpop.permute.xlu2 %963 }
 0x20b   :  { %v965_v7 = vrot.slane %v964_v6, 1 }
 0x20c   :  { %v898_v8 = vsel %vm5650_vm11, %v896_v32, %v897_v4  ;;  %v431_v9 = vsel %vm5664_vm1, %v428_v3, %v429_v5 }
 0x20d   :  { %901 = vst.msk [vmem:[#allocation2 + $0x71] ss:$8 sm:$0x3] %vm3594_vm6, %v898_v8  ;;  %v966_v10 = vsel %vm5642_vm7, %v964_v6, %v965_v7 }
 0x20e   :  { %434 = vst.msk [vmem:[#allocation2 + $0x2] ss:$8 sm:$0x3] %vm3594_vm6, %v431_v9 }
 0x20f   :  { %969 = vst.msk [vmem:[#allocation2 + $0x81] ss:$8 sm:$0x3] %vm3594_vm6, %v966_v10 }
 0x211   :  { %v947_v22 = vpop.permute.xlu1 %946  ;;  %v930_v11 = vpop.permute.xlu0 %929 }
 0x212   :  { %v948_v12 = vrot.slane %v947_v22, 1  ;;  %v931_v13 = vrot.slane %v930_v11, 1  ;;  %v913_v16 = vpop.permute.xlu2 %912 }
 0x213   :  { %v914_v18 = vrot.slane %v913_v16, 1 }
 0x214   :  { %v949_v19 = vsel %vm5628_vm12, %v947_v22, %v948_v12  ;;  %v932_v20 = vsel %vm5627_vm9, %v930_v11, %v931_v13  ;;  %vm5730_vm9 = vcmask 826368   ;;  %vm5731_vm12 = vcmask 916480  }
 0x215   :  { %952 = vst.msk [vmem:[#allocation2 + $0x77] ss:$8 sm:$0x3] %vm3594_vm6, %v949_v19  ;;  %v915_v23 = vsel %vm5643_vm8, %v913_v16, %v914_v18 }
 0x216   :  { %935 = vst.msk [vmem:[#allocation2 + $0x75] ss:$8 sm:$0x3] %vm3594_vm6, %v932_v20  ;;  %v987_v24 = vld [vmem:[#allocation2 + $0x80] sm:$0x3] }
 0x217   :  { %918 = vst.msk [vmem:[#allocation2 + $0x73] ss:$8 sm:$0x3] %vm3594_vm6, %v915_v23  ;;  %3124 = vmatpush.msk.msra.mxu0 %vm5626_vm0, %v987_v24  ;;  %v988_v25 = vld [vmem:[#allocation2 + $0x88] sm:$0x3] }
 0x218   :  { %3129 = vmatpush.msk.msra.mxu1 %vm5626_vm0, %v988_v25  ;;  %vm5729_vm0 = vcmask 883712  }
 0x219   :  { %v862_v26 = vpop.permute.xlu1 %861  ;;  %v845_v27 = vpop.permute.xlu0 %844 }
 0x21a   :  { %v863_v28 = vrot.slane %v862_v26, 1  ;;  %v846_v31 = vrot.slane %v845_v27, 1  ;;  %v828_v33 = vpop.permute.xlu2 %827 }
 0x21b   :  { %v829_v34 = vrot.slane %v828_v33, 1 }
 0x21c   :  { %v864_v35 = vsel %vm5669_vm15, %v862_v26, %v863_v28  ;;  %v847_v36 = vsel %vm5652_vm10, %v845_v27, %v846_v31 }
 0x21d   :  { %867 = vst.msk [vmem:[#allocation2 + $0x65] ss:$8 sm:$0x3] %vm3594_vm6, %v864_v35  ;;  %v830_v37 = vsel %vm821_vm14, %v828_v33, %v829_v34 }
 0x21e   :  { %850 = vst.msk [vmem:[#allocation2 + $0x63] ss:$8 sm:$0x3] %vm3594_vm6, %v847_v36  ;;  %v985_v38 = vld [vmem:[#allocation2 + $0x70] sm:$0xff]  ;;  %v986_v39 = vld [vmem:[#allocation2 + $0x78] sm:$0xff] }
 0x21f   :  { %833 = vst.msk [vmem:[#allocation2 + $0x61] ss:$8 sm:$0x3] %vm3594_vm6, %v830_v37  ;;  %1016 = vmatpush.msra.mxu0 %v985_v38  ;;  %1045 = vmatpush.msra.mxu1 %v986_v39 }
 0x221   :  { %v777_v40 = vpop.permute.xlu1 %776  ;;  %v760_v41 = vpop.permute.xlu0 %759 }
 0x222   :  { %v778_v42 = vrot.slane %v777_v40, 1  ;;  %v761_v43 = vrot.slane %v760_v41, 1  ;;  %v879_v44 = vpop.permute.xlu2 %878 }
 0x223   :  { %v880_v45 = vrot.slane %v879_v44, 1 }
 0x224   :  { %v779_v46 = vsel %vm770_vm3, %v777_v40, %v778_v42  ;;  %v762_v47 = vsel %vm5729_vm0, %v760_v41, %v761_v43  ;;  %vm5732_vm0 = vcmask 859136  }
 0x225   :  { %782 = vst.msk [vmem:[#allocation2 + $0x53] ss:$8 sm:$0x3] %vm3594_vm6, %v779_v46  ;;  %v881_v48 = vsel %vm5730_vm9, %v879_v44, %v880_v45  ;;  %vm5733_vm9 = vcmask 867328  }
 0x226   :  { %765 = vst.msk [vmem:[#allocation2 + $0x51] ss:$8 sm:$0x3] %vm3594_vm6, %v762_v47 }
 0x227   :  { %884 = vst.msk [vmem:[#allocation2 + $0x67] ss:$8 sm:$0x3] %vm3594_vm6, %v881_v48 }
 0x229   :  { %v692_v49 = vpop.permute.xlu1 %691  ;;  %v811_v50 = vpop.permute.xlu0 %810 }
 0x22a   :  { %v693_v51 = vrot.slane %v692_v49, 1  ;;  %v812_v52 = vrot.slane %v811_v50, 1  ;;  %v794_v53 = vpop.permute.xlu2 %793 }
 0x22b   :  { %v795_v54 = vrot.slane %v794_v53, 1 }
 0x22c   :  { %v694_v55 = vsel %vm5731_vm12, %v692_v49, %v693_v51  ;;  %v813_v56 = vsel %vm5732_vm0, %v811_v50, %v812_v52  ;;  %vm5734_vm12 = vcmask 891904   ;;  %vm5735_vm0 = vcmask 900096  }
 0x22d   :  { %697 = vst.msk [vmem:[#allocation2 + $0x41] ss:$8 sm:$0x3] %vm3594_vm6, %v694_v55  ;;  %v796_v57 = vsel %vm5733_vm9, %v794_v53, %v795_v54  ;;  %vm5736_vm9 = vcmask 908288  }
 0x22e   :  { %816 = vst.msk [vmem:[#allocation2 + $0x57] ss:$8 sm:$0x3] %vm3594_vm6, %v813_v56  ;;  %v983_v58 = vld [vmem:[#allocation2 + $0x60] sm:$0xff]  ;;  %v984_v59 = vld [vmem:[#allocation2 + $0x68] sm:$0xff] }
 0x22f   :  { %799 = vst.msk [vmem:[#allocation2 + $0x55] ss:$8 sm:$0x3] %vm3594_vm6, %v796_v57  ;;  %1017 = vmatpush.msra.mxu0 %v983_v58  ;;  %1046 = vmatpush.msra.mxu1 %v984_v59 }
 0x231   :  { %v743_v60 = vpop.permute.xlu1 %742  ;;  %v726_v61 = vpop.permute.xlu0 %725 }
 0x232   :  { %v744_v62 = vrot.slane %v743_v60, 1  ;;  %v727_v63 = vrot.slane %v726_v61, 1  ;;  %v709_v0 = vpop.permute.xlu2 %708 }
 0x233   :  { %v710_v1 = vrot.slane %v709_v0, 1 }
 0x234   :  { %v745_v2 = vsel %vm5734_vm12, %v743_v60, %v744_v62  ;;  %v728_v32 = vsel %vm5735_vm0, %v726_v61, %v727_v63  ;;  %vm5737_vm12 = vcmask 932864   ;;  %vm5738_vm0 = vcmask 941056  }
 0x235   :  { %748 = vst.msk [vmem:[#allocation2 + $0x47] ss:$8 sm:$0x3] %vm3594_vm6, %v745_v2  ;;  %v711_v3 = vsel %vm5736_vm9, %v709_v0, %v710_v1  ;;  %vm5739_vm9 = vcmask 949248  }
 0x236   :  { %731 = vst.msk [vmem:[#allocation2 + $0x45] ss:$8 sm:$0x3] %vm3594_vm6, %v728_v32  ;;  %v981_v4 = vld [vmem:[#allocation2 + $0x50] sm:$0xff]  ;;  %v982_v5 = vld [vmem:[#allocation2 + $0x58] sm:$0xff] }
 0x237   :  { %714 = vst.msk [vmem:[#allocation2 + $0x43] ss:$8 sm:$0x3] %vm3594_vm6, %v711_v3  ;;  %1018 = vmatpush.msra.mxu0 %v981_v4  ;;  %1047 = vmatpush.msra.mxu1 %v982_v5  ;;  %v186_v4 = vld [vmem:[%s5569_s6] sm:$0xff] }
 0x239   :  { %v658_v6 = vpop.permute.xlu1 %657  ;;  %v641_v7 = vpop.permute.xlu0 %640 }
 0x23a   :  { %v659_v8 = vrot.slane %v658_v6, 1  ;;  %v642_v9 = vrot.slane %v641_v7, 1  ;;  %v624_v10 = vpop.permute.xlu2 %623 }
 0x23b   :  { %v625_v22 = vrot.slane %v624_v10, 1 }
 0x23c   :  { %v660_v11 = vsel %vm5737_vm12, %v658_v6, %v659_v8  ;;  %v643_v12 = vsel %vm5738_vm0, %v641_v7, %v642_v9  ;;  %vm5740_vm12 = vcmask 973824   ;;  %vm5741_vm0 = vcmask 982016   ;;  %v187_v7 = vld [vmem:[%s5569_s6 + $0x8] sm:$0xff]  ;;  %v188_v8 = vld [vmem:[%s5569_s6 + $0x10] sm:$0xff]  ;;  %v189_v9 = vld [vmem:[%s5569_s6 + $0x18] sm:$0xff] }
 0x23d   :  { %663 = vst.msk [vmem:[#allocation2 + $0x35] ss:$8 sm:$0x3] %vm3594_vm6, %v660_v11  ;;  %v626_v13 = vsel %vm5739_vm9, %v624_v10, %v625_v22  ;;  %vm5742_vm9 = vcmask 924672  }
 0x23e   :  { %646 = vst.msk [vmem:[#allocation2 + $0x33] ss:$8 sm:$0x3] %vm3594_vm6, %v643_v12  ;;  %v979_v16 = vld [vmem:[#allocation2 + $0x40] sm:$0xff]  ;;  %v980_v18 = vld [vmem:[#allocation2 + $0x48] sm:$0xff] }
 0x23f   :  { %629 = vst.msk [vmem:[#allocation2 + $0x31] ss:$8 sm:$0x3] %vm3594_vm6, %v626_v13  ;;  %1019 = vmatpush.msra.mxu0 %v979_v16  ;;  %1048 = vmatpush.msra.mxu1 %v980_v18 }
 0x241   :  { %v573_v19 = vpop.permute.xlu1 %572  ;;  %v556_v20 = vpop.permute.xlu0 %555 }
 0x242   :  { %v574_v23 = vrot.slane %v573_v19, 1  ;;  %v557_v24 = vrot.slane %v556_v20, 1  ;;  %v675_v25 = vpop.permute.xlu2 %674 }
 0x243   :  { %v676_v26 = vrot.slane %v675_v25, 1 }
 0x244   :  { %v575_v27 = vsel %vm5740_vm12, %v573_v19, %v574_v23  ;;  %v558_v28 = vsel %vm5741_vm0, %v556_v20, %v557_v24  ;;  %vm5743_vm12 = vcmask 957440   ;;  %vm5744_vm0 = vcmask 965632  }
 0x245   :  { %578 = vst.msk [vmem:[#allocation2 + $0x23] ss:$8 sm:$0x3] %vm3594_vm6, %v575_v27  ;;  %v677_v31 = vsel %vm5742_vm9, %v675_v25, %v676_v26  ;;  %vm5745_vm9 = vcmask 998400  }
 0x246   :  { %561 = vst.msk [vmem:[#allocation2 + $0x21] ss:$8 sm:$0x3] %vm3594_vm6, %v558_v28 }
 0x247   :  { %680 = vst.msk [vmem:[#allocation2 + $0x37] ss:$8 sm:$0x3] %vm3594_vm6, %v677_v31 }
 0x249   :  { %v488_v33 = vpop.permute.xlu1 %487  ;;  %v607_v34 = vpop.permute.xlu0 %606 }
 0x24a   :  { %v489_v35 = vrot.slane %v488_v33, 1  ;;  %v608_v36 = vrot.slane %v607_v34, 1  ;;  %v590_v37 = vpop.permute.xlu2 %589 }
 0x24b   :  { %v591_v38 = vrot.slane %v590_v37, 1 }
 0x24c   :  { %v490_v39 = vsel %vm481_vm2, %v488_v33, %v489_v35  ;;  %v609_v40 = vsel %vm5743_vm12, %v607_v34, %v608_v36  ;;  %vm5648_vm12 = vcmask 1022976  }
 0x24d   :  { %493 = vst.msk [vmem:[#allocation2 + $0x11] ss:$8 sm:$0x3] %vm3594_vm6, %v490_v39  ;;  %v592_v41 = vsel %vm5744_vm0, %v590_v37, %v591_v38  ;;  %vm5641_vm0 = vcmask 539648  }
 0x24e   :  { %612 = vst.msk [vmem:[#allocation2 + $0x27] ss:$8 sm:$0x3] %vm3594_vm6, %v609_v40  ;;  %v977_v42 = vld [vmem:[#allocation2 + $0x30] sm:$0xff]  ;;  %v978_v43 = vld [vmem:[#allocation2 + $0x38] sm:$0xff] }
 0x24f   :  { %595 = vst.msk [vmem:[#allocation2 + $0x25] ss:$8 sm:$0x3] %vm3594_vm6, %v592_v41  ;;  %1020 = vmatpush.msra.mxu0 %v977_v42  ;;  %1049 = vmatpush.msra.mxu1 %v978_v43  ;;  %v3472_v41 = vmov 224.0  }
 0x250   :  { %3353 = vrcp.f32 %v3472_v41 }
 0x251   :  { %v539_v44 = vpop.permute.xlu1 %538  ;;  %v522_v45 = vpop.permute.xlu0 %521 }
 0x252   :  { %v540_v46 = vrot.slane %v539_v44, 1  ;;  %v523_v47 = vrot.slane %v522_v45, 1  ;;  %v505_v48 = vpop.permute.xlu2 %504 }
 0x253   :  { %v506_v49 = vrot.slane %v505_v48, 1 }
 0x254   :  { %v541_v50 = vsel %vm532_vm5, %v539_v44, %v540_v46  ;;  %v524_v51 = vsel %vm5745_vm9, %v522_v45, %v523_v47 }
 0x255   :  { %544 = vst.msk [vmem:[#allocation2 + $0x17] ss:$8 sm:$0x3] %vm3594_vm6, %v541_v50  ;;  %v507_v52 = vsel %vm498_vm4, %v505_v48, %v506_v49 }
 0x256   :  { %527 = vst.msk [vmem:[#allocation2 + $0x15] ss:$8 sm:$0x3] %vm3594_vm6, %v524_v51  ;;  %v975_v53 = vld [vmem:[#allocation2 + $0x20] sm:$0xff]  ;;  %v976_v54 = vld [vmem:[#allocation2 + $0x28] sm:$0xff]  ;;  %v3354_v42 = vpop.eup %3353 }
 0x257   :  { %510 = vst.msk [vmem:[#allocation2 + $0x13] ss:$8 sm:$0x3] %vm3594_vm6, %v507_v52  ;;  %1021 = vmatpush.msra.mxu0 %v975_v53  ;;  %1050 = vmatpush.msra.mxu1 %v976_v54  ;;  %v1087_v43 = vmul.f32 224.0, %v3354_v42  ;;  %vm1091_vm9 = vweird.f32 %v3354_v42 }
 0x259   :  { %v471_v55 = vpop.permute.xlu1 %470  ;;  %v454_v56 = vpop.permute.xlu0 %453  ;;  %v1088_v44 = vsub.f32 1.0, %v1087_v43 }
 0x25a   :  { %v472_v57 = vrot.slane %v471_v55, 1  ;;  %v455_v58 = vrot.slane %v454_v56, 1  ;;  %v437_v59 = vpop.permute.xlu2 %436 }
 0x25b   :  { %v438_v60 = vrot.slane %v437_v59, 1  ;;  %v1089_v45 = vmul.f32 %v3354_v42, %v1088_v44  ;;  %v199_v44 = vld [vmem:[%s5571_s8 + $0x8] sm:$0xff] }
 0x25c   :  { %v473_v61 = vsel %vm5648_vm12, %v471_v55, %v472_v57  ;;  %v456_v62 = vsel %vm5662_vm13, %v454_v56, %v455_v58 }
 0x25d   :  { %476 = vst.msk [vmem:[#allocation2 + $0x7] ss:$8 sm:$0x3] %vm3594_vm6, %v473_v61  ;;  %v439_v63 = vsel %vm5664_vm1, %v437_v59, %v438_v60  ;;  %v1090_v46 = vadd.f32 %v3354_v42, %v1089_v45  ;;  %v198_v45 = vld [vmem:[%s5571_s8] sm:$0xff] }
 0x25e   :  { %459 = vst.msk [vmem:[#allocation2 + $0x5] ss:$8 sm:$0x3] %vm3594_vm6, %v456_v62  ;;  %v973_v0 = vld [vmem:[#allocation2 + $0x10] sm:$0xff]  ;;  %v974_v1 = vld [vmem:[#allocation2 + $0x18] sm:$0xff] }
 0x25f   :  { %442 = vst.msk [vmem:[#allocation2 + $0x3] ss:$8 sm:$0x3] %vm3594_vm6, %v439_v63  ;;  %1022 = vmatpush.msra.mxu0 %v973_v0  ;;  %1051 = vmatpush.msra.mxu1 %v974_v1  ;;  %v3961_v47 = vsel %vm1091_vm9, %v3354_v42, %v1090_v46  ;;  %v3473_v0 = vmov 223.0  }
 0x260   :  { %3355 = vrcp.f32 %v3473_v0  ;;  %v200_v0 = vld [vmem:[%s5571_s8 + $0x10] sm:$0xff] }
 0x262   :  { %v462_v2 = vpop.permute.xlu2 %461 }
 0x263   :  { %v463_v32 = vrot.slane %v462_v2, 1 }
 0x265   :  { %v465_v3 = vsel %vm5648_vm12, %v462_v2, %v463_v32 }
 0x266   :  { %468 = vst.msk [vmem:[#allocation2 + $0x6] ss:$8 sm:$0x3] %vm3594_vm6, %v465_v3  ;;  %v3356_v1 = vpop.eup %3355 }
 0x267   :  { %v1112_v2 = vmul.f32 223.0, %v3356_v1  ;;  %vm1116_vm9 = vweird.f32 %v3356_v1 }
 0x269   :  { %v1113_v32 = vsub.f32 1.0, %v1112_v2 }
 0x26b   :  { %v1114_v3 = vmul.f32 %v3356_v1, %v1113_v32 }
 0x26d   :  { %v971_v5 = vld [vmem:[#allocation2] sm:$0xff]  ;;  %v972_v6 = vld [vmem:[#allocation2 + $0x8] sm:$0xff] }
 0x26e   :  { %1023 = vmatpush.msra.mxu0 %v971_v5  ;;  %1052 = vmatpush.msra.mxu1 %v972_v6 }
 0x26f   :  { %3125 = vmatmul.msk.f32.vlgmr.msra.gmra.mxu0 %vm5641_vm0, %v186_v4  ;;  %3130 = vmatmul.msk.f32.vlgmr.msra.gmra.mxu1 %vm5641_vm0, %v186_v4  ;;  %v1115_v4 = vadd.f32 %v3356_v1, %v1114_v3 }
 0x271   :  { %v3975_v5 = vsel %vm1116_vm9, %v3356_v1, %v1115_v4 }
 0x277   :  { %3126 = vmatmul.msk.f32.gmra.mxu0 %vm5641_vm0, %v187_v7  ;;  %3131 = vmatmul.msk.f32.gmra.mxu1 %vm5641_vm0, %v187_v7 }
 0x27f   :  { %3127 = vmatmul.msk.f32.gmra.mxu0 %vm5641_vm0, %v188_v8  ;;  %3132 = vmatmul.msk.f32.gmra.mxu1 %vm5641_vm0, %v188_v8 }
 0x287   :  { %3128 = vmatmul.msk.f32.gmra.mxu0 %vm5641_vm0, %v189_v9  ;;  %3133 = vmatmul.msk.f32.gmra.mxu1 %vm5641_vm0, %v189_v9 }
 0x2ec   :  { %v1025_v10 = vpop.f32.mrf.mxu0  ;;  %v1054_v22 = vpop.f32.mrf.mxu1 }
 0x2ed   :  { %v1066_v13 = vand.u32 2147483647, %v1025_v10  ;;  %v1067_v19 = vand.u32 2147483647, %v1054_v22 }
 0x2f4   :  { %v1028_v11 = vpop.f32.mrf.mxu0  ;;  %v1057_v12 = vpop.f32.mrf.mxu1 }
 0x2f5   :  { %v1068_v28 = vand.u32 2147483647, %v1028_v11  ;;  %v1069_v34 = vand.u32 2147483647, %v1057_v12 }
 0x2fc   :  { %v1031_v16 = vpop.f32.mrf.mxu0  ;;  %v1060_v18 = vpop.f32.mrf.mxu1 }
 0x2fd   :  { %v1070_v20 = vand.u32 2147483647, %v1031_v16  ;;  %v1071_v23 = vand.u32 2147483647, %v1060_v18 }
 0x2ff   :  { %v1074_v24 = vmax.f32 %v1066_v13, %v1070_v20  ;;  %v1075_v25 = vmax.f32 %v1067_v19, %v1071_v23 }
 0x301   :  { %v1078_v26 = vsel %vm5642_vm7, %v1075_v25, 0.0 }
 0x302   :  { %v1079_v27 = vadd.f32 %v1078_v26, %v1074_v24 }
 0x304   :  { %v1063_v31 = vpop.f32.mrf.mxu1  ;;  %1080 = vadd.xlane.f32.xlu2 %v1079_v27  ;;  %v1034_v33 = vpop.f32.mrf.mxu0 }
 0x305   :  { %v1073_v35 = vand.u32 2147483647, %v1063_v31  ;;  %v1072_v36 = vand.u32 2147483647, %v1034_v33 }
 0x307   :  { %v1077_v37 = vmax.f32 %v1069_v34, %v1073_v35  ;;  %v1076_v38 = vmax.f32 %v1068_v28, %v1072_v36 }
 0x309   :  { %v1082_v39 = vsel %vm5642_vm7, %v1077_v37, 0.0 }
 0x30a   :  { %v1083_v40 = vadd.f32 %v1082_v39, %v1076_v38  ;;  %v195_v39 = vld [vmem:[%s5570_s7 + $0x8] sm:$0xff] }
 0x30c   :  { %1084 = vadd.xlane.f32.xlu0 %v1083_v40  ;;  %v194_v40 = vld [vmem:[%s5570_s7] sm:$0xff] }
 0x377   :  { %v1081_v48 = vpop.xlane.xlu2 %1080 }
 0x378   :  { %v1093_v49 = vmul.f32 %v3961_v47, %v1081_v48 }
 0x37a   :  { %v1095_v50 = vsub.f32 %v1074_v24, %v1093_v49  ;;  %v1096_v51 = vsub.f32 %v1075_v25, %v1093_v49 }
 0x37c   :  { %v1099_v52 = vmul.f32 %v1095_v50, %v1095_v50  ;;  %v1100_v53 = vmul.f32 %v1096_v51, %v1096_v51 }
 0x37e   :  { %v1103_v54 = vsel %vm5642_vm7, %v1100_v53, 0.0 }
 0x37f   :  { %v1085_v55 = vpop.xlane.xlu0 %1084  ;;  %v1104_v56 = vadd.f32 %v1103_v54, %v1099_v52 }
 0x380   :  { %v1094_v57 = vmul.f32 %v3961_v47, %v1085_v55 }
 0x381   :  { %1105 = vadd.xlane.f32.xlu0 %v1104_v56 }
 0x382   :  { %v3966_v58 = vsub.f32 %v1076_v38, %v1094_v57  ;;  %v3968_v59 = vsub.f32 %v1077_v37, %v1094_v57 }
 0x384   :  { %v1101_v60 = vmul.f32 %v3966_v58, %v3966_v58  ;;  %v1102_v61 = vmul.f32 %v3968_v59, %v3968_v59 }
 0x386   :  { %v1107_v62 = vsel %vm5642_vm7, %v1102_v61, 0.0  ;;  %v201_v61 = vld [vmem:[%s5571_s8 + $0x18] sm:$0xff] }
 0x387   :  { %v1108_v63 = vadd.f32 %v1107_v62, %v1101_v60  ;;  %v196_v62 = vld [vmem:[%s5570_s7 + $0x10] sm:$0xff] }
 0x389   :  { %1109 = vadd.xlane.f32.xlu1 %v1108_v63 }
 0x3f4   :  { %v1106_v6 = vpop.xlane.xlu0 %1105 }
 0x3f5   :  { %v1118_v7 = vmul.f32 %v3975_v5, %v1106_v6 }
 0x3f7   :  { %3357 = vrsqrt.f32 %v1118_v7  ;;  %vm1127_vm9 = vcmp.eq.f32.partialorder %v1118_v7, inf  ;;  %v1130_v24 = vand.u32 2147483648, %v1118_v7  ;;  %vm1129_vm0 = vcmp.eq.f32.partialorder %v1118_v7, 0.0 }
 0x3fc   :  { %v1110_v8 = vpop.xlane.xlu1 %1109 }
 0x3fd   :  { %v3358_v9 = vpop.eup %3357  ;;  %v1119_v10 = vmul.f32 %v3975_v5, %v1110_v8 }
 0x3fe   :  { %v1121_v22 = vmul.f32 %v3358_v9, %v1118_v7 }
 0x3ff   :  { %3359 = vrsqrt.f32 %v1119_v10  ;;  %vm1139_vm7 = vcmp.eq.f32.partialorder %v1119_v10, inf  ;;  %v1142_v35 = vand.u32 2147483648, %v1119_v10  ;;  %vm1141_vm8 = vcmp.eq.f32.partialorder %v1119_v10, 0.0 }
 0x400   :  { %v1122_v11 = vmul.f32 %v3358_v9, %v1121_v22 }
 0x402   :  { %v1123_v12 = vmul.f32 0.5, %v1122_v11 }
 0x404   :  { %v1124_v13 = vsub.f32 1.5, %v1123_v12 }
 0x405   :  { %v3360_v16 = vpop.eup %3359 }
 0x406   :  { %v1125_v18 = vmul.f32 %v3358_v9, %v1124_v13  ;;  %v1133_v19 = vmul.f32 %v3360_v16, %v1119_v10 }
 0x408   :  { %v1126_v20 = vmul.f32 %v1125_v18, %v1118_v7  ;;  %v1134_v23 = vmul.f32 %v3360_v16, %v1133_v19 }
 0x40a   :  { %v1135_v25 = vmul.f32 0.5, %v1134_v23  ;;  %v1128_v26 = vsel %vm1127_vm9, %v1118_v7, %v1126_v20 }
 0x40b   :  { %v1131_v27 = vsel %vm1129_vm0, %v1130_v24, %v1128_v26 }
 0x40c   :  { %v1136_v28 = vsub.f32 1.5, %v1135_v25  ;;  %v1144_v31 = vadd.f32 1e-06, %v1131_v27 }
 0x40e   :  { %v1137_v33 = vmul.f32 %v3360_v16, %v1136_v28  ;;  %3361 = vrcp.f32 %v1144_v31  ;;  %v4050_v31 = vshrl.u32 %v206_v14, 7 }
 0x410   :  { %v1138_v34 = vmul.f32 %v1137_v33, %v1119_v10  ;;  %v236_v33 = vand.u32 127, %v206_v14 }
 0x412   :  { %v1140_v36 = vsel %vm1139_vm7, %v1119_v10, %v1138_v34  ;;  %vm5702_vm7 = vcmask 752640  }
 0x413   :  { %v1143_v37 = vsel %vm1141_vm8, %v1142_v35, %v1140_v36  ;;  %v4054_v35 = vadd.s32 120, %v4050_v31  ;;  %v4056_v36 = vmul.u32 2, %v236_v33 }
 0x414   :  { %v3362_v38 = vpop.eup %3361  ;;  %v1145_v41 = vadd.f32 1e-06, %v1143_v37  ;;  %v4059_v37 = vadd.s32 112, %v4050_v31 }
 0x415   :  { %v1149_v42 = vmul.f32 %v3362_v38, %v1096_v51  ;;  %v1148_v43 = vmul.f32 %v3362_v38, %v1095_v50  ;;  %v197_v50 = vld [vmem:[%s5570_s7 + $0x18] sm:$0xff]  ;;  %v4062_v38 = vadd.s32 104, %v4050_v31 }
 0x416   :  { %3363 = vrcp.f32 %v1145_v41 }
 0x417   :  { %v1153_v46 = vmul.f32 %v1149_v42, %v195_v39  ;;  %v1152_v48 = vmul.f32 %v1148_v43, %v194_v40  ;;  %v4067_v39 = vadd.s32 1, %v4056_v36  ;;  %v5704_v42 = vmov 1.0  }
 0x418   :  { %v4076_v43 = vadd.s32 96, %v4050_v31 }
 0x419   :  { %v1157_v49 = vadd.f32 %v1153_v46, %v199_v44  ;;  %v1156_v52 = vadd.f32 %v1152_v48, %v198_v45  ;;  %v4091_v45 = vadd.s32 88, %v4050_v31  ;;  %vm5655_vm11 = vcmp.eq.s32.totalorder %v4062_v38, %v4067_v39 }
 0x41a   :  { %vm5657_vm10 = vcmp.eq.s32.totalorder %v4076_v43, %v4067_v39  ;;  %v4112_v46 = vadd.s32 80, %v4050_v31  ;;  %v4121_v48 = vadd.s32 72, %v4050_v31 }
 0x41b   :  { %vm1161_vm8 = vcmp.ge.f32.partialorder %v1157_v49, 0.0  ;;  %v1165_v53 = vmul.f32 0.2, %v1157_v49  ;;  %vm1160_vm0 = vcmp.ge.f32.partialorder %v1156_v52, 0.0  ;;  %v1164_v54 = vmul.f32 0.2, %v1156_v52 }
 0x41c   :  { %v3364_v51 = vpop.eup %3363 }
 0x41d   :  { %v1169_v55 = vsel %vm1161_vm8, %v1157_v49, %v1165_v53  ;;  %v3994_v56 = vsel %vm1160_vm0, %v1156_v52, %v1164_v54  ;;  %v1151_v57 = vmul.f32 %v3364_v51, %v3968_v59  ;;  %v1150_v60 = vmul.f32 %v3364_v51, %v3966_v58 }
 0x41e   :  { %1219 = vrot.lane.b32.xlu0 %v1169_v55, %s3471_s21  ;;  %1174 = vst.msk [vmem:[#allocation3 + $0x8] sm:$0xff] %vm5702_vm7, %v1169_v55  ;;  %1237 = vrot.lane.b32.xlu1 %v1169_v55, %s3469_s14  ;;  %vm5649_vm0 = vcmp.eq.s32.totalorder %v4054_v35, %v4056_v36  ;;  %v234_v49 = vadd.s32 216, %v4050_v31  ;;  %v4137_v51 = vadd.s32 64, %v4050_v31 }
 0x41f   :  { %1217 = vrot.lane.b32.xlu2 %v3994_v56, %s3471_s21  ;;  %v1155_v59 = vmul.f32 %v1151_v57, %v197_v50  ;;  %v1154_v58 = vmul.f32 %v1150_v60, %v196_v62  ;;  %3138 = vmatpush.msk.msrb.mxu0 %vm5649_vm0, %v5704_v42  ;;  %vm5654_vm0 = vcmp.eq.s32.totalorder %v4062_v38, %v4056_v36 }
 0x421   :  { %v1159_v63 = vadd.f32 %v1155_v59, %v201_v61  ;;  %v1158_v32 = vadd.f32 %v1154_v58, %v200_v0  ;;  %v4161_v61 = vadd.s32 56, %v4050_v31  ;;  %v4164_v59 = vadd.s32 208, %v4050_v31  ;;  %v190_v58 = vld [vmem:[%s5572_s9] sm:$0xff] }
 0x422   :  { %v4178_v0 = vadd.s32 200, %v4050_v31 }
 0x423   :  { %vm1163_vm9 = vcmp.ge.f32.partialorder %v1159_v63, 0.0  ;;  %v1167_v1 = vmul.f32 0.2, %v1159_v63  ;;  %v1166_v3 = vmul.f32 0.2, %v1158_v32  ;;  %vm1162_vm8 = vcmp.ge.f32.partialorder %v1158_v32, 0.0 }
 0x425   :  { %v1171_v2 = vsel %vm1163_vm9, %v1159_v63, %v1167_v1  ;;  %v4017_v4 = vsel %vm1162_vm8, %v1158_v32, %v1166_v3  ;;  %vm5658_vm9 = vcmp.eq.s32.totalorder %v4059_v37, %v4056_v36  ;;  %vm5651_vm8 = vcmp.eq.s32.totalorder %v4054_v35, %v4067_v39  ;;  %v1254_v1 = vld [vmem:[#allocation3 + $0x8] sm:$0xff] }
 0x426   :  { %1176 = vst.msk [vmem:[#allocation3 + $0x18] sm:$0xff] %vm5702_vm7, %v1171_v2  ;;  %1223 = vrot.lane.b32.xlu0 %v1171_v2, %s3471_s21  ;;  %1235 = vrot.lane.b32.xlu1 %v3994_v56, %s3469_s14  ;;  %v4196_v3 = vadd.s32 48, %v4050_v31 }
 0x427   :  { %1241 = vrot.lane.b32.xlu2 %v1171_v2, %s3469_s14  ;;  %3168 = vmatpush.msk.msrb.mxu1 %vm5651_vm8, %v5704_v42  ;;  %vm5656_vm8 = vcmp.eq.s32.totalorder %v4076_v43, %v4056_v36 }
 0x428   :  { %3139 = vmatpush.msk.msrb.mxu0 %vm5658_vm9, %v5704_v42  ;;  %vm350_vm9 = vcmp.eq.s32.totalorder %v234_v49, %v4067_v39  ;;  %vm5676_vm15 = vcmp.eq.s32.totalorder %v4196_v3, %v4067_v39 }
 0x42a   :  { %3140 = vmatpush.msk.msrb.mxu0 %vm5654_vm0, %v5704_v42  ;;  %vm5660_vm0 = vcmp.eq.s32.totalorder %v4091_v45, %v4067_v39 }
 0x42c   :  { %3141 = vmatpush.msk.msrb.mxu0 %vm5656_vm8, %v5704_v42  ;;  %vm5663_vm8 = vcmp.eq.s32.totalorder %v4112_v46, %v4067_v39 }
 0x42d   :  { %v1256_v62 = vld [vmem:[#allocation3 + $0x18] sm:$0xff] }
 0x42e   :  { %1221 = vrot.lane.b32.xlu0 %v4017_v4, %s3471_s21  ;;  %1201 = vrot.lane.b32.xlu1 %v1169_v55, %s3464_s27 }
 0x42f   :  { %1239 = vrot.lane.b32.xlu2 %v4017_v4, %s3469_s14 }
 0x436   :  { %1187 = vrot.lane.b32.xlu0 %v1171_v2, %s3467_s4  ;;  %1203 = vrot.lane.b32.xlu1 %v4017_v4, %s3464_s27 }
 0x437   :  { %1205 = vrot.lane.b32.xlu2 %v1171_v2, %s3464_s27  ;;  %v3475_v2 = vmov 0.0  }
 0x438   :  { %v4187_v32 = vsel %vm350_vm9, 1.0, %v3475_v2  ;;  %vm5670_vm9 = vcmp.eq.s32.totalorder %v4161_v61, %v4056_v36 }
 0x43e   :  { %1199 = vrot.lane.b32.xlu0 %v3994_v56, %s3464_s27  ;;  %1185 = vrot.lane.b32.xlu1 %v4017_v4, %s3467_s4 }
 0x43f   :  { %1183 = vrot.lane.b32.xlu2 %v1169_v55, %s3467_s4 }
 0x447   :  { %1181 = vrot.lane.b32.xlu2 %v3994_v56, %s3467_s4 }
 0x479   :  { %v1218_v6 = vpop.permute.xlu2 %1217 }
 0x481   :  { %v1242_v7 = vpop.permute.xlu2 %1241 }
 0x482   :  { %1252 = vst.msk [vmem:[#allocation3 + $0x98] sm:$0xff] %vm5702_vm7, %v1242_v7 }
 0x489   :  { %v1240_v8 = vpop.permute.xlu2 %1239  ;;  %v1272_v9 = vld [vmem:[#allocation3 + $0x98] sm:$0xff] }
 0x48a   :  { %v1244_v10 = vsel %vm481_vm2, %v1240_v8, %v1242_v7  ;;  %1309 = vmatpush.msra.mxu3 %v1272_v9  ;;  %v4212_v7 = vadd.s32 40, %v4050_v31  ;;  %v4253_v9 = vadd.s32 176, %v4050_v31 }
 0x48b   :  { %1286 = vmatpush.msra.mxu2 %v1244_v10  ;;  %v191_v10 = vld [vmem:[%s5572_s9 + $0x8] sm:$0xff] }
 0x490   :  { %v1220_v22 = vpop.permute.xlu0 %1219  ;;  %v1238_v11 = vpop.permute.xlu1 %1237 }
 0x491   :  { %1232 = vst.msk [vmem:[#allocation3 + $0x68] sm:$0xff] %vm5702_vm7, %v1220_v22  ;;  %v1206_v12 = vpop.permute.xlu2 %1205  ;;  %v1225_v28 = vsel %vm5648_vm12, %v1218_v6, %v1220_v22  ;;  %v4209_v6 = vadd.s32 192, %v4050_v31  ;;  %v4281_v22 = vadd.s32 168, %v4050_v31 }
 0x492   :  { %1250 = vst.msk [vmem:[#allocation3 + $0x88] sm:$0xff] %vm5702_vm7, %v1238_v11 }
 0x493   :  { %1216 = vst.msk [vmem:[#allocation3 + $0x58] sm:$0xff] %vm5702_vm7, %v1206_v12 }
 0x498   :  { %v1224_v13 = vpop.permute.xlu0 %1223  ;;  %v1236_v16 = vpop.permute.xlu1 %1235  ;;  %v1266_v27 = vld [vmem:[#allocation3 + $0x68] sm:$0xff] }
 0x499   :  { %1234 = vst.msk [vmem:[#allocation3 + $0x78] sm:$0xff] %vm5702_vm7, %v1224_v13  ;;  %v4041_v18 = vpop.permute.xlu2 %1183  ;;  %v1243_v19 = vsel %vm481_vm2, %v1236_v16, %v1238_v11  ;;  %v1270_v20 = vld [vmem:[#allocation3 + $0x88] sm:$0xff]  ;;  %v4290_v11 = vadd.s32 24, %v4050_v31  ;;  %v4357_v16 = vadd.s32 144, %v4050_v31 }
 0x49a   :  { %1196 = vst.msk [vmem:[#allocation3 + $0x28] sm:$0xff] %vm5702_vm7, %v4041_v18  ;;  %1310 = vmatpush.msra.mxu3 %v1270_v20  ;;  %1287 = vmatpush.msra.mxu2 %v1243_v19  ;;  %v1264_v34 = vld [vmem:[#allocation3 + $0x58] sm:$0xff]  ;;  %v4435_v19 = vadd.s32 128, %v4050_v31  ;;  %v4438_v20 = vadd.s32 16, %v4050_v31 }
 0x4a0   :  { %v1222_v23 = vpop.permute.xlu0 %1221  ;;  %v1202_v24 = vpop.permute.xlu1 %1201  ;;  %v1268_v25 = vld [vmem:[#allocation3 + $0x78] sm:$0xff] }
 0x4a1   :  { %v1226_v26 = vsel %vm5648_vm12, %v1222_v23, %v1224_v13  ;;  %1214 = vst.msk [vmem:[#allocation3 + $0x48] sm:$0xff] %vm5702_vm7, %v1202_v24  ;;  %1311 = vmatpush.msra.mxu3 %v1268_v25  ;;  %vm5653_vm12 = vcmp.eq.s32.totalorder %v4059_v37, %v4067_v39  ;;  %v1182_v55 = vpop.permute.xlu2 %1181  ;;  %v1258_v57 = vld [vmem:[#allocation3 + $0x28] sm:$0xff]  ;;  %v4333_v13 = vadd.s32 152, %v4050_v31  ;;  %v4445_v23 = vadd.s32 8, %v4050_v31  ;;  %v193_v25 = vld [vmem:[%s5573_s10 + $0x8] sm:$0xff] }
 0x4a2   :  { %1288 = vmatpush.msra.mxu2 %v1226_v26  ;;  %3169 = vmatpush.msk.msrb.mxu1 %vm5653_vm12, %v5704_v42  ;;  %vm5659_vm12 = vcmp.eq.s32.totalorder %v4091_v45, %v4056_v36  ;;  %v1189_v63 = vsel %vm5664_vm1, %v1182_v55, %v4041_v18  ;;  %v4380_v18 = vadd.s32 136, %v4050_v31  ;;  %v3476_v26 = vmov 0  }
 0x4a3   :  { %1312 = vmatpush.msra.mxu3 %v1266_v27  ;;  %3142 = vmatpush.msk.msrb.mxu0 %vm5659_vm12, %v5704_v42  ;;  %vm5665_vm12 = vcmp.eq.s32.totalorder %v4121_v48, %v4067_v39 }
 0x4a4   :  { %1289 = vmatpush.msra.mxu2 %v1225_v28  ;;  %3170 = vmatpush.msk.msrb.mxu1 %vm5655_vm11, %v5704_v42  ;;  %vm5661_vm11 = vcmp.eq.s32.totalorder %v4112_v46, %v4056_v36 }
 0x4a5   :  { %1313 = vmatpush.msra.mxu3 %v1264_v34  ;;  %3143 = vmatpush.msk.msrb.mxu0 %vm5661_vm11, %v5704_v42  ;;  %vm5689_vm11 = vcmask 654336  }
 0x4a6   :  { %3171 = vmatpush.msk.msrb.mxu1 %vm5657_vm10, %v5704_v42  ;;  %vm5667_vm10 = vcmp.eq.s32.totalorder %v4121_v48, %v4056_v36  ;;  %3343 = vset.pattern.permute.xlu0 %v3476_v26 }
 0x4a7   :  { %3144 = vmatpush.msk.msrb.mxu0 %vm5667_vm10, %v5704_v42  ;;  %vm5674_vm10 = vcmp.eq.s32.totalorder %v4178_v0, %v4067_v39  ;;  %3344 = vset.pattern.permute.xlu2 %v3476_v26  ;;  %v3477_v26 = vmov 110.0  }
 0x4a8   :  { %v1188_v14 = vpop.permute.xlu0 %1187  ;;  %v1204_v40 = vpop.permute.xlu1 %1203  ;;  %v1262_v41 = vld [vmem:[#allocation3 + $0x48] sm:$0xff]  ;;  %3172 = vmatpush.msk.msrb.mxu1 %vm5660_vm0, %v5704_v42  ;;  %vm5666_vm0 = vcmp.eq.s32.totalorder %v4137_v51, %v4056_v36  ;;  %1440 = vperm.xlu2 %3344, %v193_v25   ;;  %3365 = vrcp.f32 %v3477_v26 }
 0x4a9   :  { %1198 = vst.msk [vmem:[#allocation3 + $0x38] sm:$0xff] %vm5702_vm7, %v1188_v14  ;;  %v1208_v44 = vsel %vm5662_vm13, %v1204_v40, %v1206_v12  ;;  %1314 = vmatpush.msra.mxu3 %v1262_v41  ;;  %3145 = vmatpush.msk.msrb.mxu0 %vm5666_vm0, %v5704_v42  ;;  %vm5673_vm0 = vcmp.eq.s32.totalorder %v4161_v61, %v4067_v39  ;;  %v4312_v12 = vadd.s32 160, %v4050_v31 }
 0x4aa   :  { %1290 = vmatpush.msra.mxu2 %v1208_v44  ;;  %3173 = vmatpush.msk.msrb.mxu1 %vm5663_vm8, %v5704_v42  ;;  %vm265_vm8 = vcmp.eq.s32.totalorder %v234_v49, %v4056_v36 }
 0x4ab   :  { %v4214_v8 = vsel %vm265_vm8, 1.0, %v3475_v2  ;;  %3146 = vmatpush.msk.msrb.mxu0 %vm5670_vm9, %v5704_v42  ;;  %vm5677_vm8 = vcmp.eq.s32.totalorder %v4196_v3, %v4056_v36  ;;  %vm5678_vm9 = vcmp.eq.s32.totalorder %v4209_v6, %v4067_v39 }
 0x4ac   :  { %3174 = vmatpush.msk.msrb.mxu1 %vm5665_vm12, %v5704_v42  ;;  %vm5671_vm12 = vcmp.eq.s32.totalorder %v4164_v59, %v4067_v39 }
 0x4ad   :  { %3147 = vmatpush.msk.msrb.mxu0 %vm5677_vm8, %v5704_v42  ;;  %vm5685_vm8 = vcmp.eq.s32.totalorder %v4253_v9, %v4067_v39 }
 0x4b0   :  { %v1200_v52 = vpop.permute.xlu0 %1199  ;;  %v1186_v53 = vpop.permute.xlu1 %1185  ;;  %v1260_v54 = vld [vmem:[#allocation3 + $0x38] sm:$0xff] }
 0x4b1   :  { %v1207_v50 = vsel %vm5662_vm13, %v1200_v52, %v1202_v24  ;;  %1315 = vmatpush.msra.mxu3 %v1260_v54  ;;  %v1190_v60 = vsel %vm5664_vm1, %v1186_v53, %v1188_v14  ;;  %vm5672_vm13 = vcmask 1043456   ;;  %vm5668_vm1 = vcmp.eq.s32.totalorder %v4137_v51, %v4067_v39  ;;  %v192_v24 = vld [vmem:[%s5573_s10] sm:$0xff]  ;;  %s5796_s10 = smov 100  }
 0x4b2   :  { %1291 = vmatpush.msra.mxu2 %v1207_v50  ;;  %3175 = vmatpush.msk.msrb.mxu1 %vm5668_vm1, %v5704_v42  ;;  %vm5675_vm1 = vcmp.eq.s32.totalorder %v4164_v59, %v4056_v36 }
 0x4b3   :  { %1316 = vmatpush.msra.mxu3 %v1258_v57  ;;  %1435 = vperm.xlu0 %3343, %v192_v24  }
 0x4b4   :  { %1292 = vmatpush.msra.mxu2 %v1190_v60  ;;  %3176 = vmatpush.msk.msrb.mxu1 %vm5673_vm0, %v5704_v42 }
 0x4b5   :  { %1317 = vmatpush.msra.mxu3 %v1256_v62 }
 0x4b6   :  { %1293 = vmatpush.msra.mxu2 %v1189_v63  ;;  %3177 = vmatpush.msk.msrb.mxu1 %vm5676_vm15, %v5704_v42 }
 0x4b7   :  { %1318 = vmatpush.msra.mxu3 %v1254_v1 }
 0x4b8   :  { %3136 = vmatmul.msk.f32.vlgmr.msra.gmra.mxu3 %vm5689_vm11, %v190_v58  ;;  %1294 = vmatpush.msra.mxu2 %v4017_v4  ;;  %v4228_v4 = vadd.s32 184, %v4050_v31 }
 0x4b9   :  { %3184 = vmatpush.msk.msrb.mxu3 %vm5672_vm13, %v4187_v32 }
 0x4ba   :  { %1295 = vmatpush.msra.mxu2 %v3994_v56  ;;  %v4246_v56 = vadd.s32 32, %v4050_v31  ;;  %vm5681_vm0 = vcmp.eq.s32.totalorder %v4228_v4, %v4067_v39 }
 0x4bb   :  { %3134 = vmatmul.msk.f32.vlgmr.msra.gmra.mxu2 %vm5689_vm11, %v190_v58  ;;  %3185 = vmatpush.msk.msrb.mxu3 %vm5671_vm12, %v5704_v42  ;;  %vm5680_vm12 = vcmp.eq.s32.totalorder %v4212_v7, %v4056_v36 }
 0x4bc   :  { %3154 = vmatpush.msk.msrb.mxu2 %vm5672_vm13, %v4214_v8  ;;  %vm5679_vm13 = vcmp.eq.s32.totalorder %v4178_v0, %v4056_v36  ;;  %3148 = vmatpush.msk.msrb.mxu0 %vm5680_vm12, %v5704_v42  ;;  %vm5684_vm15 = vcmp.eq.s32.totalorder %v4246_v56, %v4056_v36  ;;  %vm5687_vm12 = vcmp.eq.s32.totalorder %v4281_v22, %v4067_v39 }
 0x4bd   :  { %3186 = vmatpush.msk.msrb.mxu3 %vm5674_vm10, %v5704_v42  ;;  %vm5682_vm10 = vcmp.eq.s32.totalorder %v4212_v7, %v4067_v39 }
 0x4be   :  { %3155 = vmatpush.msk.msrb.mxu2 %vm5675_vm1, %v5704_v42  ;;  %vm5683_vm1 = vcmp.eq.s32.totalorder %v4209_v6, %v4056_v36  ;;  %3178 = vmatpush.msk.msrb.mxu1 %vm5682_vm10, %v5704_v42  ;;  %vm5688_vm10 = vcmp.eq.s32.totalorder %v4253_v9, %v4056_v36 }
 0x4bf   :  { %3187 = vmatpush.msk.msrb.mxu3 %vm5678_vm9, %v5704_v42  ;;  %vm5686_vm9 = vcmp.eq.s32.totalorder %v4228_v4, %v4056_v36  ;;  %3149 = vmatpush.msk.msrb.mxu0 %vm5684_vm15, %v5704_v42  ;;  %vm5690_vm15 = vcmp.eq.s32.totalorder %v4312_v12, %v4067_v39 }
 0x4c0   :  { %3137 = vmatmul.msk.f32.gmra.mxu3 %vm5689_vm11, %v191_v10  ;;  %3156 = vmatpush.msk.msrb.mxu2 %vm5679_vm13, %v5704_v42  ;;  %vm327_vm13 = vcmp.eq.s32.totalorder %v4246_v56, %v4067_v39 }
 0x4c1   :  { %3188 = vmatpush.msk.msrb.mxu3 %vm5681_vm0, %v5704_v42  ;;  %vm241_vm0 = vcmp.eq.s32.totalorder %v4290_v11, %v4056_v36  ;;  %3179 = vmatpush.msk.msrb.mxu1 %vm327_vm13, %v5704_v42 }
 0x4c2   :  { %3157 = vmatpush.msk.msrb.mxu2 %vm5683_vm1, %v5704_v42  ;;  %vm326_vm1 = vcmp.eq.s32.totalorder %v4290_v11, %v4067_v39  ;;  %3150 = vmatpush.msk.msrb.mxu0 %vm241_vm0, %v5704_v42 }
 0x4c3   :  { %3135 = vmatmul.msk.f32.gmra.mxu2 %vm5689_vm11, %v191_v10  ;;  %3189 = vmatpush.msk.msrb.mxu3 %vm5685_vm8, %v5704_v42  ;;  %vm5691_vm8 = vcmp.eq.s32.totalorder %v4281_v22, %v4056_v36  ;;  %vm5699_vm11 = vcmp.eq.s32.totalorder %v4333_v13, %v4056_v36 }
 0x4c4   :  { %3158 = vmatpush.msk.msrb.mxu2 %vm5686_vm9, %v5704_v42  ;;  %vm5692_vm9 = vcmp.eq.s32.totalorder %v4333_v13, %v4067_v39  ;;  %3180 = vmatpush.msk.msrb.mxu1 %vm326_vm1, %v5704_v42 }
 0x4c5   :  { %3190 = vmatpush.msk.msrb.mxu3 %vm5687_vm12, %v5704_v42  ;;  %vm5700_vm12 = vcmp.eq.s32.totalorder %v4312_v12, %v4056_v36 }
 0x4c6   :  { %3159 = vmatpush.msk.msrb.mxu2 %vm5688_vm10, %v5704_v42  ;;  %vm5693_vm10 = vcmp.eq.s32.totalorder %v4357_v16, %v4067_v39 }
 0x4c7   :  { %3191 = vmatpush.msk.msrb.mxu3 %vm5690_vm15, %v5704_v42  ;;  %vm5694_vm15 = vcmp.eq.s32.totalorder %v4380_v18, %v4067_v39 }
 0x4c8   :  { %3160 = vmatpush.msk.msrb.mxu2 %vm5691_vm8, %v5704_v42  ;;  %vm5696_vm8 = vcmp.eq.s32.totalorder %v4357_v16, %v4056_v36 }
 0x4c9   :  { %3192 = vmatpush.msk.msrb.mxu3 %vm5692_vm9, %v5704_v42  ;;  %vm5695_vm9 = vcmp.eq.s32.totalorder %v4380_v18, %v4056_v36 }
 0x4ca   :  { %3161 = vmatpush.msk.msrb.mxu2 %vm5700_vm12, %v5704_v42  ;;  %vm5701_vm12 = vcmp.eq.s32.totalorder %v4050_v31, %v4067_v39 }
 0x4cb   :  { %3193 = vmatpush.msk.msrb.mxu3 %vm5693_vm10, %v5704_v42  ;;  %vm5697_vm10 = vcmp.eq.s32.totalorder %v4435_v19, %v4056_v36 }
 0x4cc   :  { %3162 = vmatpush.msk.msrb.mxu2 %vm5699_vm11, %v5704_v42  ;;  %vm5703_vm11 = vcmp.eq.s32.totalorder %v4050_v31, %v4056_v36 }
 0x4cd   :  { %3194 = vmatpush.msk.msrb.mxu3 %vm5694_vm15, %v5704_v42  ;;  %vm5698_vm15 = vcmp.eq.s32.totalorder %v4435_v19, %v4067_v39 }
 0x4ce   :  { %3163 = vmatpush.msk.msrb.mxu2 %vm5696_vm8, %v5704_v42  ;;  %vm325_vm8 = vcmp.eq.s32.totalorder %v4438_v20, %v4067_v39 }
 0x4cf   :  { %3195 = vmatpush.msk.msrb.mxu3 %vm5698_vm15, %v5704_v42  ;;  %3181 = vmatpush.msk.msrb.mxu1 %vm325_vm8, %v5704_v42  ;;  %vm324_vm15 = vcmp.eq.s32.totalorder %v4445_v23, %v4067_v39 }
 0x4d0   :  { %3164 = vmatpush.msk.msrb.mxu2 %vm5695_vm9, %v5704_v42  ;;  %vm240_vm9 = vcmp.eq.s32.totalorder %v4438_v20, %v4056_v36 }
 0x4d1   :  { %3151 = vmatpush.msk.msrb.mxu0 %vm240_vm9, %v5704_v42  ;;  %3182 = vmatpush.msk.msrb.mxu1 %vm324_vm15, %v5704_v42 }
 0x4d2   :  { %3165 = vmatpush.msk.msrb.mxu2 %vm5697_vm10, %v5704_v42  ;;  %vm239_vm10 = vcmp.eq.s32.totalorder %v4445_v23, %v4056_v36 }
 0x4d3   :  { %3152 = vmatpush.msk.msrb.mxu0 %vm239_vm10, %v5704_v42  ;;  %3183 = vmatpush.msk.msrb.mxu1 %vm5701_vm12, %v5704_v42  ;;  %vm5746_vm12 = vcmask 900096  }
 0x4d5   :  { %3153 = vmatpush.msk.msrb.mxu0 %vm5703_vm11, %v5704_v42 }
 0x502   :  { %v4505_v2 = vpop.permute.xlu2 %1440 }
 0x525   :  { %v4501_v53 = vpop.permute.xlu0 %1435 }
 0x53b   :  { %v1320_v27 = vpop.f32.mrf.mxu3 }
 0x53c   :  { %3166 = vmatmul.msk.f32.vlgmr.msrb.gmra.mxu2 %vm5702_vm7, %v1320_v27  ;;  %3196 = vmatmul.msk.f32.vlgmr.msrb.gmra.mxu3 %vm5702_vm7, %v1320_v27  ;;  %v3366_v27 = vpop.eup %3365 }
 0x53e   :  { %v1297_v28 = vpop.f32.mrf.mxu2 }
 0x53f   :  { %1352 = vmatmul.f32.vlgmr.msrb.gmra.mxu0 %v1297_v28  ;;  %1401 = vmatmul.f32.vlgmr.msrb.gmra.mxu1 %v1297_v28  ;;  %v1452_v28 = vmul.f32 110.0, %v3366_v27 }
 0x543   :  { %v1323_v33 = vpop.f32.mrf.mxu3 }
 0x544   :  { %3167 = vmatmul.msk.f32.gmra.mxu2 %vm5702_vm7, %v1323_v33  ;;  %3197 = vmatmul.msk.f32.gmra.mxu3 %vm5702_vm7, %v1323_v33  ;;  %vm5747_vm7 = vmmov %vm5746_vm12  ;;  %v1453_v33 = vsub.f32 1.0, %v1452_v28 }
 0x545   :  { %vm5748_vm11 = vmmov %vm5747_vm7 }
 0x546   :  { %v1300_v34 = vpop.f32.mrf.mxu2 }
 0x547   :  { %1355 = vmatmul.f32.gmra.mxu0 %v1300_v34  ;;  %1404 = vmatmul.f32.gmra.mxu1 %v1300_v34  ;;  %v1454_v34 = vmul.f32 %v3366_v27, %v1453_v33 }
 0x5bc   :  { %v1353_v14 = vpop.f32.mrf.mxu0  ;;  %v1402_v40 = vpop.f32.mrf.mxu1 }
 0x5bf   :  { %v1376_v41 = vpop.f32.mrf.mxu2  ;;  %v1425_v44 = vpop.f32.mrf.mxu3 }
 0x5c0   :  { %v1377_v49 = vadd.f32 %v1376_v41, %v1353_v14  ;;  %v1426_v52 = vadd.f32 %v1425_v44, %v1402_v40  ;;  %v1455_v14 = vadd.f32 %v3366_v27, %v1454_v34 }
 0x5c2   :  { %v1431_v54 = vmax.f32 %v1377_v49, %v1426_v52 }
 0x5c4   :  { %v1443_v50 = vadd.f32 %v4501_v53, %v1431_v54  ;;  %v1405_v55 = vpop.f32.mrf.mxu1  ;;  %v1356_v57 = vpop.f32.mrf.mxu0 }
 0x5c6   :  { %v1445_v60 = vsel %vm5746_vm12, %v1443_v50, 0.0  ;;  %vm1456_vm12 = vweird.f32 %v3366_v27 }
 0x5c7   :  { %v1379_v62 = vpop.f32.mrf.mxu2  ;;  %v1428_v63 = vpop.f32.mrf.mxu3  ;;  %1446 = vadd.xlane.f32.xlu1 %v1445_v60  ;;  %v4509_v40 = vsel %vm1456_vm12, %v3366_v27, %v1455_v14 }
 0x5c8   :  { %v1429_v58 = vadd.f32 %v1428_v63, %v1405_v55  ;;  %v1380_v1 = vadd.f32 %v1379_v62, %v1356_v57 }
 0x5ca   :  { %v1432_v10 = vmax.f32 %v1380_v1, %v1429_v58  ;;  %v3478_v58 = vmov 109.0  }
 0x5cb   :  { %3367 = vrcp.f32 %v3478_v58 }
 0x5cc   :  { %v1444_v24 = vadd.f32 %v4505_v2, %v1432_v10 }
 0x5ce   :  { %v1448_v25 = vsel %vm5747_vm7, %v1444_v24, 0.0 }
 0x5cf   :  { %1449 = vadd.xlane.f32.xlu0 %v1448_v25 }
 0x5d1   :  { %v3368_v1 = vpop.eup %3367 }
 0x5d2   :  { %v1471_v10 = vmul.f32 109.0, %v3368_v1 }
 0x63a   :  { %v1447_v41 = vpop.xlane.xlu1 %1446 }
 0x63b   :  { %v1458_v44 = vmul.f32 %v4509_v40, %v1447_v41 }
 0x63d   :  { %v1460_v49 = vsub.f32 %v1443_v50, %v1458_v44  ;;  %v1472_v50 = vsub.f32 1.0, %v1471_v10 }
 0x63f   :  { %v1462_v52 = vmul.f32 %v1460_v49, %v1460_v49  ;;  %v1473_v25 = vmul.f32 %v3368_v1, %v1472_v50 }
 0x641   :  { %v1464_v54 = vsel %vm5748_vm11, %v1462_v52, 0.0  ;;  %v1474_v26 = vadd.f32 %v3368_v1, %v1473_v25  ;;  %vm1475_vm11 = vweird.f32 %v3368_v1 }
 0x642   :  { %1465 = vadd.xlane.f32.xlu2 %v1464_v54  ;;  %v1450_v55 = vpop.xlane.xlu0 %1449 }
 0x643   :  { %v1459_v57 = vmul.f32 %v4509_v40, %v1450_v55  ;;  %v4519_v27 = vsel %vm1475_vm11, %v3368_v1, %v1474_v26  ;;  %v202_v26 = vld [vmem:[%s5574_s11] sm:$0xff] }
 0x644   :  { %5749 = vst [vmem:[#allocation7_spill] sm:$0xff] %v4519_v27 }
 0x645   :  { %v4514_v60 = vsub.f32 %v1444_v24, %v1459_v57 }
 0x647   :  { %v1463_v62 = vmul.f32 %v4514_v60, %v4514_v60 }
 0x649   :  { %v1467_v63 = vsel %vm5747_vm7, %v1463_v62, 0.0 }
 0x64a   :  { %1468 = vadd.xlane.f32.xlu1 %v1467_v63 }
 0x6b5   :  { %v1466_v28 = vpop.xlane.xlu2 %1465 }
 0x6b6   :  { %v1477_v24 = vmul.f32 %v4519_v27, %v1466_v28 }
 0x6b8   :  { %3369 = vrsqrt.f32 %v1477_v24  ;;  %vm1486_vm12 = vcmp.eq.f32.partialorder %v1477_v24, inf  ;;  %v1489_v62 = vand.u32 2147483648, %v1477_v24  ;;  %vm1488_vm7 = vcmp.eq.f32.partialorder %v1477_v24, 0.0 }
 0x6bd   :  { %v1469_v44 = vpop.xlane.xlu1 %1468 }
 0x6be   :  { %v3370_v33 = vpop.eup %3369  ;;  %v1478_v54 = vmul.f32 %v4519_v27, %v1469_v44 }
 0x6bf   :  { %v1480_v34 = vmul.f32 %v3370_v33, %v1477_v24 }
 0x6c0   :  { %3371 = vrsqrt.f32 %v1478_v54 }
 0x6c1   :  { %v1481_v14 = vmul.f32 %v3370_v33, %v1480_v34 }
 0x6c3   :  { %v1482_v41 = vmul.f32 0.5, %v1481_v14 }
 0x6c5   :  { %v1483_v52 = vsub.f32 1.5, %v1482_v41 }
 0x6c6   :  { %v3372_v10 = vpop.eup %3371 }
 0x6c7   :  { %v1484_v55 = vmul.f32 %v3370_v33, %v1483_v52  ;;  %v1492_v50 = vmul.f32 %v3372_v10, %v1478_v54  ;;  %v204_v33 = vld [vmem:[%s5575_s12] sm:$0xff] }
 0x6c9   :  { %v1485_v57 = vmul.f32 %v1484_v55, %v1477_v24  ;;  %v1493_v34 = vmul.f32 %v3372_v10, %v1492_v50 }
 0x6cb   :  { %v1487_v63 = vsel %vm1486_vm12, %v1477_v24, %v1485_v57  ;;  %v1494_v44 = vmul.f32 0.5, %v1493_v34  ;;  %vm1498_vm12 = vcmp.eq.f32.partialorder %v1478_v54, inf }
 0x6cc   :  { %v1490_v58 = vsel %vm1488_vm7, %v1489_v62, %v1487_v63  ;;  %vm1500_vm7 = vcmp.eq.f32.partialorder %v1478_v54, 0.0 }
 0x6cd   :  { %v1503_v1 = vadd.f32 1e-06, %v1490_v58  ;;  %v1495_v55 = vsub.f32 1.5, %v1494_v44  ;;  %v1501_v58 = vand.u32 2147483648, %v1478_v54 }
 0x6cf   :  { %3373 = vrcp.f32 %v1503_v1  ;;  %v1496_v57 = vmul.f32 %v3372_v10, %v1495_v55 }
 0x6d5   :  { %v3374_v25 = vpop.eup %3373 }
 0x6d6   :  { %v1507_v28 = vmul.f32 %v3374_v25, %v1460_v49  ;;  %v1497_v49 = vmul.f32 %v1496_v57, %v1478_v54 }
 0x6d8   :  { %v1509_v14 = vmul.f32 %v1507_v28, %v202_v26  ;;  %v1499_v63 = vsel %vm1498_vm12, %v1478_v54, %v1497_v49  ;;  %v203_v54 = vld [vmem:[%s5574_s11 + $0x8] sm:$0xff] }
 0x6d9   :  { %v1502_v50 = vsel %vm1500_vm7, %v1501_v58, %v1499_v63 }
 0x6da   :  { %v1511_v41 = vadd.f32 %v1509_v14, %v204_v33  ;;  %v1504_v25 = vadd.f32 1e-06, %v1502_v50  ;;  %v205_v14 = vld [vmem:[%s5575_s12 + $0x8] sm:$0xff] }
 0x6dc   :  { %vm1513_vm11 = vcmp.ge.f32.partialorder %v1511_v41, 0.0  ;;  %v1515_v24 = vmul.f32 0.2, %v1511_v41  ;;  %3375 = vrcp.f32 %v1504_v25 }
 0x6de   :  { %v4529_v52 = vsel %vm1513_vm11, %v1511_v41, %v1515_v24  ;;  %vm1519_vm11 = vcmask 892928  }
 0x6df   :  { %1533 = vst.sshfl [vmem:[#allocation1] sm:$0xff pattern:$0x73625140] %v4529_v52 }
 0x6e0   :  { %1520 = vst.msk [vmem:[#allocation4] sm:$0x1] %vm1519_vm11, %v4529_v52 }
 0x6e2   :  { %v3376_v10 = vpop.eup %3375 }
 0x6e3   :  { %v1508_v33 = vmul.f32 %v3376_v10, %v4514_v60 }
 0x6e5   :  { %v1510_v34 = vmul.f32 %v1508_v33, %v203_v54 }
 0x6e6   :  { %v4532_v62 = vld [vmem:[#allocation1 + $0x1] ss:$4 sm:$0xff] }
 0x6e7   :  { %1545 = vst.sshfl [vmem:[#allocation1] sm:$0xff pattern:$0x73625140] %v4529_v52  ;;  %v1512_v44 = vadd.f32 %v1510_v34, %v205_v14 }
 0x6e9   :  { %v1516_v60 = vmul.f32 0.2, %v1512_v44  ;;  %vm1514_vm12 = vcmp.ge.f32.partialorder %v1512_v44, 0.0 }
 0x6eb   :  { %v4558_v55 = vsel %vm1514_vm12, %v1512_v44, %v1516_v60  ;;  %vm5760_vm12 = vcmask 973824  }
 0x6ec   :  { %5751 = vst [vmem:[#allocation9_spill] sm:$0xff] %v4558_v55 }
 0x6ee   :  { %v4535_v1 = vld [vmem:[#allocation1 + $0x1] ss:$4 sm:$0xff] }
 0x6ef   :  { %1560 = vst.sshfl [vmem:[#allocation1] sm:$0xff pattern:$0x73625140] %v4529_v52 }
 0x6f6   :  { %v4538_v26 = vld [vmem:[#allocation1 + $0x2] ss:$4 sm:$0xff] }
 0x6f7   :  { %5750 = vst [vmem:[#allocation8_spill] sm:$0xff] %v4538_v26 }
 0x6f8   :  { %1573 = vst.sshfl [vmem:[#allocation1] sm:$0xff pattern:$0x73625140] %v4529_v52 }
 0x6ff   :  { %v4541_v28 = vld [vmem:[#allocation1 + $0x2] ss:$4 sm:$0xff] }
 0x700   :  { %1588 = vst.sshfl [vmem:[#allocation1] sm:$0xff pattern:$0x73625140] %v4529_v52 }
 0x707   :  { %v4553_v41 = vld [vmem:[#allocation1 + $0x3] ss:$4 sm:$0xff] }
 0x708   :  { %1601 = vst.sshfl [vmem:[#allocation1] sm:$0xff pattern:$0x73625140] %v4529_v52 }
 0x70f   :  { %v4556_v24 = vld [vmem:[#allocation1 + $0x3] ss:$4 sm:$0xff] }
 0x710   :  { %1633 = vst.sshfl [vmem:[#allocation1] sm:$0xff pattern:$0x73625140] %v4558_v55 }
 0x717   :  { %v4561_v57 = vld [vmem:[#allocation1 + $0x1] ss:$4 sm:$0xff] }
 0x718   :  { %5752 = vst [vmem:[#allocation10_spill] sm:$0xff] %v4561_v57 }
 0x719   :  { %1646 = vst.sshfl [vmem:[#allocation1] sm:$0xff pattern:$0x73625140] %v4558_v55 }
 0x720   :  { %v4564_v49 = vld [vmem:[#allocation1 + $0x1] ss:$4 sm:$0xff] }
 0x721   :  { %5753 = vst [vmem:[#allocation11_spill] sm:$0xff] %v4564_v49 }
 0x722   :  { %1661 = vst.sshfl [vmem:[#allocation1] sm:$0xff pattern:$0x73625140] %v4558_v55 }
 0x729   :  { %v4567_v63 = vld [vmem:[#allocation1 + $0x2] ss:$4 sm:$0xff] }
 0x72a   :  { %1674 = vst.sshfl [vmem:[#allocation1] sm:$0xff pattern:$0x73625140] %v4558_v55 }
 0x731   :  { %v4570_v58 = vld [vmem:[#allocation1 + $0x2] ss:$4 sm:$0xff] }
 0x732   :  { %5754 = vst [vmem:[#allocation12_spill] sm:$0xff] %v4570_v58 }
 0x733   :  { %1689 = vst.sshfl [vmem:[#allocation1] sm:$0xff pattern:$0x73625140] %v4558_v55 }
 0x73a   :  { %v4573_v50 = vld [vmem:[#allocation1 + $0x3] ss:$4 sm:$0xff] }
 0x73b   :  { %5755 = vst [vmem:[#allocation13_spill] sm:$0xff] %v4573_v50 }
 0x73c   :  { %1697 = vst.sshfl [vmem:[#allocation1] sm:$0xff pattern:$0x73625140] %v4558_v55 }
 0x743   :  { %v4576_v25 = vld [vmem:[#allocation1 + $0x3] ss:$4 sm:$0xff] }
 0x744   :  { %5756 = vst [vmem:[#allocation14_spill] sm:$0xff] %v4576_v25 }
 0x745   :  { %1711 = vst [vmem:[#allocation1] sm:$0xff] %v3590_v17 }
 0x746   :  { %1712 = vst [vmem:[#allocation1 + $0x9] sm:$0xff] %v3585_v15 }
 0x74d   :  { %v1714_v10 = vld [vmem:[#allocation1 + $0x1] ss:$9 sm:$0xff] }
 0x74e   :  { %1718 = vst [vmem:[#allocation1] sm:$0xff] %v3613_v30 }
 0x74f   :  { %1719 = vst [vmem:[#allocation1 + $0x9] sm:$0xff] %v3611_v29 }
 0x750   :  { %1716 = vst.msk [vmem:[#allocation2] ss:$8 sm:$0x3] %vm3594_vm6, %v1714_v10 }
 0x756   :  { %v1721_v33 = vld [vmem:[#allocation1 + $0x1] ss:$9 sm:$0xff] }
 0x757   :  { %1725 = vst [vmem:[#allocation1] sm:$0xff] %v3590_v17 }
 0x758   :  { %1726 = vst [vmem:[#allocation1 + $0x9] sm:$0xff] %v3585_v15 }
 0x759   :  { %1723 = vst.msk [vmem:[#allocation2 + $0x1] ss:$8 sm:$0x3] %vm3594_vm6, %v1721_v33 }
 0x75f   :  { %v4588_v54 = vld [vmem:[#allocation1 + $0x1] ss:$9 sm:$0xff] }
 0x760   :  { %1736 = vst [vmem:[#allocation1] sm:$0xff] %v3613_v30 }
 0x761   :  { %1737 = vst [vmem:[#allocation1 + $0x9] sm:$0xff] %v3611_v29 }
 0x768   :  { %v4592_v34 = vld [vmem:[#allocation1 + $0x1] ss:$9 sm:$0xff] }
 0x769   :  { %1747 = vst [vmem:[#allocation1] sm:$0xff] %v3590_v17 }
 0x76a   :  { %1748 = vst [vmem:[#allocation1 + $0x9] sm:$0xff] %v3585_v15 }
 0x771   :  { %v4596_v14 = vld [vmem:[#allocation1 + $0x1] ss:$9 sm:$0xff] }
 0x772   :  { %1758 = vst [vmem:[#allocation1] sm:$0xff] %v3613_v30 }
 0x773   :  { %1759 = vst [vmem:[#allocation1 + $0x9] sm:$0xff] %v3611_v29 }
 0x77a   :  { %v4600_v44 = vld [vmem:[#allocation1 + $0x1] ss:$9 sm:$0xff] }
 0x77b   :  { %1769 = vst [vmem:[#allocation1] sm:$0xff] %v3590_v17 }
 0x77c   :  { %1770 = vst [vmem:[#allocation1 + $0x9] sm:$0xff] %v3585_v15 }
 0x783   :  { %v4604_v60 = vld [vmem:[#allocation1 + $0x1] ss:$9 sm:$0xff] }
 0x784   :  { %1780 = vst [vmem:[#allocation1] sm:$0xff] %v3613_v30 }
 0x785   :  { %1781 = vst [vmem:[#allocation1 + $0x9] sm:$0xff] %v3611_v29 }
 0x78c   :  { %v4608_v10 = vld [vmem:[#allocation1 + $0x1] ss:$9 sm:$0xff] }
 0x78d   :  { %1791 = vst [vmem:[#allocation1] sm:$0xff] %v3590_v17 }
 0x78e   :  { %1792 = vst [vmem:[#allocation1 + $0x9] sm:$0xff] %v3585_v15 }
 0x795   :  { %v1794_v33 = vld [vmem:[#allocation1 + $0x1] ss:$9 sm:$0xff] }
 0x796   :  { %1802 = vst [vmem:[#allocation1] sm:$0xff] %v3613_v30  ;;  %1795 = vrot.lane.b32.xlu2 %v1794_v33, %s3469_s14 }
 0x797   :  { %1803 = vst [vmem:[#allocation1 + $0x9] sm:$0xff] %v3611_v29 }
 0x79e   :  { %v1805_v42 = vld [vmem:[#allocation1 + $0x1] ss:$9 sm:$0xff] }
 0x79f   :  { %1813 = vst [vmem:[#allocation1] sm:$0xff] %v3590_v17  ;;  %1806 = vrot.lane.b32.xlu1 %v1805_v42, %s3469_s14 }
 0x7a0   :  { %1814 = vst [vmem:[#allocation1 + $0x9] sm:$0xff] %v3585_v15 }
 0x7a7   :  { %v1816_v50 = vld [vmem:[#allocation1 + $0x1] ss:$9 sm:$0xff] }
 0x7a8   :  { %1824 = vst [vmem:[#allocation1] sm:$0xff] %v3613_v30  ;;  %1817 = vrot.lane.b32.xlu0 %v1816_v50, %s5728_s18 }
 0x7a9   :  { %1825 = vst [vmem:[#allocation1 + $0x9] sm:$0xff] %v3611_v29 }
 0x7b0   :  { %v1827_v27 = vld [vmem:[#allocation1 + $0x1] ss:$9 sm:$0xff] }
 0x7b1   :  { %1835 = vst [vmem:[#allocation1] sm:$0xff] %v3590_v17  ;;  %1828 = vrot.lane.b32.xlu2 %v1827_v27, %s5728_s18  ;;  %s5771_s18 = smov 109  }
 0x7b2   :  { %1836 = vst [vmem:[#allocation1 + $0x9] sm:$0xff] %v3585_v15 }
 0x7b9   :  { %v1838_v33 = vld [vmem:[#allocation1 + $0x1] ss:$9 sm:$0xff] }
 0x7ba   :  { %1846 = vst [vmem:[#allocation1] sm:$0xff] %v3613_v30  ;;  %1839 = vrot.lane.b32.xlu1 %v1838_v33, %s5724_s22 }
 0x7bb   :  { %1847 = vst [vmem:[#allocation1 + $0x9] sm:$0xff] %v3611_v29 }
 0x7c2   :  { %v1849_v42 = vld [vmem:[#allocation1 + $0x1] ss:$9 sm:$0xff] }
 0x7c3   :  { %1857 = vst [vmem:[#allocation1] sm:$0xff] %v3590_v17  ;;  %1850 = vrot.lane.b32.xlu0 %v1849_v42, %s5724_s22  ;;  %s5777_s22 = smov 107  }
 0x7c4   :  { %1858 = vst [vmem:[#allocation1 + $0x9] sm:$0xff] %v3585_v15 }
 0x7cb   :  { %v1860_v50 = vld [vmem:[#allocation1 + $0x1] ss:$9 sm:$0xff] }
 0x7cc   :  { %1868 = vst [vmem:[#allocation1] sm:$0xff] %v3613_v30  ;;  %1861 = vrot.lane.b32.xlu2 %v1860_v50, %s3470_s5 }
 0x7cd   :  { %1869 = vst [vmem:[#allocation1 + $0x9] sm:$0xff] %v3611_v29 }
 0x7d4   :  { %v1871_v27 = vld [vmem:[#allocation1 + $0x1] ss:$9 sm:$0xff] }
 0x7d5   :  { %1879 = vst [vmem:[#allocation1] sm:$0xff] %v3590_v17  ;;  %1872 = vrot.lane.b32.xlu1 %v1871_v27, %s3470_s5  ;;  %s5764_s5 = smov 112  }
 0x7d6   :  { %1880 = vst [vmem:[#allocation1 + $0x9] sm:$0xff] %v3585_v15 }
 0x7dd   :  { %v1882_v33 = vld [vmem:[#allocation1 + $0x1] ss:$9 sm:$0xff] }
 0x7de   :  { %1890 = vst [vmem:[#allocation1] sm:$0xff] %v3613_v30  ;;  %1883 = vrot.lane.b32.xlu1 %v1882_v33, %s3455_s0 }
 0x7df   :  { %1891 = vst [vmem:[#allocation1 + $0x9] sm:$0xff] %v3611_v29 }
 0x7e6   :  { %v1893_v42 = vld [vmem:[#allocation1 + $0x1] ss:$9 sm:$0xff] }
 0x7e7   :  { %1901 = vst [vmem:[#allocation1] sm:$0xff] %v3590_v17  ;;  %1894 = vrot.lane.b32.xlu0 %v1893_v42, %s3455_s0  ;;  %s5788_s0 = smov 103  }
 0x7e8   :  { %1902 = vst [vmem:[#allocation1 + $0x9] sm:$0xff] %v3585_v15 }
 0x7ef   :  { %v1904_v50 = vld [vmem:[#allocation1 + $0x1] ss:$9 sm:$0xff] }
 0x7f0   :  { %1912 = vst [vmem:[#allocation1] sm:$0xff] %v3613_v30  ;;  %1905 = vrot.lane.b32.xlu2 %v1904_v50, %s3468_s2  ;;  %v1796_v27 = vpop.permute.xlu2 %1795 }
 0x7f1   :  { %1913 = vst [vmem:[#allocation1 + $0x9] sm:$0xff] %v3611_v29  ;;  %v1797_v25 = vrot.slane %v1796_v27, 1 }
 0x7f3   :  { %v1798_v33 = vsel %vm481_vm2, %v1796_v27, %v1797_v25 }
 0x7f4   :  { %1800 = vst.msk [vmem:[#allocation2 + $0x10] ss:$8 sm:$0x3] %vm3594_vm6, %v1798_v33 }
 0x7f8   :  { %v1915_v58 = vld [vmem:[#allocation1 + $0x1] ss:$9 sm:$0xff] }
 0x7f9   :  { %1916 = vrot.lane.b32.xlu1 %v1915_v58, %s3468_s2  ;;  %1923 = vst [vmem:[#allocation1] sm:$0xff] %v3590_v17  ;;  %s5790_s2 = smov 102  }
 0x7fa   :  { %1924 = vst [vmem:[#allocation1 + $0x9] sm:$0xff] %v3585_v15 }
 0x801   :  { %v1926_v42 = vld [vmem:[#allocation1 + $0x1] ss:$9 sm:$0xff] }
 0x802   :  { %1927 = vrot.lane.b32.xlu0 %v1926_v42, %s5727_s3  ;;  %1934 = vst [vmem:[#allocation1] sm:$0xff] %v3613_v30 }
 0x803   :  { %1935 = vst [vmem:[#allocation1 + $0x9] sm:$0xff] %v3611_v29 }
 0x80a   :  { %v1937_v50 = vld [vmem:[#allocation1 + $0x1] ss:$9 sm:$0xff] }
 0x80b   :  { %1938 = vrot.lane.b32.xlu2 %v1937_v50, %s5727_s3  ;;  %1945 = vst [vmem:[#allocation1] sm:$0xff] %v3590_v17  ;;  %v1829_v25 = vpop.permute.xlu2 %1828  ;;  %s5759_s3 = smov 114  }
 0x80c   :  { %1946 = vst [vmem:[#allocation1 + $0x9] sm:$0xff] %v3585_v15  ;;  %v1830_v58 = vrot.slane %v1829_v25, 1 }
 0x80e   :  { %v1831_v27 = vsel %vm498_vm4, %v1829_v25, %v1830_v58 }
 0x80f   :  { %1833 = vst.msk [vmem:[#allocation2 + $0x13] ss:$8 sm:$0x3] %vm3594_vm6, %v1831_v27 }
 0x811   :  { %v1807_v33 = vpop.permute.xlu1 %1806 }
 0x812   :  { %v1808_v42 = vrot.slane %v1807_v33, 1 }
 0x813   :  { %v1948_v49 = vld [vmem:[#allocation1 + $0x1] ss:$9 sm:$0xff] }
 0x814   :  { %1949 = vrot.lane.b32.xlu1 %v1948_v49, %s5722_s16  ;;  %1956 = vst [vmem:[#allocation1] sm:$0xff] %v3613_v30  ;;  %v1809_v50 = vsel %vm481_vm2, %v1807_v33, %v1808_v42 }
 0x815   :  { %1957 = vst [vmem:[#allocation1 + $0x9] sm:$0xff] %v3611_v29 }
 0x816   :  { %1811 = vst.msk [vmem:[#allocation2 + $0x11] ss:$8 sm:$0x3] %vm3594_vm6, %v1809_v50 }
 0x81a   :  { %v1818_v57 = vpop.permute.xlu0 %1817 }
 0x81b   :  { %v1819_v26 = vrot.slane %v1818_v57, 1 }
 0x81c   :  { %v1959_v25 = vld [vmem:[#allocation1 + $0x1] ss:$9 sm:$0xff] }
 0x81d   :  { %1960 = vrot.lane.b32.xlu0 %v1959_v25, %s5722_s16  ;;  %1967 = vst [vmem:[#allocation1] sm:$0xff] %v3590_v17  ;;  %v1820_v58 = vsel %vm498_vm4, %v1818_v57, %v1819_v26  ;;  %vm5757_vm4 = vcmask 998400   ;;  %s5768_s16 = smov 110  }
 0x81e   :  { %1968 = vst [vmem:[#allocation1 + $0x9] sm:$0xff] %v3585_v15  ;;  %vm5758_vm7 = vmmov %vm5757_vm4 }
 0x81f   :  { %1822 = vst.msk [vmem:[#allocation2 + $0x12] ss:$8 sm:$0x3] %vm3594_vm6, %v1820_v58 }
 0x825   :  { %v1970_v49 = vld [vmem:[#allocation1 + $0x1] ss:$9 sm:$0xff] }
 0x826   :  { %1971 = vrot.lane.b32.xlu0 %v1970_v49, %s5725_s19  ;;  %1978 = vst [vmem:[#allocation1] sm:$0xff] %v3613_v30  ;;  %v1862_v27 = vpop.permute.xlu2 %1861 }
 0x827   :  { %1979 = vst [vmem:[#allocation1 + $0x9] sm:$0xff] %v3611_v29  ;;  %v1863_v33 = vrot.slane %v1862_v27, 1 }
 0x829   :  { %v1864_v42 = vsel %vm532_vm5, %v1862_v27, %v1863_v33 }
 0x82a   :  { %1866 = vst.msk [vmem:[#allocation2 + $0x16] ss:$8 sm:$0x3] %vm3594_vm6, %v1864_v42 }
 0x82c   :  { %v1840_v26 = vpop.permute.xlu1 %1839 }
 0x82d   :  { %v1841_v57 = vrot.slane %v1840_v26, 1 }
 0x82e   :  { %v1981_v50 = vld [vmem:[#allocation1 + $0x1] ss:$9 sm:$0xff] }
 0x82f   :  { %1982 = vrot.lane.b32.xlu2 %v1981_v50, %s5725_s19  ;;  %1989 = vst [vmem:[#allocation1] sm:$0xff] %v3590_v17  ;;  %v1842_v25 = vsel %vm5757_vm4, %v1840_v26, %v1841_v57  ;;  %s5774_s19 = smov 108  }
 0x830   :  { %1990 = vst [vmem:[#allocation1 + $0x9] sm:$0xff] %v3585_v15 }
 0x831   :  { %1844 = vst.msk [vmem:[#allocation2 + $0x14] ss:$8 sm:$0x3] %vm3594_vm6, %v1842_v25 }
 0x835   :  { %v1851_v58 = vpop.permute.xlu0 %1850 }
 0x836   :  { %v1852_v49 = vrot.slane %v1851_v58, 1 }
 0x837   :  { %v1992_v27 = vld [vmem:[#allocation1 + $0x1] ss:$9 sm:$0xff] }
 0x838   :  { %1993 = vrot.lane.b32.xlu1 %v1992_v27, %s3452_s26  ;;  %2000 = vst [vmem:[#allocation1] sm:$0xff] %v3613_v30  ;;  %v1853_v33 = vsel %vm5758_vm7, %v1851_v58, %v1852_v49  ;;  %vm5763_vm7 = vcmask 965632  }
 0x839   :  { %2001 = vst [vmem:[#allocation1 + $0x9] sm:$0xff] %v3611_v29 }
 0x83a   :  { %1855 = vst.msk [vmem:[#allocation2 + $0x15] ss:$8 sm:$0x3] %vm3594_vm6, %v1853_v33 }
 0x840   :  { %v2003_v42 = vld [vmem:[#allocation1 + $0x1] ss:$9 sm:$0xff] }
 0x841   :  { %2004 = vrot.lane.b32.xlu0 %v2003_v42, %s3452_s26  ;;  %2011 = vst [vmem:[#allocation1] sm:$0xff] %v3590_v17  ;;  %s5782_s26 = smov 105  }
 0x842   :  { %2012 = vst [vmem:[#allocation1 + $0x9] sm:$0xff] %v3585_v15 }
 0x847   :  { %v1873_v26 = vpop.permute.xlu1 %1872 }
 0x848   :  { %v1874_v57 = vrot.slane %v1873_v26, 1 }
 0x849   :  { %v2014_v50 = vld [vmem:[#allocation1 + $0x1] ss:$9 sm:$0xff] }
 0x84a   :  { %2015 = vrot.lane.b32.xlu2 %v2014_v50, %s5759_s3  ;;  %2022 = vst [vmem:[#allocation1] sm:$0xff] %v3613_v30  ;;  %v1875_v25 = vsel %vm532_vm5, %v1873_v26, %v1874_v57  ;;  %v1906_v58 = vpop.permute.xlu2 %1905  ;;  %vm5761_vm5 = vcmask 982016  }
 0x84b   :  { %2023 = vst [vmem:[#allocation1 + $0x9] sm:$0xff] %v3611_v29  ;;  %v1907_v49 = vrot.slane %v1906_v58, 1  ;;  %vm5762_vm4 = vmmov %vm5761_vm5 }
 0x84c   :  { %1877 = vst.msk [vmem:[#allocation2 + $0x17] ss:$8 sm:$0x3] %vm3594_vm6, %v1875_v25 }
 0x84d   :  { %v1908_v27 = vsel %vm5760_vm12, %v1906_v58, %v1907_v49 }
 0x84e   :  { %1910 = vst.msk [vmem:[#allocation2 + $0x22] ss:$8 sm:$0x3] %vm3594_vm6, %v1908_v27 }
 0x850   :  { %v1884_v33 = vpop.permute.xlu1 %1883 }
 0x851   :  { %v1885_v42 = vrot.slane %v1884_v33, 1 }
 0x852   :  { %v2025_v55 = vld [vmem:[#allocation1 + $0x1] ss:$9 sm:$0xff] }
 0x853   :  { %2026 = vrot.lane.b32.xlu1 %v2025_v55, %s5759_s3  ;;  %2033 = vst [vmem:[#allocation1] sm:$0xff] %v3590_v17  ;;  %v1886_v26 = vsel %vm5761_vm5, %v1884_v33, %v1885_v42  ;;  %vm5765_vm5 = vmmov %vm5763_vm7 }
 0x854   :  { %2034 = vst [vmem:[#allocation1 + $0x9] sm:$0xff] %v3585_v15 }
 0x855   :  { %1888 = vst.msk [vmem:[#allocation2 + $0x20] ss:$8 sm:$0x3] %vm3594_vm6, %v1886_v26 }
 0x859   :  { %v1895_v57 = vpop.permute.xlu0 %1894 }
 0x85a   :  { %v1896_v50 = vrot.slane %v1895_v57, 1 }
 0x85b   :  { %v2036_v25 = vld [vmem:[#allocation1 + $0x1] ss:$9 sm:$0xff] }
 0x85c   :  { %2037 = vrot.lane.b32.xlu0 %v2036_v25, %s5726_s28  ;;  %2044 = vst [vmem:[#allocation1] sm:$0xff] %v3613_v30  ;;  %v1897_v58 = vsel %vm5762_vm4, %v1895_v57, %v1896_v50  ;;  %vm5766_vm4 = vcmask 957440  }
 0x85d   :  { %2045 = vst [vmem:[#allocation1 + $0x9] sm:$0xff] %v3611_v29 }
 0x85e   :  { %1899 = vst.msk [vmem:[#allocation2 + $0x21] ss:$8 sm:$0x3] %vm3594_vm6, %v1897_v58 }
 0x864   :  { %v2047_v55 = vld [vmem:[#allocation1 + $0x1] ss:$9 sm:$0xff] }
 0x865   :  { %2048 = vrot.lane.b32.xlu2 %v2047_v55, %s5726_s28  ;;  %2055 = vst [vmem:[#allocation1] sm:$0xff] %v3590_v17  ;;  %v1939_v49 = vpop.permute.xlu2 %1938  ;;  %s5785_s28 = smov 104  }
 0x866   :  { %2056 = vst [vmem:[#allocation1 + $0x9] sm:$0xff] %v3585_v15  ;;  %v1940_v27 = vrot.slane %v1939_v49, 1 }
 0x868   :  { %v1941_v33 = vsel %vm5763_vm7, %v1939_v49, %v1940_v27  ;;  %vm5767_vm7 = vcmask 949248  }
 0x869   :  { %1943 = vst.msk [vmem:[#allocation2 + $0x25] ss:$8 sm:$0x3] %vm3594_vm6, %v1941_v33 }
 0x86b   :  { %v1917_v42 = vpop.permute.xlu1 %1916 }
 0x86c   :  { %v1918_v26 = vrot.slane %v1917_v42, 1 }
 0x86d   :  { %v2058_v57 = vld [vmem:[#allocation1 + $0x1] ss:$9 sm:$0xff] }
 0x86e   :  { %2059 = vrot.lane.b32.xlu2 %v2058_v57, %s5764_s5  ;;  %2066 = vst [vmem:[#allocation1] sm:$0xff] %v3613_v30  ;;  %v1919_v50 = vsel %vm5760_vm12, %v1917_v42, %v1918_v26  ;;  %vm5769_vm12 = vmmov %vm5766_vm4 }
 0x86f   :  { %2067 = vst [vmem:[#allocation1 + $0x9] sm:$0xff] %v3611_v29 }
 0x870   :  { %1921 = vst.msk [vmem:[#allocation2 + $0x23] ss:$8 sm:$0x3] %vm3594_vm6, %v1919_v50 }
 0x874   :  { %v1928_v25 = vpop.permute.xlu0 %1927 }
 0x875   :  { %v1929_v58 = vrot.slane %v1928_v25, 1 }
 0x876   :  { %v2069_v55 = vld [vmem:[#allocation1 + $0x1] ss:$9 sm:$0xff] }
 0x877   :  { %2070 = vrot.lane.b32.xlu1 %v2069_v55, %s5764_s5  ;;  %2077 = vst [vmem:[#allocation1] sm:$0xff] %v3590_v17  ;;  %v1930_v49 = vsel %vm5765_vm5, %v1928_v25, %v1929_v58  ;;  %vm5770_vm5 = vmmov %vm5767_vm7 }
 0x878   :  { %2078 = vst [vmem:[#allocation1 + $0x9] sm:$0xff] %v3585_v15 }
 0x879   :  { %1932 = vst.msk [vmem:[#allocation2 + $0x24] ss:$8 sm:$0x3] %vm3594_vm6, %v1930_v49 }
 0x87f   :  { %v2080_v27 = vld [vmem:[#allocation1 + $0x1] ss:$9 sm:$0xff] }
 0x880   :  { %2081 = vrot.lane.b32.xlu0 %v2080_v27, %s5723_s25  ;;  %2088 = vst [vmem:[#allocation1] sm:$0xff] %v3613_v30 }
 0x881   :  { %2089 = vst [vmem:[#allocation1 + $0x9] sm:$0xff] %v3611_v29 }
 0x886   :  { %v1950_v33 = vpop.permute.xlu1 %1949 }
 0x887   :  { %v1951_v42 = vrot.slane %v1950_v33, 1 }
 0x888   :  { %v2091_v26 = vld [vmem:[#allocation1 + $0x1] ss:$9 sm:$0xff] }
 0x889   :  { %2092 = vrot.lane.b32.xlu2 %v2091_v26, %s5723_s25  ;;  %2099 = vst [vmem:[#allocation1] sm:$0xff] %v3590_v17  ;;  %v1952_v57 = vsel %vm5766_vm4, %v1950_v33, %v1951_v42  ;;  %v1983_v50 = vpop.permute.xlu2 %1982  ;;  %vm5772_vm4 = vcmask 932864   ;;  %s5780_s25 = smov 106  }
 0x88a   :  { %2100 = vst [vmem:[#allocation1 + $0x9] sm:$0xff] %v3585_v15  ;;  %v1984_v25 = vrot.slane %v1983_v50, 1 }
 0x88b   :  { %1954 = vst.msk [vmem:[#allocation2 + $0x26] ss:$8 sm:$0x3] %vm3594_vm6, %v1952_v57 }
 0x88c   :  { %v1985_v58 = vsel %vm5767_vm7, %v1983_v50, %v1984_v25  ;;  %vm5773_vm7 = vcmask 941056  }
 0x88d   :  { %1987 = vst.msk [vmem:[#allocation2 + $0x31] ss:$8 sm:$0x3] %vm3594_vm6, %v1985_v58 }
 0x88f   :  { %v1961_v55 = vpop.permute.xlu0 %1960 }
 0x890   :  { %v1962_v49 = vrot.slane %v1961_v55, 1 }
 0x891   :  { %v2102_v27 = vld [vmem:[#allocation1 + $0x1] ss:$9 sm:$0xff] }
 0x892   :  { %2103 = vrot.lane.b32.xlu1 %v2102_v27, %s5768_s16  ;;  %2110 = vst [vmem:[#allocation1] sm:$0xff] %v3613_v30  ;;  %v1963_v33 = vsel %vm5769_vm12, %v1961_v55, %v1962_v49  ;;  %vm5775_vm12 = vmmov %vm5773_vm7 }
 0x893   :  { %2111 = vst [vmem:[#allocation1 + $0x9] sm:$0xff] %v3611_v29 }
 0x894   :  { %1965 = vst.msk [vmem:[#allocation2 + $0x27] ss:$8 sm:$0x3] %vm3594_vm6, %v1963_v33 }
 0x898   :  { %v1972_v42 = vpop.permute.xlu0 %1971 }
 0x899   :  { %v1973_v26 = vrot.slane %v1972_v42, 1 }
 0x89a   :  { %v2113_v57 = vld [vmem:[#allocation1 + $0x1] ss:$9 sm:$0xff] }
 0x89b   :  { %2114 = vrot.lane.b32.xlu0 %v2113_v57, %s5768_s16  ;;  %2121 = vst [vmem:[#allocation1] sm:$0xff] %v3590_v17  ;;  %v1974_v50 = vsel %vm5770_vm5, %v1972_v42, %v1973_v26  ;;  %vm5776_vm5 = vcmask 924672  }
 0x89c   :  { %2122 = vst [vmem:[#allocation1 + $0x9] sm:$0xff] %v3585_v15 }
 0x89d   :  { %1976 = vst.msk [vmem:[#allocation2 + $0x30] ss:$8 sm:$0x3] %vm3594_vm6, %v1974_v50 }
 0x8a3   :  { %v2124_v25 = vld [vmem:[#allocation1 + $0x1] ss:$9 sm:$0xff] }
 0x8a4   :  { %2125 = vrot.lane.b32.xlu2 %v2124_v25, %s5771_s18  ;;  %2132 = vst [vmem:[#allocation1] sm:$0xff] %v3613_v30  ;;  %v2016_v58 = vpop.permute.xlu2 %2015 }
 0x8a5   :  { %2133 = vst [vmem:[#allocation1 + $0x9] sm:$0xff] %v3611_v29  ;;  %v2017_v55 = vrot.slane %v2016_v58, 1 }
 0x8a7   :  { %v2018_v49 = vsel %vm5772_vm4, %v2016_v58, %v2017_v55 }
 0x8a8   :  { %2020 = vst.msk [vmem:[#allocation2 + $0x34] ss:$8 sm:$0x3] %vm3594_vm6, %v2018_v49 }
 0x8aa   :  { %v1994_v27 = vpop.permute.xlu1 %1993 }
 0x8ab   :  { %v1995_v33 = vrot.slane %v1994_v27, 1 }
 0x8ac   :  { %v2135_v42 = vld [vmem:[#allocation1 + $0x1] ss:$9 sm:$0xff] }
 0x8ad   :  { %2136 = vrot.lane.b32.xlu1 %v2135_v42, %s5771_s18  ;;  %2143 = vst [vmem:[#allocation1] sm:$0xff] %v3590_v17  ;;  %v1996_v26 = vsel %vm5773_vm7, %v1994_v27, %v1995_v33  ;;  %vm5778_vm7 = vcmask 916480  }
 0x8ae   :  { %2144 = vst [vmem:[#allocation1 + $0x9] sm:$0xff] %v3585_v15 }
 0x8af   :  { %1998 = vst.msk [vmem:[#allocation2 + $0x32] ss:$8 sm:$0x3] %vm3594_vm6, %v1996_v26 }
 0x8b3   :  { %v2005_v57 = vpop.permute.xlu0 %2004 }
 0x8b4   :  { %v2006_v50 = vrot.slane %v2005_v57, 1 }
 0x8b5   :  { %v2146_v25 = vld [vmem:[#allocation1 + $0x1] ss:$9 sm:$0xff] }
 0x8b6   :  { %2147 = vrot.lane.b32.xlu1 %v2146_v25, %s5774_s19  ;;  %2154 = vst [vmem:[#allocation1] sm:$0xff] %v3613_v30  ;;  %v2007_v58 = vsel %vm5775_vm12, %v2005_v57, %v2006_v50  ;;  %vm5779_vm12 = vmmov %vm5776_vm5 }
 0x8b7   :  { %2155 = vst [vmem:[#allocation1 + $0x9] sm:$0xff] %v3611_v29 }
 0x8b8   :  { %2009 = vst.msk [vmem:[#allocation2 + $0x33] ss:$8 sm:$0x3] %vm3594_vm6, %v2007_v58 }
 0x8be   :  { %v2157_v55 = vld [vmem:[#allocation1 + $0x1] ss:$9 sm:$0xff] }
 0x8bf   :  { %2158 = vrot.lane.b32.xlu0 %v2157_v55, %s5774_s19  ;;  %2165 = vst [vmem:[#allocation1] sm:$0xff] %v3590_v17  ;;  %v2049_v49 = vpop.permute.xlu2 %2048  ;;  %s3059_s19 = sshll.u32 %s5576_s13, 4  ;;  %s3060_s19 = int_to_ptr.hbm [resolvable:$true] %s3059_s19 }
 0x8c0   :  { %2166 = vst [vmem:[#allocation1 + $0x9] sm:$0xff] %v3585_v15  ;;  %v2050_v27 = vrot.slane %v2049_v49, 1 }
 0x8c2   :  { %v2051_v33 = vsel %vm5776_vm5, %v2049_v49, %v2050_v27  ;;  %vm5781_vm5 = vcmask 908288  }
 0x8c3   :  { %2053 = vst.msk [vmem:[#allocation2 + $0x37] ss:$8 sm:$0x3] %vm3594_vm6, %v2051_v33 }
 0x8c5   :  { %v2027_v42 = vpop.permute.xlu1 %2026 }
 0x8c6   :  { %v2028_v26 = vrot.slane %v2027_v42, 1 }
 0x8c7   :  { %v2168_v57 = vld [vmem:[#allocation1 + $0x1] ss:$9 sm:$0xff] }
 0x8c8   :  { %2169 = vrot.lane.b32.xlu2 %v2168_v57, %s5777_s22  ;;  %2176 = vst [vmem:[#allocation1] sm:$0xff] %v3613_v30  ;;  %v2029_v50 = vsel %vm5772_vm4, %v2027_v42, %v2028_v26  ;;  %v2060_v25 = vpop.permute.xlu2 %2059  ;;  %vm5783_vm4 = vmmov %vm5778_vm7 }
 0x8c9   :  { %2177 = vst [vmem:[#allocation1 + $0x9] sm:$0xff] %v3611_v29  ;;  %v2061_v58 = vrot.slane %v2060_v25, 1 }
 0x8ca   :  { %2031 = vst.msk [vmem:[#allocation2 + $0x35] ss:$8 sm:$0x3] %vm3594_vm6, %v2029_v50 }
 0x8cb   :  { %v2062_v55 = vsel %vm5778_vm7, %v2060_v25, %v2061_v58  ;;  %vm5784_vm7 = vmmov %vm5781_vm5 }
 0x8cc   :  { %2064 = vst.msk [vmem:[#allocation2 + $0x40] ss:$8 sm:$0x3] %vm3594_vm6, %v2062_v55 }
 0x8ce   :  { %v2038_v49 = vpop.permute.xlu0 %2037 }
 0x8cf   :  { %v2039_v27 = vrot.slane %v2038_v49, 1 }
 0x8d0   :  { %v2179_v33 = vld [vmem:[#allocation1 + $0x1] ss:$9 sm:$0xff] }
 0x8d1   :  { %2180 = vrot.lane.b32.xlu1 %v2179_v33, %s5777_s22  ;;  %2187 = vst [vmem:[#allocation1] sm:$0xff] %v3590_v17  ;;  %v2040_v42 = vsel %vm5779_vm12, %v2038_v49, %v2039_v27  ;;  %vm5786_vm12 = vcmask 891904  }
 0x8d2   :  { %2188 = vst [vmem:[#allocation1 + $0x9] sm:$0xff] %v3585_v15 }
 0x8d3   :  { %2042 = vst.msk [vmem:[#allocation2 + $0x36] ss:$8 sm:$0x3] %vm3594_vm6, %v2040_v42 }
 0x8d9   :  { %v2190_v26 = vld [vmem:[#allocation1 + $0x1] ss:$9 sm:$0xff] }
 0x8da   :  { %2191 = vrot.lane.b32.xlu0 %v2190_v26, %s5780_s25  ;;  %2198 = vst [vmem:[#allocation1] sm:$0xff] %v3613_v30 }
 0x8db   :  { %2199 = vst [vmem:[#allocation1 + $0x9] sm:$0xff] %v3611_v29 }
 0x8e2   :  { %v2201_v57 = vld [vmem:[#allocation1 + $0x1] ss:$9 sm:$0xff] }
 0x8e3   :  { %2202 = vrot.lane.b32.xlu2 %v2201_v57, %s5780_s25  ;;  %2209 = vst [vmem:[#allocation1] sm:$0xff] %v3590_v17  ;;  %v2093_v50 = vpop.permute.xlu2 %2092  ;;  %s3482_s25 = smov 2  }
 0x8e4   :  { %2210 = vst [vmem:[#allocation1 + $0x9] sm:$0xff] %v3585_v15  ;;  %v2094_v25 = vrot.slane %v2093_v50, 1 }
 0x8e6   :  { %v2095_v58 = vsel %vm5781_vm5, %v2093_v50, %v2094_v25  ;;  %vm5787_vm5 = vcmask 900096  }
 0x8e7   :  { %2097 = vst.msk [vmem:[#allocation2 + $0x43] ss:$8 sm:$0x3] %vm3594_vm6, %v2095_v58 }
 0x8e9   :  { %v2071_v55 = vpop.permute.xlu1 %2070 }
 0x8ea   :  { %v2072_v49 = vrot.slane %v2071_v55, 1 }
 0x8eb   :  { %v2212_v27 = vld [vmem:[#allocation1 + $0x1] ss:$9 sm:$0xff] }
 0x8ec   :  { %2213 = vrot.lane.b32.xlu1 %v2212_v27, %s5782_s26  ;;  %2220 = vst [vmem:[#allocation1] sm:$0xff] %v3613_v30  ;;  %v2073_v33 = vsel %vm5783_vm4, %v2071_v55, %v2072_v49  ;;  %vm5789_vm4 = vmmov %vm5787_vm5 }
 0x8ed   :  { %2221 = vst [vmem:[#allocation1 + $0x9] sm:$0xff] %v3611_v29 }
 0x8ee   :  { %2075 = vst.msk [vmem:[#allocation2 + $0x41] ss:$8 sm:$0x3] %vm3594_vm6, %v2073_v33 }
 0x8f2   :  { %v2082_v42 = vpop.permute.xlu0 %2081 }
 0x8f3   :  { %v2083_v26 = vrot.slane %v2082_v42, 1 }
 0x8f4   :  { %v2223_v57 = vld [vmem:[#allocation1 + $0x1] ss:$9 sm:$0xff] }
 0x8f5   :  { %2224 = vrot.lane.b32.xlu0 %v2223_v57, %s5782_s26  ;;  %2231 = vst [vmem:[#allocation1] sm:$0xff] %v3590_v17  ;;  %v2084_v50 = vsel %vm5784_vm7, %v2082_v42, %v2083_v26  ;;  %vm5791_vm7 = vmmov %vm5786_vm12  ;;  %s3483_s26 = smov 40  }
 0x8f6   :  { %2232 = vst [vmem:[#allocation1 + $0x9] sm:$0xff] %v3585_v15 }
 0x8f7   :  { %2086 = vst.msk [vmem:[#allocation2 + $0x42] ss:$8 sm:$0x3] %vm3594_vm6, %v2084_v50 }
 0x8fd   :  { %v2234_v25 = vld [vmem:[#allocation1 + $0x1] ss:$9 sm:$0xff] }
 0x8fe   :  { %2235 = vrot.lane.b32.xlu0 %v2234_v25, %s5785_s28  ;;  %2242 = vst [vmem:[#allocation1] sm:$0xff] %v3613_v30  ;;  %v2126_v58 = vpop.permute.xlu2 %2125 }
 0x8ff   :  { %2243 = vst [vmem:[#allocation1 + $0x9] sm:$0xff] %v3611_v29  ;;  %v2127_v55 = vrot.slane %v2126_v58, 1 }
 0x901   :  { %v2128_v49 = vsel %vm5786_vm12, %v2126_v58, %v2127_v55  ;;  %vm5792_vm12 = vcmask 883712  }
 0x902   :  { %2130 = vst.msk [vmem:[#allocation2 + $0x46] ss:$8 sm:$0x3] %vm3594_vm6, %v2128_v49 }
 0x904   :  { %v2104_v27 = vpop.permute.xlu1 %2103 }
 0x905   :  { %v2105_v33 = vrot.slane %v2104_v27, 1 }
 0x906   :  { %v2245_v42 = vld [vmem:[#allocation1 + $0x1] ss:$9 sm:$0xff] }
 0x907   :  { %2246 = vrot.lane.b32.xlu2 %v2245_v42, %s5785_s28  ;;  %2253 = vst [vmem:[#allocation1] sm:$0xff] %v3590_v17  ;;  %v2106_v26 = vsel %vm5787_vm5, %v2104_v27, %v2105_v33  ;;  %vm5794_vm5 = vmmov %vm5792_vm12  ;;  %s3485_s28 = smov 94  }
 0x908   :  { %2254 = vst [vmem:[#allocation1 + $0x9] sm:$0xff] %v3585_v15 }
 0x909   :  { %2108 = vst.msk [vmem:[#allocation2 + $0x44] ss:$8 sm:$0x3] %vm3594_vm6, %v2106_v26 }
 0x90d   :  { %v2115_v57 = vpop.permute.xlu0 %2114 }
 0x90e   :  { %v2116_v50 = vrot.slane %v2115_v57, 1 }
 0x90f   :  { %v2256_v25 = vld [vmem:[#allocation1 + $0x1] ss:$9 sm:$0xff] }
 0x910   :  { %2257 = vrot.lane.b32.xlu1 %v2256_v25, %s5788_s0  ;;  %2264 = vst [vmem:[#allocation1] sm:$0xff] %v3613_v30  ;;  %v2117_v58 = vsel %vm5789_vm4, %v2115_v57, %v2116_v50  ;;  %vm5795_vm4 = vcmask 867328  }
 0x911   :  { %2265 = vst [vmem:[#allocation1 + $0x9] sm:$0xff] %v3611_v29 }
 0x912   :  { %2119 = vst.msk [vmem:[#allocation2 + $0x45] ss:$8 sm:$0x3] %vm3594_vm6, %v2117_v58 }
 0x918   :  { %v2267_v55 = vld [vmem:[#allocation1 + $0x1] ss:$9 sm:$0xff] }
 0x919   :  { %2268 = vrot.lane.b32.xlu0 %v2267_v55, %s5788_s0  ;;  %2275 = vst [vmem:[#allocation1] sm:$0xff] %v3590_v17  ;;  %s3486_s0 = smov 56  }
 0x91a   :  { %2276 = vst [vmem:[#allocation1 + $0x9] sm:$0xff] %v3585_v15 }
 0x91f   :  { %v2137_v49 = vpop.permute.xlu1 %2136 }
 0x920   :  { %v2138_v27 = vrot.slane %v2137_v49, 1 }
 0x921   :  { %v2278_v33 = vld [vmem:[#allocation1 + $0x1] ss:$9 sm:$0xff] }
 0x922   :  { %2279 = vrot.lane.b32.xlu2 %v2278_v33, %s5790_s2  ;;  %2286 = vst [vmem:[#allocation1] sm:$0xff] %v3613_v30  ;;  %v2139_v42 = vsel %vm5791_vm7, %v2137_v49, %v2138_v27  ;;  %v2170_v26 = vpop.permute.xlu2 %2169  ;;  %vm5797_vm7 = vmmov %vm5795_vm4 }
 0x923   :  { %2287 = vst [vmem:[#allocation1 + $0x9] sm:$0xff] %v3611_v29  ;;  %v2171_v57 = vrot.slane %v2170_v26, 1 }
 0x924   :  { %2141 = vst.msk [vmem:[#allocation2 + $0x47] ss:$8 sm:$0x3] %vm3594_vm6, %v2139_v42 }
 0x925   :  { %v2172_v50 = vsel %vm770_vm3, %v2170_v26, %v2171_v57 }
 0x926   :  { %2174 = vst.msk [vmem:[#allocation2 + $0x52] ss:$8 sm:$0x3] %vm3594_vm6, %v2172_v50 }
 0x928   :  { %v2148_v25 = vpop.permute.xlu1 %2147 }
 0x929   :  { %v2149_v58 = vrot.slane %v2148_v25, 1 }
 0x92a   :  { %v2289_v55 = vld [vmem:[#allocation1 + $0x1] ss:$9 sm:$0xff] }
 0x92b   :  { %2290 = vrot.lane.b32.xlu1 %v2289_v55, %s5790_s2  ;;  %2297 = vst [vmem:[#allocation1] sm:$0xff] %v3590_v17  ;;  %v2150_v49 = vsel %vm5792_vm12, %v2148_v25, %v2149_v58  ;;  %s3487_s2 = smov 76  }
 0x92c   :  { %2298 = vst [vmem:[#allocation1 + $0x9] sm:$0xff] %v3585_v15 }
 0x92d   :  { %2152 = vst.msk [vmem:[#allocation2 + $0x50] ss:$8 sm:$0x3] %vm3594_vm6, %v2150_v49 }
 0x931   :  { %v2159_v27 = vpop.permute.xlu0 %2158 }
 0x932   :  { %v2160_v33 = vrot.slane %v2159_v27, 1 }
 0x933   :  { %v2300_v42 = vld [vmem:[#allocation1 + $0x1] ss:$9 sm:$0xff] }
 0x934   :  { %2301 = vrot.lane.b32.xlu0 %v2300_v42, %s5793_s24  ;;  %2308 = vst [vmem:[#allocation1] sm:$0xff] %v3613_v30  ;;  %v2161_v26 = vsel %vm5794_vm5, %v2159_v27, %v2160_v33  ;;  %vm5803_vm5 = vcmask 834560  }
 0x935   :  { %2309 = vst [vmem:[#allocation1 + $0x9] sm:$0xff] %v3611_v29 }
 0x936   :  { %2163 = vst.msk [vmem:[#allocation2 + $0x51] ss:$8 sm:$0x3] %vm3594_vm6, %v2161_v26 }
 0x93c   :  { %v2311_v57 = vld [vmem:[#allocation1 + $0x1] ss:$9 sm:$0xff] }
 0x93d   :  { %2312 = vrot.lane.b32.xlu2 %v2311_v57, %s5793_s24  ;;  %2319 = vst [vmem:[#allocation1] sm:$0xff] %v3590_v17  ;;  %v2203_v50 = vpop.permute.xlu2 %2202  ;;  %s3488_s24 = smov 58  }
 0x93e   :  { %2320 = vst [vmem:[#allocation1 + $0x9] sm:$0xff] %v3585_v15  ;;  %v2204_v25 = vrot.slane %v2203_v50, 1 }
 0x940   :  { %v2205_v58 = vsel %vm5795_vm4, %v2203_v50, %v2204_v25 }
 0x941   :  { %2207 = vst.msk [vmem:[#allocation2 + $0x55] ss:$8 sm:$0x3] %vm3594_vm6, %v2205_v58 }
 0x943   :  { %v2181_v55 = vpop.permute.xlu1 %2180 }
 0x944   :  { %v2182_v49 = vrot.slane %v2181_v55, 1 }
 0x945   :  { %v2322_v27 = vld [vmem:[#allocation1 + $0x1] ss:$9 sm:$0xff] }
 0x946   :  { %2323 = vrot.lane.b32.xlu0 %v2322_v27, %s5796_s10  ;;  %2330 = vst [vmem:[#allocation1] sm:$0xff] %v3613_v30  ;;  %v2183_v33 = vsel %vm770_vm3, %v2181_v55, %v2182_v49  ;;  %vm5799_vm3 = vcmask 859136  }
 0x947   :  { %2331 = vst [vmem:[#allocation1 + $0x9] sm:$0xff] %v3611_v29  ;;  %vm5801_vm12 = vmmov %vm5799_vm3 }
 0x948   :  { %2185 = vst.msk [vmem:[#allocation2 + $0x53] ss:$8 sm:$0x3] %vm3594_vm6, %v2183_v33 }
 0x94c   :  { %v2192_v42 = vpop.permute.xlu0 %2191 }
 0x94d   :  { %v2193_v26 = vrot.slane %v2192_v42, 1 }
 0x94e   :  { %v2333_v57 = vld [vmem:[#allocation1 + $0x1] ss:$9 sm:$0xff] }
 0x94f   :  { %2334 = vrot.lane.b32.xlu1 %v2333_v57, %s5796_s10  ;;  %2341 = vst [vmem:[#allocation1] sm:$0xff] %v3590_v17  ;;  %v2194_v50 = vsel %vm5797_vm7, %v2192_v42, %v2193_v26  ;;  %vm5807_vm7 = vcmask 826368   ;;  %s3489_s10 = smov 22  }
 0x950   :  { %2342 = vst [vmem:[#allocation1 + $0x9] sm:$0xff] %v3585_v15 }
 0x951   :  { %2196 = vst.msk [vmem:[#allocation2 + $0x54] ss:$8 sm:$0x3] %vm3594_vm6, %v2194_v50 }
 0x957   :  { %v2344_v25 = vld [vmem:[#allocation1 + $0x1] ss:$9 sm:$0xff] }
 0x958   :  { %2345 = vrot.lane.b32.xlu0 %v2344_v25, %s5798_s17  ;;  %2352 = vst [vmem:[#allocation1] sm:$0xff] %v3613_v30 }
 0x959   :  { %2353 = vst [vmem:[#allocation1 + $0x9] sm:$0xff] %v3611_v29 }
 0x95e   :  { %v2214_v58 = vpop.permute.xlu1 %2213 }
 0x95f   :  { %v2215_v55 = vrot.slane %v2214_v58, 1 }
 0x960   :  { %v2355_v49 = vld [vmem:[#allocation1 + $0x1] ss:$9 sm:$0xff] }
 0x961   :  { %2356 = vrot.lane.b32.xlu2 %v2355_v49, %s5798_s17  ;;  %2363 = vst [vmem:[#allocation1] sm:$0xff] %v3590_v17  ;;  %v2216_v27 = vsel %vm5799_vm3, %v2214_v58, %v2215_v55  ;;  %v2247_v33 = vpop.permute.xlu2 %2246  ;;  %vm5808_vm3 = vmmov %vm5803_vm5 }
 0x962   :  { %2364 = vst [vmem:[#allocation1 + $0x9] sm:$0xff] %v3585_v15  ;;  %v2248_v42 = vrot.slane %v2247_v33, 1 }
 0x963   :  { %2218 = vst.msk [vmem:[#allocation2 + $0x56] ss:$8 sm:$0x3] %vm3594_vm6, %v2216_v27 }
 0x964   :  { %v2249_v26 = vsel %vm821_vm14, %v2247_v33, %v2248_v42 }
 0x965   :  { %2251 = vst.msk [vmem:[#allocation2 + $0x61] ss:$8 sm:$0x3] %vm3594_vm6, %v2249_v26 }
 0x967   :  { %v2225_v57 = vpop.permute.xlu0 %2224 }
 0x968   :  { %v2226_v50 = vrot.slane %v2225_v57, 1 }
 0x969   :  { %v2366_v25 = vld [vmem:[#allocation1 + $0x1] ss:$9 sm:$0xff] }
 0x96a   :  { %2367 = vrot.lane.b32.xlu1 %v2366_v25, %s5800_s23  ;;  %2374 = vst [vmem:[#allocation1] sm:$0xff] %v3613_v30  ;;  %v2227_v58 = vsel %vm5801_vm12, %v2225_v57, %v2226_v50  ;;  %vm5809_vm12 = vmmov %vm5807_vm7 }
 0x96b   :  { %2375 = vst [vmem:[#allocation1 + $0x9] sm:$0xff] %v3611_v29 }
 0x96c   :  { %2229 = vst.msk [vmem:[#allocation2 + $0x57] ss:$8 sm:$0x3] %vm3594_vm6, %v2227_v58 }
 0x970   :  { %v2236_v55 = vpop.permute.xlu0 %2235 }
 0x971   :  { %v2237_v49 = vrot.slane %v2236_v55, 1 }
 0x972   :  { %v2377_v27 = vld [vmem:[#allocation1 + $0x1] ss:$9 sm:$0xff] }
 0x973   :  { %2378 = vrot.lane.b32.xlu0 %v2377_v27, %s5800_s23  ;;  %2385 = vst [vmem:[#allocation1] sm:$0xff] %v3590_v17  ;;  %v2238_v33 = vsel %vm821_vm14, %v2236_v55, %v2237_v49  ;;  %vm5804_vm14 = vcmask 842752  }
 0x974   :  { %2386 = vst [vmem:[#allocation1 + $0x9] sm:$0xff] %v3585_v15  ;;  %vm5806_vm4 = vmmov %vm5804_vm14 }
 0x975   :  { %2240 = vst.msk [vmem:[#allocation2 + $0x60] ss:$8 sm:$0x3] %vm3594_vm6, %v2238_v33 }
 0x97b   :  { %1729 = vrot.lane.b32.xlu0 %v4588_v54, %s3467_s4  ;;  %v2388_v42 = vld [vmem:[#allocation1 + $0x1] ss:$9 sm:$0xff] }
 0x97c   :  { %2389 = vrot.lane.b32.xlu2 %v2388_v42, %s5802_s30  ;;  %2396 = vst [vmem:[#allocation1] sm:$0xff] %v3613_v30  ;;  %v2280_v26 = vpop.permute.xlu2 %2279 }
 0x97d   :  { %2397 = vst [vmem:[#allocation1 + $0x9] sm:$0xff] %v3611_v29  ;;  %v2281_v57 = vrot.slane %v2280_v26, 1 }
 0x97f   :  { %v2282_v50 = vsel %vm5803_vm5, %v2280_v26, %v2281_v57  ;;  %vm5810_vm5 = vcmask 818176  }
 0x980   :  { %2284 = vst.msk [vmem:[#allocation2 + $0x64] ss:$8 sm:$0x3] %vm3594_vm6, %v2282_v50 }
 0x982   :  { %v2258_v25 = vpop.permute.xlu1 %2257 }
 0x983   :  { %1762 = vrot.lane.b32.xlu0 %v4600_v44, %s3464_s27  ;;  %v2259_v58 = vrot.slane %v2258_v25, 1 }
 0x984   :  { %v2399_v54 = vld [vmem:[#allocation1 + $0x1] ss:$9 sm:$0xff] }
 0x985   :  { %2400 = vrot.lane.b32.xlu1 %v2399_v54, %s5802_s30  ;;  %2407 = vst [vmem:[#allocation1] sm:$0xff] %v3590_v17  ;;  %v2260_v55 = vsel %vm5804_vm14, %v2258_v25, %v2259_v58  ;;  %vm5811_vm14 = vcmask 809984  }
 0x986   :  { %2408 = vst [vmem:[#allocation1 + $0x9] sm:$0xff] %v3585_v15 }
 0x987   :  { %2262 = vst.msk [vmem:[#allocation2 + $0x62] ss:$8 sm:$0x3] %vm3594_vm6, %v2260_v55 }
 0x98b   :  { %v2269_v49 = vpop.permute.xlu0 %2268 }
 0x98c   :  { %v2270_v27 = vrot.slane %v2269_v49, 1 }
 0x98d   :  { %v2410_v33 = vld [vmem:[#allocation1 + $0x1] ss:$9 sm:$0xff] }
 0x98e   :  { %2411 = vrot.lane.b32.xlu1 %v2410_v33, %s5805_s15  ;;  %2418 = vst [vmem:[#allocation1] sm:$0xff] %v3613_v30  ;;  %v2271_v44 = vsel %vm5806_vm4, %v2269_v49, %v2270_v27  ;;  %vm5812_vm4 = vmmov %vm5810_vm5 }
 0x98f   :  { %2419 = vst [vmem:[#allocation1 + $0x9] sm:$0xff] %v3611_v29 }
 0x990   :  { %2273 = vst.msk [vmem:[#allocation2 + $0x63] ss:$8 sm:$0x3] %vm3594_vm6, %v2271_v44 }
 0x996   :  { %1751 = vrot.lane.b32.xlu1 %v4596_v14, %s3464_s27  ;;  %v2421_v15 = vld [vmem:[#allocation1 + $0x1] ss:$9 sm:$0xff] }
 0x997   :  { %2422 = vrot.lane.b32.xlu2 %v2421_v15, %s5805_s15  ;;  %v2313_v17 = vpop.permute.xlu2 %2312 }
 0x998   :  { %v2314_v42 = vrot.slane %v2313_v17, 1 }
 0x99a   :  { %v2315_v26 = vsel %vm5807_vm7, %v2313_v17, %v2314_v42  ;;  %vm5813_vm7 = vmmov %vm5811_vm14 }
 0x99b   :  { %2317 = vst.msk [vmem:[#allocation2 + $0x67] ss:$8 sm:$0x3] %vm3594_vm6, %v2315_v26 }
 0x99d   :  { %v2291_v30 = vpop.permute.xlu1 %2290 }
 0x99e   :  { %1784 = vrot.lane.b32.xlu1 %v4608_v10, %s3471_s21  ;;  %v2292_v29 = vrot.slane %v2291_v30, 1 }
 0x99f   :  { %1740 = vrot.lane.b32.xlu2 %v4592_v34, %s3467_s4 }
 0x9a0   :  { %v2293_v14 = vsel %vm5808_vm3, %v2291_v30, %v2292_v29  ;;  %vm5814_vm3 = vcmask 793600  }
 0x9a1   :  { %2295 = vst.msk [vmem:[#allocation2 + $0x65] ss:$8 sm:$0x3] %vm3594_vm6, %v2293_v14 }
 0x9a6   :  { %v2302_v57 = vpop.permute.xlu0 %2301 }
 0x9a7   :  { %1773 = vrot.lane.b32.xlu2 %v4604_v60, %s3471_s21  ;;  %v2303_v50 = vrot.slane %v2302_v57, 1 }
 0x9a9   :  { %v2304_v25 = vsel %vm5809_vm12, %v2302_v57, %v2303_v50  ;;  %vm5815_vm12 = vcmask 801792  }
 0x9aa   :  { %2306 = vst.msk [vmem:[#allocation2 + $0x66] ss:$8 sm:$0x3] %vm3594_vm6, %v2304_v25 }
 0x9b8   :  { %v2324_v10 = vpop.permute.xlu0 %2323 }
 0x9b9   :  { %v2325_v58 = vrot.slane %v2324_v10, 1 }
 0x9bb   :  { %v2326_v54 = vsel %vm5810_vm5, %v2324_v10, %v2325_v58  ;;  %v2357_v34 = vpop.permute.xlu2 %2356  ;;  %vm5816_vm5 = vmmov %vm5815_vm12 }
 0x9bc   :  { %2328 = vst.msk [vmem:[#allocation2 + $0x70] ss:$8 sm:$0x3] %vm3594_vm6, %v2326_v54  ;;  %v2358_v55 = vrot.slane %v2357_v34, 1 }
 0x9be   :  { %v2359_v49 = vsel %vm5811_vm14, %v2357_v34, %v2358_v55  ;;  %vm5817_vm14 = vcmask 1039360  }
 0x9bf   :  { %2361 = vst.msk [vmem:[#allocation2 + $0x73] ss:$8 sm:$0x3] %vm3594_vm6, %v2359_v49 }
 0x9c1   :  { %v2335_v60 = vpop.permute.xlu1 %2334 }
 0x9c2   :  { %v2336_v27 = vrot.slane %v2335_v60, 1 }
 0x9c4   :  { %v2337_v33 = vsel %vm5812_vm4, %v2335_v60, %v2336_v27  ;;  %vm5818_vm4 = vcmask 785408  }
 0x9c5   :  { %2339 = vst.msk [vmem:[#allocation2 + $0x71] ss:$8 sm:$0x3] %vm3594_vm6, %v2337_v33 }
 0x9ca   :  { %v2346_v44 = vpop.permute.xlu0 %2345 }
 0x9cb   :  { %v2347_v15 = vrot.slane %v2346_v44, 1 }
 0x9cd   :  { %v2348_v17 = vsel %vm5813_vm7, %v2346_v44, %v2347_v15  ;;  %vm5819_vm7 = vcmask 1031168  }
 0x9ce   :  { %2350 = vst.msk [vmem:[#allocation2 + $0x72] ss:$8 sm:$0x3] %vm3594_vm6, %v2348_v17 }
 0x9d6   :  { %v2390_v42 = vpop.permute.xlu2 %2389 }
 0x9d7   :  { %v2391_v26 = vrot.slane %v2390_v42, 1 }
 0x9d9   :  { %v2392_v30 = vsel %vm5814_vm3, %v2390_v42, %v2391_v26 }
 0x9da   :  { %2394 = vst.msk [vmem:[#allocation2 + $0x76] ss:$8 sm:$0x3] %vm3594_vm6, %v2392_v30 }
 0x9dc   :  { %v2368_v29 = vpop.permute.xlu1 %2367 }
 0x9dd   :  { %v2369_v14 = vrot.slane %v2368_v29, 1 }
 0x9df   :  { %v2370_v57 = vsel %vm5815_vm12, %v2368_v29, %v2369_v14  ;;  %vm5820_vm12 = vmmov %vm5817_vm14 }
 0x9e0   :  { %2372 = vst.msk [vmem:[#allocation2 + $0x74] ss:$8 sm:$0x3] %vm3594_vm6, %v2370_v57 }
 0x9e5   :  { %v2379_v50 = vpop.permute.xlu0 %2378 }
 0x9e6   :  { %v2380_v25 = vrot.slane %v2379_v50, 1 }
 0x9e8   :  { %v2381_v10 = vsel %vm5816_vm5, %v2379_v50, %v2380_v25  ;;  %vm5821_vm5 = vmmov %vm5818_vm4 }
 0x9e9   :  { %2383 = vst.msk [vmem:[#allocation2 + $0x75] ss:$8 sm:$0x3] %vm3594_vm6, %v2381_v10 }
 0x9ed   :  { %v1730_v58 = vpop.permute.xlu0 %1729 }
 0x9ee   :  { %v1731_v54 = vrot.slane %v1730_v58, 1 }
 0x9f0   :  { %v1732_v34 = vsel %vm5817_vm14, %v1730_v58, %v1731_v54  ;;  %vm5822_vm14 = vcmask 1022976  }
 0x9f1   :  { %1734 = vst.msk [vmem:[#allocation2 + $0x2] ss:$8 sm:$0x3] %vm3594_vm6, %v1732_v34  ;;  %v2423_v55 = vpop.permute.xlu2 %2422 }
 0x9f2   :  { %v2424_v49 = vrot.slane %v2423_v55, 1 }
 0x9f4   :  { %v2425_v60 = vsel %vm5818_vm4, %v2423_v55, %v2424_v49  ;;  %vm5823_vm4 = vmmov %vm5819_vm7 }
 0x9f5   :  { %2427 = vst.msk [vmem:[#allocation2 + $0x81] ss:$8 sm:$0x3] %vm3594_vm6, %v2425_v60  ;;  %v1763_v27 = vpop.permute.xlu0 %1762 }
 0x9f6   :  { %v1764_v33 = vrot.slane %v1763_v27, 1 }
 0x9f7   :  { %v2401_v44 = vpop.permute.xlu1 %2400 }
 0x9f8   :  { %v1765_v15 = vsel %vm5819_vm7, %v1763_v27, %v1764_v33  ;;  %v2402_v17 = vrot.slane %v2401_v44, 1  ;;  %vm5824_vm7 = vcmask 1041408  }
 0x9f9   :  { %1767 = vst.msk [vmem:[#allocation2 + $0x5] ss:$8 sm:$0x3] %vm3594_vm6, %v1765_v15  ;;  %v1741_v42 = vpop.permute.xlu2 %1740  ;;  %v2442_v15 = vld [vmem:[#allocation2 + $0x68] sm:$0xff] }
 0x9fa   :  { %v2403_v26 = vsel %vm5814_vm3, %v2401_v44, %v2402_v17  ;;  %v1742_v30 = vrot.slane %v1741_v42, 1  ;;  %vm5825_vm3 = vmmov %vm5824_vm7  ;;  %v2441_v44 = vld [vmem:[#allocation2 + $0x60] sm:$0xff] }
 0x9fb   :  { %2405 = vst.msk [vmem:[#allocation2 + $0x77] ss:$8 sm:$0x3] %vm3594_vm6, %v2403_v26  ;;  %v2439_v26 = vld [vmem:[#allocation2 + $0x50] sm:$0xff] }
 0x9fc   :  { %v1743_v29 = vsel %vm5820_vm12, %v1741_v42, %v1742_v30  ;;  %v2440_v30 = vld [vmem:[#allocation2 + $0x58] sm:$0xff]  ;;  %vm5826_vm12 = vmmov %vm5822_vm14 }
 0x9fd   :  { %1745 = vst.msk [vmem:[#allocation2 + $0x3] ss:$8 sm:$0x3] %vm3594_vm6, %v1743_v29 }
 0xa00   :  { %v2412_v14 = vpop.permute.xlu1 %2411 }
 0xa01   :  { %v2413_v57 = vrot.slane %v2412_v14, 1  ;;  %v1774_v50 = vpop.permute.xlu2 %1773 }
 0xa02   :  { %v1775_v25 = vrot.slane %v1774_v50, 1  ;;  %v2443_v27 = vld [vmem:[#allocation2 + $0x70] sm:$0xff]  ;;  %v2444_v33 = vld [vmem:[#allocation2 + $0x78] sm:$0xff] }
 0xa03   :  { %v2414_v10 = vsel %vm5821_vm5, %v2412_v14, %v2413_v57  ;;  %v2437_v14 = vld [vmem:[#allocation2 + $0x40] sm:$0xff]  ;;  %v2438_v57 = vld [vmem:[#allocation2 + $0x48] sm:$0xff] }
 0xa04   :  { %2416 = vst.msk [vmem:[#allocation2 + $0x80] ss:$8 sm:$0x3] %vm3594_vm6, %v2414_v10  ;;  %v1776_v58 = vsel %vm5822_vm14, %v1774_v50, %v1775_v25  ;;  %v2435_v50 = vld [vmem:[#allocation2 + $0x30] sm:$0xff]  ;;  %v2436_v25 = vld [vmem:[#allocation2 + $0x38] sm:$0xff]  ;;  %v2433_v10 = vld [vmem:[#allocation2 + $0x20] sm:$0xff]  ;;  %vm5830_vm14 = vcmp.eq.s32.totalorder %v4054_v35, %v4056_v36 }
 0xa05   :  { %1778 = vst.msk [vmem:[#allocation2 + $0x6] ss:$8 sm:$0x3] %vm3594_vm6, %v1776_v58  ;;  %v2434_v58 = vld [vmem:[#allocation2 + $0x28] sm:$0xff] }
 0xa08   :  { %v1752_v54 = vpop.permute.xlu1 %1751 }
 0xa09   :  { %v1753_v34 = vrot.slane %v1752_v54, 1 }
 0xa0b   :  { %v1754_v55 = vsel %vm5823_vm4, %v1752_v54, %v1753_v34  ;;  %v2445_v49 = vld [vmem:[#allocation2 + $0x80] sm:$0x3]  ;;  %v2446_v60 = vld [vmem:[#allocation2 + $0x88] sm:$0x3]  ;;  %v2431_v54 = vld [vmem:[#allocation2 + $0x10] sm:$0xff]  ;;  %vm5831_vm4 = vcmp.eq.s32.totalorder %v4054_v35, %v4067_v39 }
 0xa0c   :  { %1756 = vst.msk [vmem:[#allocation2 + $0x4] ss:$8 sm:$0x3] %vm3594_vm6, %v1754_v55  ;;  %3206 = vmatpush.msk.msra.mxu2 %vm5824_vm7, %v2445_v49  ;;  %3211 = vmatpush.msk.msra.mxu3 %vm5825_vm3, %v2446_v60  ;;  %v2432_v34 = vld [vmem:[#allocation2 + $0x18] sm:$0xff]  ;;  %v5829_v60 = vmov 1.0   ;;  %vm5832_vm7 = vcmp.eq.s32.totalorder %v4059_v37, %v4056_v36  ;;  %vm5833_vm3 = vcmp.eq.s32.totalorder %v4059_v37, %v4067_v39  ;;  %v3394_v35 = vld [vmem:[%s5569_s6 + $0x8] sm:$0xff] }
 0xa0d   :  { %v3395_v37 = vld [vmem:[%s5569_s6 + $0x10] sm:$0xff] }
 0xa0e   :  { %2461 = vmatpush.msra.mxu2 %v2443_v27  ;;  %2490 = vmatpush.msra.mxu3 %v2444_v33 }
 0xa10   :  { %v1785_v17 = vpop.permute.xlu1 %1784  ;;  %2462 = vmatpush.msra.mxu2 %v2441_v44  ;;  %2491 = vmatpush.msra.mxu3 %v2442_v15 }
 0xa11   :  { %v1786_v42 = vrot.slane %v1785_v17, 1 }
 0xa12   :  { %2463 = vmatpush.msra.mxu2 %v2439_v26  ;;  %2492 = vmatpush.msra.mxu3 %v2440_v30 }
 0xa13   :  { %v1787_v29 = vsel %vm5826_vm12, %v1785_v17, %v1786_v42  ;;  %vm5834_vm12 = vcmp.eq.s32.totalorder %v4062_v38, %v4056_v36 }
 0xa14   :  { %1789 = vst.msk [vmem:[#allocation2 + $0x7] ss:$8 sm:$0x3] %vm3594_vm6, %v1787_v29  ;;  %2464 = vmatpush.msra.mxu2 %v2437_v14  ;;  %2493 = vmatpush.msra.mxu3 %v2438_v57  ;;  %vm5827_vm6 = vcmask 539648  }
 0xa15   :  { %vm5828_vm5 = vmmov %vm5827_vm6 }
 0xa16   :  { %2465 = vmatpush.msra.mxu2 %v2435_v50  ;;  %2494 = vmatpush.msra.mxu3 %v2436_v25 }
 0xa18   :  { %2466 = vmatpush.msra.mxu2 %v2433_v10  ;;  %2495 = vmatpush.msra.mxu3 %v2434_v58 }
 0xa1a   :  { %2467 = vmatpush.msra.mxu2 %v2431_v54  ;;  %2496 = vmatpush.msra.mxu3 %v2432_v34 }
 0xa1b   :  { %v2429_v55 = vld [vmem:[#allocation2] sm:$0xff]  ;;  %v2430_v49 = vld [vmem:[#allocation2 + $0x8] sm:$0xff] }
 0xa1c   :  { %2468 = vmatpush.msra.mxu2 %v2429_v55  ;;  %2497 = vmatpush.msra.mxu3 %v2430_v49 }
 0xa1d   :  { %3207 = vmatmul.msk.f32.vlgmr.msra.gmra.mxu2 %vm5827_vm6, %v3393_v21  ;;  %3212 = vmatmul.msk.f32.vlgmr.msra.gmra.mxu3 %vm5828_vm5, %v3393_v21  ;;  %vm5835_vm6 = vcmp.eq.s32.totalorder %v4062_v38, %v4067_v39  ;;  %vm5836_vm5 = vcmp.eq.s32.totalorder %v4076_v43, %v4056_v36  ;;  %v3396_v38 = vld [vmem:[%s5569_s6 + $0x18] sm:$0xff]  ;;  %s3484_s6 = smov 74  }
 0xa1e   :  { %3220 = vmatpush.msk.msrb.mxu2 %vm5830_vm14, %v5829_v60  ;;  %3250 = vmatpush.msk.msrb.mxu3 %vm5831_vm4, %v5829_v60  ;;  %vm5837_vm14 = vcmp.eq.s32.totalorder %v4076_v43, %v4067_v39  ;;  %vm5838_vm4 = vcmask 539648  }
 0xa20   :  { %3221 = vmatpush.msk.msrb.mxu2 %vm5832_vm7, %v5829_v60  ;;  %3251 = vmatpush.msk.msrb.mxu3 %vm5833_vm3, %v5829_v60  ;;  %vm5839_vm7 = vmmov %vm5838_vm4  ;;  %vm5840_vm3 = vcmp.eq.s32.totalorder %v4091_v45, %v4056_v36 }
 0xa22   :  { %3222 = vmatpush.msk.msrb.mxu2 %vm5834_vm12, %v5829_v60  ;;  %3252 = vmatpush.msk.msrb.mxu3 %vm5835_vm6, %v5829_v60  ;;  %vm5841_vm12 = vcmp.eq.s32.totalorder %v4091_v45, %v4067_v39  ;;  %vm5842_vm6 = vcmp.eq.s32.totalorder %v4112_v46, %v4056_v36 }
 0xa24   :  { %3223 = vmatpush.msk.msrb.mxu2 %vm5836_vm5, %v5829_v60  ;;  %3253 = vmatpush.msk.msrb.mxu3 %vm5837_vm14, %v5829_v60  ;;  %vm5843_vm5 = vcmp.eq.s32.totalorder %v4112_v46, %v4067_v39  ;;  %vm5844_vm14 = vcmp.eq.s32.totalorder %v4121_v48, %v4056_v36 }
 0xa25   :  { %3208 = vmatmul.msk.f32.gmra.mxu2 %vm5838_vm4, %v3394_v35  ;;  %3213 = vmatmul.msk.f32.gmra.mxu3 %vm5839_vm7, %v3394_v35  ;;  %vm5845_vm4 = vcmp.eq.s32.totalorder %v4121_v48, %v4067_v39  ;;  %vm5846_vm7 = vcmp.eq.s32.totalorder %v4137_v51, %v4056_v36 }
 0xa26   :  { %3224 = vmatpush.msk.msrb.mxu2 %vm5840_vm3, %v5829_v60  ;;  %3254 = vmatpush.msk.msrb.mxu3 %vm5841_vm12, %v5829_v60  ;;  %vm5847_vm3 = vcmp.eq.s32.totalorder %v4137_v51, %v4067_v39  ;;  %vm5848_vm12 = vcmask 539648  }
 0xa28   :  { %3225 = vmatpush.msk.msrb.mxu2 %vm5842_vm6, %v5829_v60  ;;  %3255 = vmatpush.msk.msrb.mxu3 %vm5843_vm5, %v5829_v60  ;;  %vm5849_vm6 = vmmov %vm5848_vm12  ;;  %vm5850_vm5 = vcmp.eq.s32.totalorder %v4161_v61, %v4056_v36 }
 0xa2a   :  { %3226 = vmatpush.msk.msrb.mxu2 %vm5844_vm14, %v5829_v60  ;;  %3256 = vmatpush.msk.msrb.mxu3 %vm5845_vm4, %v5829_v60  ;;  %vm5851_vm14 = vcmp.eq.s32.totalorder %v4161_v61, %v4067_v39  ;;  %vm5852_vm4 = vcmp.eq.s32.totalorder %v4196_v3, %v4056_v36 }
 0xa2c   :  { %3227 = vmatpush.msk.msrb.mxu2 %vm5846_vm7, %v5829_v60  ;;  %3257 = vmatpush.msk.msrb.mxu3 %vm5847_vm3, %v5829_v60  ;;  %vm5853_vm7 = vcmp.eq.s32.totalorder %v4196_v3, %v4067_v39  ;;  %vm5854_vm3 = vcmp.eq.s32.totalorder %v4212_v7, %v4056_v36 }
 0xa2d   :  { %3209 = vmatmul.msk.f32.gmra.mxu2 %vm5848_vm12, %v3395_v37  ;;  %3214 = vmatmul.msk.f32.gmra.mxu3 %vm5849_vm6, %v3395_v37  ;;  %vm5855_vm12 = vcmp.eq.s32.totalorder %v4212_v7, %v4067_v39  ;;  %vm5856_vm6 = vcmp.eq.s32.totalorder %v4246_v56, %v4056_v36 }
 0xa2e   :  { %3228 = vmatpush.msk.msrb.mxu2 %vm5850_vm5, %v5829_v60  ;;  %3258 = vmatpush.msk.msrb.mxu3 %vm5851_vm14, %v5829_v60  ;;  %vm5857_vm5 = vcmask 539648  }
 0xa2f   :  { %vm5858_vm14 = vmmov %vm5857_vm5 }
 0xa30   :  { %3229 = vmatpush.msk.msrb.mxu2 %vm5852_vm4, %v5829_v60  ;;  %3259 = vmatpush.msk.msrb.mxu3 %vm5853_vm7, %v5829_v60 }
 0xa32   :  { %3230 = vmatpush.msk.msrb.mxu2 %vm5854_vm3, %v5829_v60  ;;  %3260 = vmatpush.msk.msrb.mxu3 %vm5855_vm12, %v5829_v60 }
 0xa34   :  { %3231 = vmatpush.msk.msrb.mxu2 %vm5856_vm6, %v5829_v60  ;;  %3261 = vmatpush.msk.msrb.mxu3 %vm327_vm13, %v5829_v60  ;;  %vm5859_vm13 = vcmp.eq.s32.totalorder %v4050_v31, %v4056_v36 }
 0xa35   :  { %3210 = vmatmul.msk.f32.gmra.mxu2 %vm5857_vm5, %v3396_v38  ;;  %3215 = vmatmul.msk.f32.gmra.mxu3 %vm5858_vm14, %v3396_v38  ;;  %vm5865_vm5 = vcmask 752640  }
 0xa36   :  { %3232 = vmatpush.msk.msrb.mxu2 %vm241_vm0, %v5829_v60  ;;  %3262 = vmatpush.msk.msrb.mxu3 %vm326_vm1, %v5829_v60  ;;  %vm5860_vm1 = vcmp.eq.s32.totalorder %v4050_v31, %v4067_v39 }
 0xa38   :  { %3233 = vmatpush.msk.msrb.mxu2 %vm240_vm9, %v5829_v60  ;;  %3263 = vmatpush.msk.msrb.mxu3 %vm325_vm8, %v5829_v60 }
 0xa3a   :  { %3234 = vmatpush.msk.msrb.mxu2 %vm239_vm10, %v5829_v60  ;;  %3264 = vmatpush.msk.msrb.mxu3 %vm324_vm15, %v5829_v60  ;;  %vm5861_vm10 = vcmask 785408  }
 0xa3b   :  { %vm5862_vm15 = vmmov %vm5861_vm10 }
 0xa3c   :  { %3235 = vmatpush.msk.msrb.mxu2 %vm5859_vm13, %v5829_v60  ;;  %3265 = vmatpush.msk.msrb.mxu3 %vm5860_vm1, %v5829_v60  ;;  %vm5863_vm0 = vmmov %vm5861_vm10 }
 0xa3d   :  { %vm5864_vm9 = vmmov %vm5863_vm0 }
 0xa3e   :  { %vm5866_vm1 = vmmov %vm5865_vm5 }
 0xaa0   :  { %v2470_v43 = vpop.f32.mrf.mxu2  ;;  %v2499_v45 = vpop.f32.mrf.mxu3 }
 0xaa1   :  { %v2511_v51 = vand.u32 2147483647, %v2470_v43  ;;  %v2512_v7 = vand.u32 2147483647, %v2499_v45 }
 0xaa8   :  { %v2473_v46 = vpop.f32.mrf.mxu2  ;;  %v2502_v48 = vpop.f32.mrf.mxu3 }
 0xaa9   :  { %v2513_v44 = vand.u32 2147483647, %v2473_v46  ;;  %v2514_v17 = vand.u32 2147483647, %v2502_v48 }
 0xab0   :  { %v2476_v61 = vpop.f32.mrf.mxu2  ;;  %v2505_v3 = vpop.f32.mrf.mxu3 }
 0xab1   :  { %v2515_v56 = vand.u32 2147483647, %v2476_v61  ;;  %v2516_v11 = vand.u32 2147483647, %v2505_v3 }
 0xab3   :  { %v2519_v20 = vmax.f32 %v2511_v51, %v2515_v56  ;;  %v2520_v23 = vmax.f32 %v2512_v7, %v2516_v11 }
 0xab5   :  { %v2523_v27 = vsel %vm5861_vm10, %v2520_v23, 0.0  ;;  %vm5867_vm10 = vmmov %vm5866_vm1 }
 0xab6   :  { %v2524_v33 = vadd.f32 %v2523_v27, %v2519_v20 }
 0xab8   :  { %v2508_v15 = vpop.f32.mrf.mxu3  ;;  %2525 = vadd.xlane.f32.xlu2 %v2524_v33  ;;  %v2479_v31 = vpop.f32.mrf.mxu2 }
 0xab9   :  { %v2518_v42 = vand.u32 2147483647, %v2508_v15  ;;  %v2517_v26 = vand.u32 2147483647, %v2479_v31 }
 0xabb   :  { %v2522_v30 = vmax.f32 %v2514_v17, %v2518_v42  ;;  %v2521_v29 = vmax.f32 %v2513_v44, %v2517_v26 }
 0xabd   :  { %v2527_v14 = vsel %vm5862_vm15, %v2522_v30, 0.0  ;;  %vm5868_vm15 = vmmov %vm5866_vm1 }
 0xabe   :  { %v2528_v57 = vadd.f32 %v2527_v14, %v2521_v29 }
 0xac0   :  { %2529 = vadd.xlane.f32.xlu0 %v2528_v57 }
 0xb2b   :  { %v2526_v50 = vpop.xlane.xlu2 %2525 }
 0xb2c   :  { %v2531_v25 = vmul.f32 %v2526_v50, %v3961_v47 }
 0xb2e   :  { %v2533_v10 = vsub.f32 %v2519_v20, %v2531_v25  ;;  %v2534_v58 = vsub.f32 %v2520_v23, %v2531_v25 }
 0xb30   :  { %v2537_v54 = vmul.f32 %v2533_v10, %v2533_v10  ;;  %v2538_v34 = vmul.f32 %v2534_v58, %v2534_v58 }
 0xb32   :  { %v2541_v55 = vsel %vm5863_vm0, %v2538_v34, 0.0  ;;  %vm5869_vm0 = vmmov %vm5866_vm1 }
 0xb33   :  { %v2530_v49 = vpop.xlane.xlu0 %2529  ;;  %v2542_v21 = vadd.f32 %v2541_v55, %v2537_v54 }
 0xb34   :  { %v2532_v35 = vmul.f32 %v2530_v49, %v3961_v47 }
 0xb35   :  { %2543 = vadd.xlane.f32.xlu0 %v2542_v21 }
 0xb36   :  { %v2535_v37 = vsub.f32 %v2521_v29, %v2532_v35  ;;  %v2536_v38 = vsub.f32 %v2522_v30, %v2532_v35  ;;  %v3397_v35 = vld [vmem:[%s5570_s7 + $0x8] sm:$0xff] }
 0xb38   :  { %v2539_v43 = vmul.f32 %v2535_v37, %v2535_v37  ;;  %v2540_v45 = vmul.f32 %v2536_v38, %v2536_v38 }
 0xb3a   :  { %v2545_v46 = vsel %vm5864_vm9, %v2540_v45, 0.0  ;;  %v3398_v45 = vld [vmem:[%s5570_s7] sm:$0xff]  ;;  %vm5870_vm9 = vmmov %vm5869_vm0 }
 0xb3b   :  { %v2546_v48 = vadd.f32 %v2545_v46, %v2539_v43 }
 0xb3d   :  { %2547 = vadd.xlane.f32.xlu1 %v2546_v48  ;;  %v3399_v48 = vld [vmem:[%s5571_s8 + $0x8] sm:$0xff] }
 0xba8   :  { %v2544_v51 = vpop.xlane.xlu0 %2543 }
 0xba9   :  { %v2549_v61 = vmul.f32 %v2544_v51, %v3975_v5 }
 0xbab   :  { %3377 = vrsqrt.f32 %v2549_v61  ;;  %vm2558_vm8 = vcmp.eq.f32.partialorder %v2549_v61, inf  ;;  %v2561_v17 = vand.u32 2147483648, %v2549_v61  ;;  %vm2560_vm4 = vcmp.eq.f32.partialorder %v2549_v61, 0.0 }
 0xbb0   :  { %v2548_v3 = vpop.xlane.xlu1 %2547 }
 0xbb1   :  { %v3378_v7 = vpop.eup %3377  ;;  %v2550_v56 = vmul.f32 %v2548_v3, %v3975_v5 }
 0xbb2   :  { %v2552_v11 = vmul.f32 %v3378_v7, %v2549_v61 }
 0xbb3   :  { %3379 = vrsqrt.f32 %v2550_v56  ;;  %vm2570_vm7 = vcmp.eq.f32.partialorder %v2550_v56, inf  ;;  %v2573_v50 = vand.u32 2147483648, %v2550_v56  ;;  %vm2572_vm3 = vcmp.eq.f32.partialorder %v2550_v56, 0.0 }
 0xbb4   :  { %v2553_v47 = vmul.f32 %v3378_v7, %v2552_v11 }
 0xbb6   :  { %v2554_v20 = vmul.f32 0.5, %v2553_v47 }
 0xbb8   :  { %v2555_v23 = vsub.f32 1.5, %v2554_v20 }
 0xbb9   :  { %v3380_v27 = vpop.eup %3379 }
 0xbba   :  { %v2556_v33 = vmul.f32 %v3378_v7, %v2555_v23  ;;  %v2564_v44 = vmul.f32 %v3380_v27, %v2550_v56  ;;  %v3401_v23 = vld [vmem:[%s5570_s7 + $0x18] sm:$0xff] }
 0xbbc   :  { %v2557_v15 = vmul.f32 %v2556_v33, %v2549_v61  ;;  %v2565_v31 = vmul.f32 %v3380_v27, %v2564_v44  ;;  %v3402_v33 = vld [vmem:[%s5570_s7 + $0x10] sm:$0xff] }
 0xbbe   :  { %v2566_v42 = vmul.f32 0.5, %v2565_v31  ;;  %v2559_v26 = vsel %vm2558_vm8, %v2549_v61, %v2557_v15  ;;  %v3404_v15 = vld [vmem:[%s5571_s8 + $0x10] sm:$0xff]  ;;  %vm5871_vm8 = vcmask 1022976  }
 0xbbf   :  { %v2562_v30 = vsel %vm2560_vm4, %v2561_v17, %v2559_v26  ;;  %vm5872_vm4 = vmmov %vm5869_vm0 }
 0xbc0   :  { %v2567_v29 = vsub.f32 1.5, %v2566_v42  ;;  %v2575_v14 = vadd.f32 1e-06, %v2562_v30 }
 0xbc2   :  { %v2568_v57 = vmul.f32 %v3380_v27, %v2567_v29  ;;  %3381 = vrcp.f32 %v2575_v14 }
 0xbc4   :  { %v2569_v5 = vmul.f32 %v2568_v57, %v2550_v56 }
 0xbc6   :  { %v2571_v25 = vsel %vm2570_vm7, %v2550_v56, %v2569_v5  ;;  %vm5873_vm7 = vmmov %vm5869_vm0 }
 0xbc7   :  { %v2574_v54 = vsel %vm2572_vm3, %v2573_v50, %v2571_v25  ;;  %vm5874_vm3 = vmmov %vm5869_vm0 }
 0xbc8   :  { %v3382_v34 = vpop.eup %3381  ;;  %v2576_v55 = vadd.f32 1e-06, %v2574_v54 }
 0xbc9   :  { %v2580_v49 = vmul.f32 %v3382_v34, %v2534_v58  ;;  %v2579_v21 = vmul.f32 %v3382_v34, %v2533_v10  ;;  %v3400_v10 = vld [vmem:[%s5571_s8] sm:$0xff] }
 0xbca   :  { %3383 = vrcp.f32 %v2576_v55 }
 0xbcb   :  { %v2584_v43 = vmul.f32 %v3397_v35, %v2580_v49  ;;  %v2583_v46 = vmul.f32 %v3398_v45, %v2579_v21 }
 0xbcd   :  { %v2588_v51 = vadd.f32 %v3399_v48, %v2584_v43  ;;  %v2587_v58 = vadd.f32 %v3400_v10, %v2583_v46 }
 0xbcf   :  { %vm2592_vm12 = vcmp.ge.f32.partialorder %v2588_v51, 0.0  ;;  %v2596_v61 = vmul.f32 0.2, %v2588_v51  ;;  %vm2591_vm6 = vcmp.ge.f32.partialorder %v2587_v58, 0.0  ;;  %v2595_v3 = vmul.f32 0.2, %v2587_v58 }
 0xbd0   :  { %v3384_v7 = vpop.eup %3383 }
 0xbd1   :  { %v2600_v56 = vsel %vm2592_vm12, %v2588_v51, %v2596_v61  ;;  %v5158_v11 = vsel %vm2591_vm6, %v2587_v58, %v2595_v3  ;;  %v2582_v47 = vmul.f32 %v3384_v7, %v2536_v38  ;;  %v2581_v20 = vmul.f32 %v3384_v7, %v2535_v37  ;;  %v3403_v37 = vld [vmem:[%s5571_s8 + $0x18] sm:$0xff]  ;;  %vm5877_vm6 = vmmov %vm5871_vm8 }
 0xbd2   :  { %2631 = vrot.lane.b32.xlu1 %v2600_v56, %s3464_s27  ;;  %2604 = vst.msk [vmem:[#allocation3 + $0x8] sm:$0xff] %vm5865_vm5, %v2600_v56  ;;  %2667 = vrot.lane.b32.xlu2 %v2600_v56, %s3469_s14  ;;  %vm5875_vm12 = vcmask 1031168   ;;  %vm5878_vm5 = vcmask 1039360  }
 0xbd3   :  { %2665 = vrot.lane.b32.xlu0 %v5158_v11, %s3469_s14  ;;  %v2586_v27 = vmul.f32 %v3401_v23, %v2582_v47  ;;  %v2585_v38 = vmul.f32 %v3402_v33, %v2581_v20 }
 0xbd5   :  { %v2590_v44 = vadd.f32 %v3403_v37, %v2586_v27  ;;  %v2589_v31 = vadd.f32 %v3404_v15, %v2585_v38 }
 0xbd7   :  { %vm2594_vm14 = vcmp.ge.f32.partialorder %v2590_v44, 0.0  ;;  %v2598_v17 = vmul.f32 0.2, %v2590_v44  ;;  %vm2593_vm13 = vcmp.ge.f32.partialorder %v2589_v31, 0.0  ;;  %v2597_v42 = vmul.f32 0.2, %v2589_v31 }
 0xbd9   :  { %v2602_v26 = vsel %vm2594_vm14, %v2590_v44, %v2598_v17  ;;  %v5177_v30 = vsel %vm2593_vm13, %v2589_v31, %v2597_v42  ;;  %vm5879_vm14 = vmmov %vm5878_vm5  ;;  %v3405_v44 = vld [vmem:[%s5572_s9] sm:$0xff] }
 0xbda   :  { %2606 = vst.msk [vmem:[#allocation3 + $0x18] sm:$0xff] %vm5866_vm1, %v2602_v26  ;;  %2671 = vrot.lane.b32.xlu1 %v2602_v26, %s3469_s14  ;;  %2647 = vrot.lane.b32.xlu2 %v5158_v11, %s3471_s21  ;;  %vm5880_vm13 = vmmov %vm5869_vm0  ;;  %vm5881_vm1 = vcmask 654336  }
 0xbdb   :  { %2649 = vrot.lane.b32.xlu0 %v2600_v56, %s3471_s21 }
 0xbe1   :  { %v2686_v17 = vld [vmem:[#allocation3 + $0x18] sm:$0xff] }
 0xbe2   :  { %2653 = vrot.lane.b32.xlu1 %v2602_v26, %s3471_s21  ;;  %2669 = vrot.lane.b32.xlu2 %v5177_v30, %s3469_s14  ;;  %s3480_s14 = smov 38  }
 0xbe3   :  { %2629 = vrot.lane.b32.xlu0 %v5158_v11, %s3464_s27 }
 0xbea   :  { %2633 = vrot.lane.b32.xlu1 %v5177_v30, %s3464_s27  ;;  %2635 = vrot.lane.b32.xlu2 %v2602_v26, %s3464_s27 }
 0xbeb   :  { %2651 = vrot.lane.b32.xlu0 %v5177_v30, %s3471_s21 }
 0xbf2   :  { %2611 = vrot.lane.b32.xlu1 %v5158_v11, %s3467_s4  ;;  %2615 = vrot.lane.b32.xlu2 %v5177_v30, %s3467_s4 }
 0xbf3   :  { %2617 = vrot.lane.b32.xlu0 %v2602_v26, %s3467_s4 }
 0xbfa   :  { %2613 = vrot.lane.b32.xlu2 %v2600_v56, %s3467_s4  ;;  %s3481_s4 = smov 20  }
 0xc2c   :  { %v2668_v29 = vpop.permute.xlu2 %2667 }
 0xc2d   :  { %2680 = vst.msk [vmem:[#allocation3 + $0x88] sm:$0xff] %vm5867_vm10, %v2668_v29  ;;  %vm5882_vm10 = vcmask 1043456  }
 0xc34   :  { %v2648_v14 = vpop.permute.xlu2 %2647  ;;  %v2700_v10 = vld [vmem:[#allocation3 + $0x88] sm:$0xff] }
 0xc3c   :  { %v2670_v57 = vpop.permute.xlu2 %2669 }
 0xc44   :  { %v2632_v5 = vpop.permute.xlu1 %2631  ;;  %v2636_v50 = vpop.permute.xlu2 %2635 }
 0xc45   :  { %2644 = vst.msk [vmem:[#allocation3 + $0x48] sm:$0xff] %vm5868_vm15, %v2632_v5  ;;  %v2666_v25 = vpop.permute.xlu0 %2665  ;;  %vm5883_vm15 = vcmp.eq.s32.totalorder %v4164_v59, %v4056_v36 }
 0xc46   :  { %2646 = vst.msk [vmem:[#allocation3 + $0x58] sm:$0xff] %vm5869_vm0, %v2636_v50  ;;  %v2673_v54 = vsel %vm481_vm2, %v2666_v25, %v2668_v29  ;;  %vm5884_vm0 = vcmp.eq.s32.totalorder %v4178_v0, %v4056_v36 }
 0xc4c   :  { %v2672_v34 = vpop.permute.xlu1 %2671  ;;  %v2616_v55 = vpop.permute.xlu2 %2615  ;;  %v2692_v23 = vld [vmem:[#allocation3 + $0x48] sm:$0xff] }
 0xc4d   :  { %v2674_v49 = vsel %vm481_vm2, %v2670_v57, %v2672_v34  ;;  %2682 = vst.msk [vmem:[#allocation3 + $0x98] sm:$0xff] %vm5870_vm9, %v2672_v34  ;;  %v2650_v21 = vpop.permute.xlu0 %2649  ;;  %vm5876_vm2 = vmmov %vm5875_vm12  ;;  %v2694_v20 = vld [vmem:[#allocation3 + $0x58] sm:$0xff]  ;;  %vm5885_vm9 = vcmp.eq.s32.totalorder %v4209_v6, %v4056_v36 }
 0xc4e   :  { %v2655_v35 = vsel %vm5871_vm8, %v2648_v14, %v2650_v21  ;;  %2709 = vmatpush.msra.mxu0 %v2674_v49  ;;  %2662 = vst.msk [vmem:[#allocation3 + $0x68] sm:$0xff] %vm5872_vm4, %v2650_v21  ;;  %vm5886_vm8 = vmmov %vm5881_vm1  ;;  %v3198_v49 = vrot.slane %v4529_v52, 9  ;;  %v3199_v21 = vrot.slane %v4535_v1, 9  ;;  %v5919_v52 = vld [vmem:[#allocation11_spill] sm:$0xff] }
 0xc4f   :  { %vm5887_vm4 = vmmov %vm5881_vm1  ;;  %v3203_v1 = vrot.slane %v5919_v52, 9 }
 0xc50   :  { %2710 = vmatpush.msra.mxu0 %v2673_v54 }
 0xc54   :  { %v2654_v43 = vpop.permute.xlu1 %2653  ;;  %v2614_v45 = vpop.permute.xlu2 %2613  ;;  %v2702_v46 = vld [vmem:[#allocation3 + $0x98] sm:$0xff] }
 0xc55   :  { %2664 = vst.msk [vmem:[#allocation3 + $0x78] sm:$0xff] %vm5873_vm7, %v2654_v43  ;;  %v2630_v48 = vpop.permute.xlu0 %2629  ;;  %2732 = vmatpush.msra.mxu1 %v2702_v46  ;;  %v2696_v47 = vld [vmem:[#allocation3 + $0x68] sm:$0xff]  ;;  %vm5888_vm7 = vcmp.eq.s32.totalorder %v4228_v4, %v4056_v36 }
 0xc56   :  { %2626 = vst.msk [vmem:[#allocation3 + $0x28] sm:$0xff] %vm5874_vm3, %v2614_v45  ;;  %v2637_v51 = vsel %vm5875_vm12, %v2630_v48, %v2632_v5  ;;  %vm5889_vm3 = vmmov %vm5882_vm10  ;;  %vm5890_vm12 = vcmp.eq.s32.totalorder %v4253_v9, %v4056_v36  ;;  %v5920_v46 = vld [vmem:[#allocation12_spill] sm:$0xff] }
 0xc57   :  { %2733 = vmatpush.msra.mxu1 %v2700_v10  ;;  %v3204_v48 = vrot.slane %v5920_v46, 9 }
 0xc5c   :  { %v2634_v58 = vpop.permute.xlu1 %2633  ;;  %v2698_v61 = vld [vmem:[#allocation3 + $0x78] sm:$0xff] }
 0xc5d   :  { %v2638_v3 = vsel %vm5876_vm2, %v2634_v58, %v2636_v50  ;;  %v2652_v7 = vpop.permute.xlu0 %2651  ;;  %2734 = vmatpush.msra.mxu1 %v2698_v61  ;;  %v2688_v31 = vld [vmem:[#allocation3 + $0x28] sm:$0xff]  ;;  %vm5891_vm2 = vcmp.eq.s32.totalorder %v4164_v59, %v4067_v39  ;;  %v3201_v50 = vrot.slane %v4556_v24, 9  ;;  %v5922_v61 = vld [vmem:[#allocation7_spill] sm:$0xff] }
 0xc5e   :  { %v2656_v56 = vsel %vm5877_vm6, %v2652_v7, %v2654_v43  ;;  %vm5892_vm6 = vcmp.eq.s32.totalorder %v4281_v22, %v4056_v36 }
 0xc5f   :  { %2735 = vmatpush.msra.mxu1 %v2696_v47  ;;  %2711 = vmatpush.msra.mxu0 %v2656_v56 }
 0xc61   :  { %2736 = vmatpush.msra.mxu1 %v2694_v20  ;;  %2712 = vmatpush.msra.mxu0 %v2655_v35  ;;  %v5916_v35 = vld [vmem:[#allocation9_spill] sm:$0xff] }
 0xc62   :  { %v3202_v43 = vrot.slane %v5916_v35, 9 }
 0xc63   :  { %2737 = vmatpush.msra.mxu1 %v2692_v23  ;;  %2713 = vmatpush.msra.mxu0 %v2638_v3 }
 0xc64   :  { %v2612_v27 = vpop.permute.xlu1 %2611 }
 0xc65   :  { %v2619_v33 = vsel %vm5878_vm5, %v2612_v27, %v2614_v45  ;;  %v2618_v38 = vpop.permute.xlu0 %2617  ;;  %2714 = vmatpush.msra.mxu0 %v2637_v51  ;;  %vm5893_vm5 = vcmp.eq.s32.totalorder %v4178_v0, %v4067_v39  ;;  %v5918_v45 = vld [vmem:[#allocation10_spill] sm:$0xff] }
 0xc66   :  { %v2620_v37 = vsel %vm5879_vm14, %v2616_v55, %v2618_v38  ;;  %2628 = vst.msk [vmem:[#allocation3 + $0x38] sm:$0xff] %vm5880_vm13, %v2618_v38  ;;  %vm5894_vm14 = vcmp.eq.s32.totalorder %v4312_v12, %v4056_v36  ;;  %vm5895_vm13 = vcmp.eq.s32.totalorder %v4209_v6, %v4067_v39  ;;  %v5921_v51 = vld [vmem:[#allocation14_spill] sm:$0xff] }
 0xc67   :  { %2715 = vmatpush.msra.mxu0 %v2620_v37  ;;  %v3205_v10 = vrot.slane %v5921_v51, 9 }
 0xc69   :  { %2716 = vmatpush.msra.mxu0 %v2619_v33 }
 0xc6b   :  { %2717 = vmatpush.msra.mxu0 %v5177_v30 }
 0xc6d   :  { %2718 = vmatpush.msra.mxu0 %v5158_v11  ;;  %v2690_v15 = vld [vmem:[#allocation3 + $0x38] sm:$0xff]  ;;  %v2684_v11 = vld [vmem:[#allocation3 + $0x8] sm:$0xff] }
 0xc6e   :  { %3216 = vmatmul.msk.f32.vlgmr.msra.gmra.mxu0 %vm5881_vm1, %v3405_v44  ;;  %2738 = vmatpush.msra.mxu1 %v2690_v15 }
 0xc6f   :  { %3236 = vmatpush.msk.msrb.mxu0 %vm5882_vm10, %v4214_v8  ;;  %v3406_v8 = vld [vmem:[%s5572_s9 + $0x8] sm:$0xff]  ;;  %vm5896_vm10 = vcmp.eq.s32.totalorder %v4333_v13, %v4056_v36  ;;  %s3479_s9 = smov 92  }
 0xc70   :  { %2739 = vmatpush.msra.mxu1 %v2688_v31 }
 0xc71   :  { %3237 = vmatpush.msk.msrb.mxu0 %vm5883_vm15, %v5829_v60  ;;  %vm5897_vm15 = vcmp.eq.s32.totalorder %v4228_v4, %v4067_v39 }
 0xc72   :  { %2740 = vmatpush.msra.mxu1 %v2686_v17 }
 0xc73   :  { %3238 = vmatpush.msk.msrb.mxu0 %vm5884_vm0, %v5829_v60  ;;  %vm5898_vm0 = vcmp.eq.s32.totalorder %v4357_v16, %v4056_v36 }
 0xc74   :  { %2741 = vmatpush.msra.mxu1 %v2684_v11 }
 0xc75   :  { %3239 = vmatpush.msk.msrb.mxu0 %vm5885_vm9, %v5829_v60  ;;  %3218 = vmatmul.msk.f32.vlgmr.msra.gmra.mxu1 %vm5887_vm4, %v3405_v44  ;;  %vm5899_vm9 = vcmp.eq.s32.totalorder %v4253_v9, %v4067_v39  ;;  %vm5901_vm4 = vcmp.eq.s32.totalorder %v4281_v22, %v4067_v39 }
 0xc76   :  { %3217 = vmatmul.msk.f32.gmra.mxu0 %vm5886_vm8, %v3406_v8  ;;  %3266 = vmatpush.msk.msrb.mxu1 %vm5889_vm3, %v4187_v32  ;;  %vm5900_vm8 = vcmp.eq.s32.totalorder %v4380_v18, %v4056_v36  ;;  %vm5903_vm3 = vcmp.eq.s32.totalorder %v4312_v12, %v4067_v39 }
 0xc77   :  { %3240 = vmatpush.msk.msrb.mxu0 %vm5888_vm7, %v5829_v60  ;;  %vm5902_vm7 = vcmp.eq.s32.totalorder %v4435_v19, %v4056_v36 }
 0xc78   :  { %3267 = vmatpush.msk.msrb.mxu1 %vm5891_vm2, %v5829_v60  ;;  %vm5905_vm2 = vcmp.eq.s32.totalorder %v4357_v16, %v4067_v39 }
 0xc79   :  { %3241 = vmatpush.msk.msrb.mxu0 %vm5890_vm12, %v5829_v60  ;;  %vm5904_vm12 = vcmp.eq.s32.totalorder %v4333_v13, %v4067_v39 }
 0xc7a   :  { %3268 = vmatpush.msk.msrb.mxu1 %vm5893_vm5, %v5829_v60  ;;  %vm5907_vm5 = vcmp.eq.s32.totalorder %v4435_v19, %v4067_v39 }
 0xc7b   :  { %3242 = vmatpush.msk.msrb.mxu0 %vm5892_vm6, %v5829_v60  ;;  %vm5906_vm6 = vcmp.eq.s32.totalorder %v4380_v18, %v4067_v39 }
 0xc7c   :  { %3269 = vmatpush.msk.msrb.mxu1 %vm5895_vm13, %v5829_v60 }
 0xc7d   :  { %3243 = vmatpush.msk.msrb.mxu0 %vm5894_vm14, %v5829_v60  ;;  %3219 = vmatmul.msk.f32.gmra.mxu1 %vm5881_vm1, %v3406_v8  ;;  %vm5908_vm14 = vcmask 752640  }
 0xc7e   :  { %3270 = vmatpush.msk.msrb.mxu1 %vm5897_vm15, %v5829_v60  ;;  %vm5909_vm13 = vmmov %vm5908_vm14  ;;  %vm5912_vm15 = vcmask 900096  }
 0xc7f   :  { %3244 = vmatpush.msk.msrb.mxu0 %vm5896_vm10, %v5829_v60  ;;  %vm5910_vm1 = vmmov %vm5909_vm13 }
 0xc80   :  { %3271 = vmatpush.msk.msrb.mxu1 %vm5899_vm9, %v5829_v60  ;;  %vm5911_vm10 = vmmov %vm5910_vm1 }
 0xc81   :  { %3245 = vmatpush.msk.msrb.mxu0 %vm5898_vm0, %v5829_v60  ;;  %vm5913_vm0 = vmmov %vm5912_vm15 }
 0xc82   :  { %3272 = vmatpush.msk.msrb.mxu1 %vm5901_vm4, %v5829_v60  ;;  %vm5914_vm9 = vmmov %vm5913_vm0 }
 0xc83   :  { %3246 = vmatpush.msk.msrb.mxu0 %vm5900_vm8, %v5829_v60  ;;  %vm5915_vm8 = vmmov %vm5913_vm0 }
 0xc84   :  { %3273 = vmatpush.msk.msrb.mxu1 %vm5903_vm3, %v5829_v60 }
 0xc85   :  { %3247 = vmatpush.msk.msrb.mxu0 %vm5902_vm7, %v5829_v60  ;;  %vm1529_vm7 = vcmask 1041264  }
 0xc86   :  { %3274 = vmatpush.msk.msrb.mxu1 %vm5904_vm12, %v5829_v60  ;;  %vm1530_vm12 = vcmask 747522  }
 0xc88   :  { %3275 = vmatpush.msk.msrb.mxu1 %vm5905_vm2, %v5829_v60  ;;  %vm1541_vm2 = vcmask 1041120  }
 0xc8a   :  { %3276 = vmatpush.msk.msrb.mxu1 %vm5906_vm6, %v5829_v60  ;;  %vm1542_vm6 = vcmask 600066  }
 0xc8c   :  { %3277 = vmatpush.msk.msrb.mxu1 %vm5907_vm5, %v5829_v60  ;;  %vm5372_vm5 = vmor %vm1530_vm12, %vm1529_vm7  ;;  %vm1569_vm7 = vcmask 1040832   ;;  %vm1584_vm12 = vcmask 1040688  }
 0xceb   :  { %v2720_v36 = vpop.f32.mrf.mxu0 }
 0xcec   :  { %2771 = vmatmul.f32.vlgmr.msrb.gmra.mxu2 %v2720_v36  ;;  %2817 = vmatmul.f32.vlgmr.msrb.gmra.mxu3 %v2720_v36 }
 0xcf2   :  { %v2743_v0 = vpop.f32.mrf.mxu1 }
 0xcf3   :  { %v2723_v59 = vpop.f32.mrf.mxu0  ;;  %3248 = vmatmul.msk.f32.vlgmr.msrb.gmra.mxu0 %vm5908_vm14, %v2743_v0  ;;  %3278 = vmatmul.msk.f32.vlgmr.msrb.gmra.mxu1 %vm5909_vm13, %v2743_v0  ;;  %vm1556_vm14 = vcmask 1040976   ;;  %vm1557_vm13 = vcmask 452610  }
 0xcf4   :  { %2774 = vmatmul.f32.gmra.mxu2 %v2723_v59  ;;  %2820 = vmatmul.f32.gmra.mxu3 %v2723_v59 }
 0xcfa   :  { %v2746_v32 = vpop.f32.mrf.mxu1 }
 0xcfb   :  { %3249 = vmatmul.msk.f32.gmra.mxu0 %vm5910_vm1, %v2746_v32  ;;  %3279 = vmatmul.msk.f32.gmra.mxu1 %vm5911_vm10, %v2746_v32  ;;  %vm5376_vm1 = vmor %vm1542_vm6, %vm1541_vm2  ;;  %vm1585_vm2 = vcmask 157698   ;;  %vm5714_vm6 = vcmask 457728  }
 0xcfc   :  { %vm5927_vm10 = vmmov %vm5913_vm0 }
 0xd6f   :  { %v2772_v6 = vpop.f32.mrf.mxu2  ;;  %v2818_v4 = vpop.f32.mrf.mxu3 }
 0xd70   :  { %v2795_v39 = vpop.f32.mrf.mxu0  ;;  %v2841_v9 = vpop.f32.mrf.mxu1 }
 0xd71   :  { %v2796_v22 = vadd.f32 %v2795_v39, %v2772_v6  ;;  %v2842_v12 = vadd.f32 %v2841_v9, %v2818_v4 }
 0xd73   :  { %v2847_v13 = vmax.f32 %v2796_v22, %v2842_v12 }
 0xd75   :  { %v2849_v16 = vadd.f32 %v2847_v13, %v4501_v53  ;;  %v3200_v53 = vrot.slane %v4541_v28, 9 }
 0xd77   :  { %v2821_v18 = vpop.f32.mrf.mxu3  ;;  %v2775_v19 = vpop.f32.mrf.mxu2  ;;  %v2851_v60 = vsel %vm5912_vm15, %v2849_v16, 0.0  ;;  %vm5710_vm15 = vcmask 605184  }
 0xd78   :  { %v2798_v42 = vpop.f32.mrf.mxu0  ;;  %v2844_v26 = vpop.f32.mrf.mxu1  ;;  %2852 = vadd.xlane.f32.xlu0 %v2851_v60 }
 0xd79   :  { %v2845_v30 = vadd.f32 %v2844_v26, %v2821_v18  ;;  %v2799_v29 = vadd.f32 %v2798_v42, %v2775_v19 }
 0xd7b   :  { %v2848_v14 = vmax.f32 %v2799_v29, %v2845_v30 }
 0xd7d   :  { %v2850_v57 = vadd.f32 %v2848_v14, %v4505_v2 }
 0xd7f   :  { %v2854_v5 = vsel %vm5913_vm0, %v2850_v57, 0.0  ;;  %vm5928_vm0 = vcmask 752640  }
 0xd80   :  { %2855 = vadd.xlane.f32.xlu2 %v2854_v5 }
 0xd98   :  { %1536 = vrot.lane.b32.xlu2 %v4532_v62, %s3479_s9 }
 0xda0   :  { %1578 = vrot.lane.b32.xlu2 %v3200_v53, %s3480_s14 }
 0xda8   :  { %1591 = vrot.lane.b32.xlu2 %v4553_v41, %s3481_s4 }
 0xdb0   :  { %1606 = vrot.lane.b32.xlu2 %v3201_v50, %s3482_s25 }
 0xdb8   :  { %1664 = vrot.lane.b32.xlu2 %v4567_v63, %s3483_s26 }
 0xdeb   :  { %v2853_v2 = vpop.xlane.xlu0 %2852 }
 0xdec   :  { %v2857_v62 = vmul.f32 %v2853_v2, %v4509_v40 }
 0xdee   :  { %v5339_v28 = vsub.f32 %v2849_v16, %v2857_v62 }
 0xdf0   :  { %v2861_v25 = vmul.f32 %v5339_v28, %v5339_v28 }
 0xdf2   :  { %v2863_v54 = vsel %vm5914_vm9, %v2861_v25, 0.0  ;;  %vm5384_vm9 = vmor %vm1557_vm13, %vm1556_vm14  ;;  %vm1597_vm14 = vcmask 1040544   ;;  %vm1598_vm13 = vcmask 10242  }
 0xdf3   :  { %2864 = vadd.xlane.f32.xlu1 %v2863_v54  ;;  %v2856_v41 = vpop.xlane.xlu2 %2855 }
 0xdf4   :  { %v2858_v24 = vmul.f32 %v2856_v41, %v4509_v40  ;;  %v5917_v40 = vld [vmem:[#allocation8_spill] sm:$0xff] }
 0xdf6   :  { %v5345_v34 = vsub.f32 %v2850_v57, %v2858_v24  ;;  %v3407_v24 = vld [vmem:[%s5574_s11] sm:$0xff] }
 0xdf8   :  { %v2862_v55 = vmul.f32 %v5345_v34, %v5345_v34 }
 0xdfa   :  { %v2866_v63 = vsel %vm5915_vm8, %v2862_v55, 0.0 }
 0xdfb   :  { %2867 = vadd.xlane.f32.xlu0 %v2866_v63  ;;  %v1537_v7 = vpop.permute.xlu2 %1536 }
 0xdfc   :  { %v1538_v32 = vrot.slane %v1537_v7, 6 }
 0xdfe   :  { %v1539_v60 = vsel %vm5928_vm0, %v1538_v32, %v1537_v7 }
 0xe03   :  { %v5370_v33 = vpop.permute.xlu2 %1578 }
 0xe04   :  { %v1580_v25 = vrot.slane %v5370_v33, 6 }
 0xe0b   :  { %v1592_v6 = vpop.permute.xlu2 %1591 }
 0xe0c   :  { %1524 = vrot.lane.b32.xlu1 %v3198_v49, %s5768_s16  ;;  %v1593_v63 = vrot.slane %v1592_v6, 6 }
 0xe0f   :  { %1550 = vrot.lane.b32.xlu0 %v3199_v21, %s3484_s6  ;;  %v5933_v21 = vmov 0 }
 0xe13   :  { %v1607_v54 = vpop.permute.xlu2 %1606 }
 0xe14   :  { %1623 = vrot.lane.b32.xlu1 %v3202_v43, %s3485_s28 }
 0xe17   :  { %1563 = vrot.lane.b32.xlu0 %v5917_v40, %s3486_s0 }
 0xe1c   :  { %1636 = vrot.lane.b32.xlu1 %v5918_v45, %s3487_s2  ;;  %v5935_v45 = vmov 0 }
 0xe1f   :  { %1612 = vrot.lane.b32.xlu0 %v5916_v35, %s5764_s5  ;;  %v3408_v35 = vld [vmem:[%s5575_s12] sm:$0xff] }
 0xe24   :  { %1651 = vrot.lane.b32.xlu1 %v3203_v1, %s3488_s24 }
 0xe27   :  { %1679 = vrot.lane.b32.xlu0 %v3204_v48, %s3489_s10 }
 0xe2c   :  { %1702 = vrot.lane.b32.xlu1 %v3205_v10, %s5759_s3 }
 0xe66   :  { %v2865_v58 = vpop.xlane.xlu1 %2864 }
 0xe67   :  { %v2869_v3 = vmul.f32 %v2865_v58, %v5922_v61 }
 0xe69   :  { %3385 = vrsqrt.f32 %v2869_v3  ;;  %vm2878_vm4 = vcmp.eq.f32.partialorder %v2869_v3, inf  ;;  %v2881_v8 = vand.u32 2147483648, %v2869_v3  ;;  %vm2880_vm3 = vcmp.eq.f32.partialorder %v2869_v3, 0.0 }
 0xe6e   :  { %v2868_v56 = vpop.xlane.xlu0 %2867 }
 0xe6f   :  { %v3386_v47 = vpop.eup %3385  ;;  %v2870_v20 = vmul.f32 %v2868_v56, %v5922_v61  ;;  %v3409_v56 = vld [vmem:[%s5574_s11 + $0x8] sm:$0xff] }
 0xe70   :  { %v2872_v23 = vmul.f32 %v3386_v47, %v2869_v3 }
 0xe71   :  { %3387 = vrsqrt.f32 %v2870_v20  ;;  %vm2890_vm8 = vcmp.eq.f32.partialorder %v2870_v20, inf  ;;  %v2893_v29 = vand.u32 2147483648, %v2870_v20 }
 0xe72   :  { %v2873_v27 = vmul.f32 %v3386_v47, %v2872_v23  ;;  %v5937_v23 = vmov 0 }
 0xe74   :  { %v2874_v38 = vmul.f32 0.5, %v2873_v27 }
 0xe76   :  { %v2875_v37 = vsub.f32 1.5, %v2874_v38  ;;  %v3410_v38 = vld [vmem:[%s5575_s12 + $0x8] sm:$0xff]  ;;  %s3490_s12 = smov 4  }
 0xe77   :  { %v3388_v44 = vpop.eup %3387 }
 0xe78   :  { %v2876_v15 = vmul.f32 %v3386_v47, %v2875_v37  ;;  %v2884_v31 = vmul.f32 %v3388_v44, %v2870_v20 }
 0xe7a   :  { %v2877_v17 = vmul.f32 %v2876_v15, %v2869_v3  ;;  %v2885_v11 = vmul.f32 %v3388_v44, %v2884_v31 }
 0xe7c   :  { %v2879_v36 = vsel %vm2878_vm4, %v2869_v3, %v2877_v17  ;;  %v2886_v59 = vmul.f32 0.5, %v2885_v11  ;;  %vm2892_vm4 = vcmp.eq.f32.partialorder %v2870_v20, 0.0 }
 0xe7d   :  { %v2882_v0 = vsel %vm2880_vm3, %v2881_v8, %v2879_v36  ;;  %vm1570_vm3 = vcmask 305154  }
 0xe7e   :  { %v2895_v4 = vadd.f32 1e-06, %v2882_v0  ;;  %v2887_v39 = vsub.f32 1.5, %v2886_v59  ;;  %v1525_v9 = vpop.permute.xlu1 %1524  ;;  %vm5402_vm0 = vmor %vm1570_vm3, %vm1569_vm7  ;;  %vm5713_vm7 = vcmask 909328  }
 0xe7f   :  { %v1526_v12 = vrot.slane %v1525_v9, 6 }
 0xe80   :  { %3389 = vrcp.f32 %v2895_v4  ;;  %v2888_v13 = vmul.f32 %v3388_v44, %v2887_v39 }
 0xe81   :  { %v1527_v18 = vsel %vm5927_vm10, %v1526_v12, %v1525_v9  ;;  %v1551_v19 = vpop.permute.xlu0 %1550  ;;  %vm5712_vm10 = vcmask 310272  }
 0xe82   :  { %v2889_v42 = vmul.f32 %v2888_v13, %v2870_v20  ;;  %1532 = vst.msk [vmem:[#allocation4] sm:$0x5] %vm5372_vm5, %v1527_v18  ;;  %v1552_v30 = vrot.slane %v1551_v19, 6  ;;  %v1582_v52 = vsel %vm5712_vm10, %v1580_v25, %v5370_v33  ;;  %vm1643_vm10 = vcmask 468994  }
 0xe83   :  { %1544 = vst.msk [vmem:[#allocation4 + $0x2] sm:$0x5] %vm5376_vm1, %v1539_v60  ;;  %v5939_v33 = vmov 0 }
 0xe84   :  { %v2891_v14 = vsel %vm2890_vm8, %v2870_v20, %v2889_v42  ;;  %v1554_v57 = vsel %vm5710_vm15, %v1552_v30, %v1551_v19  ;;  %vm5711_vm8 = vcmask 162816   ;;  %vm5414_vm15 = vmor %vm1598_vm13, %vm1597_vm14  ;;  %vm1629_vm14 = vcmask 1041136  }
 0xe85   :  { %v2894_v5 = vsel %vm2892_vm4, %v2893_v29, %v2891_v14  ;;  %1559 = vst.msk [vmem:[#allocation4 + $0x4] sm:$0x5] %vm5384_vm9, %v1554_v57  ;;  %vm5406_vm4 = vmor %vm1585_vm2, %vm1584_vm12  ;;  %v5936_v45 = vsel %vm5414_vm15, 4294967295, %v5935_v45  ;;  %v1595_v48 = vsel %vm5711_vm8, %v1593_v63, %v1592_v6  ;;  %vm1617_vm12 = vcmask 1041280   ;;  %v5952_v63 = vld [vmem:[#allocation13_spill] sm:$0xff] }
 0xe86   :  { %v3390_v53 = vpop.eup %3389  ;;  %v2896_v50 = vadd.f32 1e-06, %v2894_v5  ;;  %v5393_v2 = vpop.permute.xlu1 %1623  ;;  %v5934_v21 = vsel %vm5406_vm4, 4294967295, %v5933_v21  ;;  %vm1618_vm2 = vcmask 763906   ;;  %vm1630_vm13 = vcmask 616450  }
 0xe87   :  { %v2899_v62 = vmul.f32 %v3390_v53, %v5339_v28  ;;  %v5931_v28 = vmov 0  ;;  %v1625_v3 = vrot.slane %v5393_v2, 6  ;;  %vm1642_vm8 = vcmask 1040992  }
 0xe88   :  { %3391 = vrcp.f32 %v2896_v50  ;;  %v5932_v28 = vsel %vm5402_vm0, 4294967295, %v5931_v28 }
 0xe89   :  { %v1564_v41 = vpop.permute.xlu0 %1563  ;;  %v2901_v55 = vmul.f32 %v3407_v24, %v2899_v62 }
 0xe8a   :  { %v1565_v49 = vrot.slane %v1564_v41, 6 }
 0xe8b   :  { %v2903_v43 = vadd.f32 %v3408_v35, %v2901_v55 }
 0xe8c   :  { %v1567_v40 = vsel %vm5714_vm6, %v1565_v49, %v1564_v41  ;;  %vm5448_vm6 = vmor %vm1630_vm13, %vm1629_vm14  ;;  %vm5944_vm14 = vcmask 769024  }
 0xe8d   :  { %1572 = vst.msk [vmem:[#allocation4 + $0x6] sm:$0x5] %vm5402_vm0, %v1567_v40  ;;  %vm2905_vm3 = vcmp.ge.f32.partialorder %v2903_v43, 0.0  ;;  %v2907_v1 = vmul.f32 0.2, %v2903_v43  ;;  %v5940_v33 = vsel %vm5448_vm6, 4294967295, %v5939_v33  ;;  %v1627_v17 = vsel %vm5944_vm14, %v1625_v3, %v5393_v2 }
 0xe8e   :  { %v3392_v46 = vpop.eup %3391  ;;  %1587 = vst.msk [vmem:[#allocation4 + $0x8] sm:$0x5] %vm5406_vm4, %v1582_v52  ;;  %v1637_v51 = vpop.permute.xlu1 %1636  ;;  %vm1685_vm14 = vcmask 1040560   ;;  %vm1667_vm0 = vcmask 326656  }
 0xe8f   :  { %1600 = vst.msk [vmem:[#allocation4 + $0xa] sm:$0x5] %vm5414_vm15, %v1595_v48  ;;  %v5427_v10 = vsel %vm2905_vm3, %v2903_v43, %v2907_v1  ;;  %v2900_v58 = vmul.f32 %v3392_v46, %v5345_v34  ;;  %v1665_v34 = vpop.permute.xlu2 %1664  ;;  %v1638_v20 = vrot.slane %v1637_v51, 6  ;;  %vm1658_vm3 = vcmask 321538  }
 0xe90   :  { %1610 = vst.msk [vmem:[#allocation4 + $0xc] sm:$0x1] %vm5713_vm7, %v1607_v54  ;;  %v3280_v61 = vrot.slane %v5427_v10, 9  ;;  %vm5440_vm7 = vmor %vm1618_vm2, %vm1617_vm12  ;;  %vm5941_vm12 = vcmask 916480   ;;  %v1666_v31 = vrot.slane %v1665_v34, 6  ;;  %vm5945_vm15 = vcmask 621568  }
 0xe91   :  { %v1613_v7 = vpop.permute.xlu0 %1612  ;;  %2911 = vst.msk [vmem:[#allocation4 + $0x1] sm:$0x1] %vm1519_vm11, %v5427_v10  ;;  %v2902_v47 = vmul.f32 %v3409_v56, %v2900_v58  ;;  %v5938_v23 = vsel %vm5440_vm7, 4294967295, %v5937_v23  ;;  %vm5458_vm2 = vmor %vm1643_vm10, %vm1642_vm8  ;;  %vm1657_vm11 = vcmask 1040848   ;;  %v1640_v8 = vsel %vm5945_vm15, %v1638_v20, %v1637_v51 }
 0xe92   :  { %v1614_v27 = vrot.slane %v1613_v7, 6  ;;  %2915 = vrot.lane.b32.xlu1 %v3280_v61, %s5768_s16  ;;  %2921 = vst.sshfl [vmem:[#allocation1] sm:$0xff pattern:$0x73625140] %v5427_v10  ;;  %vm1654_vm10 = vcmask 474112   ;;  %vm1670_vm8 = vcmask 1040704   ;;  %vm5471_vm4 = vmor %vm1658_vm3, %vm1657_vm11  ;;  %v1668_v18 = vsel %vm1667_vm0, %v1666_v31, %v1665_v34 }
 0xe93   :  { %v2904_v37 = vadd.f32 %v3410_v38, %v2902_v47  ;;  %vm1682_vm15 = vcmask 179200   ;;  %vm5954_vm11 = vcmask 752640  }
 0xe94   :  { %v1615_v44 = vsel %vm5941_vm12, %v1614_v27, %v1613_v7  ;;  %vm1671_vm12 = vcmask 174082  }
 0xe95   :  { %1620 = vst.msk [vmem:[#allocation4 + $0xc] sm:$0x5] %vm5440_vm7, %v1615_v44  ;;  %vm2906_vm13 = vcmp.ge.f32.partialorder %v2904_v37, 0.0  ;;  %v2908_v11 = vmul.f32 0.2, %v2904_v37  ;;  %vm1686_vm7 = vcmask 26626  }
 0xe96   :  { %1632 = vst.msk [vmem:[#allocation4 + $0xe] sm:$0x5] %vm5448_vm6, %v1627_v17  ;;  %v1652_v36 = vpop.permute.xlu1 %1651  ;;  %vm5477_vm6 = vmor %vm1671_vm12, %vm1670_vm8  ;;  %vm5956_vm8 = vcmask 457728   ;;  %vm5958_vm12 = vcmask 310272  }
 0xe97   :  { %1645 = vst.msk [vmem:[#allocation4 + $0x10] sm:$0x5] %vm5458_vm2, %v1640_v8  ;;  %v1653_v0 = vrot.slane %v1652_v36, 6  ;;  %v2910_v32 = vsel %vm2906_vm13, %v2904_v37, %v2908_v11  ;;  %vm5484_vm3 = vmor %vm1686_vm7, %vm1685_vm14  ;;  %vm5953_vm7 = vcmask 900096   ;;  %vm5955_vm13 = vcmask 605184  }
 0xe98   :  { %2980 = vrot.lane.b32.xlu2 %v2910_v32, %s5764_s5  ;;  %v3284_v60 = vrot.slane %v2910_v32, 9  ;;  %vm5959_vm14 = vnez %v5934_v21 }
 0xe99   :  { %v1655_v6 = vsel %vm1654_vm10, %v1653_v0, %v1652_v36  ;;  %v2923_v4 = vld [vmem:[#allocation1 + $0x1] ss:$4 sm:$0xff]  ;;  %v1680_v39 = vpop.permute.xlu0 %1679 }
 0xe9a   :  { %1660 = vst.msk [vmem:[#allocation4 + $0x12] sm:$0x5] %vm5471_vm4, %v1655_v6  ;;  %2924 = vrot.lane.b32.xlu0 %v2923_v4, %s3479_s9  ;;  %v1681_v12 = vrot.slane %v1680_v39, 6 }
 0xe9b   :  { %2930 = vst.sshfl [vmem:[#allocation1] sm:$0xff pattern:$0x73625140] %v5427_v10 }
 0xe9c   :  { %v1683_v19 = vsel %vm1682_vm15, %v1681_v12, %v1680_v39  ;;  %1673 = vst.msk [vmem:[#allocation4 + $0x14] sm:$0x5] %vm5477_vm6, %v1668_v18 }
 0xe9d   :  { %1688 = vst.msk [vmem:[#allocation4 + $0x16] sm:$0x5] %vm5484_vm3, %v1683_v19 }
 0xe9e   :  { %v1703_v43 = vpop.permute.xlu1 %1702 }
 0xe9f   :  { %v1704_v36 = vrot.slane %v1703_v43, 6 }
 0xea2   :  { %2988 = vrot.lane.b32.xlu0 %v3284_v60, %s3485_s28  ;;  %v2932_v42 = vld [vmem:[#allocation1 + $0x1] ss:$4 sm:$0xff] }
 0xea3   :  { %v3281_v30 = vrot.slane %v2932_v42, 9  ;;  %2941 = vst.sshfl [vmem:[#allocation1] sm:$0xff pattern:$0x73625140] %v5427_v10 }
 0xea5   :  { %2935 = vrot.lane.b32.xlu2 %v3281_v30, %s3484_s6 }
 0xeaa   :  { %v2943_v29 = vld [vmem:[#allocation1 + $0x2] ss:$4 sm:$0xff] }
 0xeab   :  { %2944 = vrot.lane.b32.xlu1 %v2943_v29, %s3486_s0  ;;  %2950 = vst.sshfl [vmem:[#allocation1] sm:$0xff pattern:$0x73625140] %v5427_v10 }
 0xeb2   :  { %v2952_v14 = vld [vmem:[#allocation1 + $0x2] ss:$4 sm:$0xff] }
 0xeb3   :  { %v3282_v57 = vrot.slane %v2952_v14, 9  ;;  %2961 = vst.sshfl [vmem:[#allocation1] sm:$0xff pattern:$0x73625140] %v5427_v10 }
 0xeb5   :  { %2955 = vrot.lane.b32.xlu0 %v3282_v57, %s3480_s14 }
 0xeba   :  { %v2963_v5 = vld [vmem:[#allocation1 + $0x3] ss:$4 sm:$0xff] }
 0xebb   :  { %2964 = vrot.lane.b32.xlu1 %v2963_v5, %s3481_s4  ;;  %2970 = vst.sshfl [vmem:[#allocation1] sm:$0xff pattern:$0x73625140] %v5427_v10 }
 0xec2   :  { %v2972_v53 = vld [vmem:[#allocation1 + $0x3] ss:$4 sm:$0xff] }
 0xec3   :  { %v3283_v50 = vrot.slane %v2972_v53, 9  ;;  %2994 = vst.sshfl [vmem:[#allocation1] sm:$0xff pattern:$0x73625140] %v2910_v32 }
 0xec5   :  { %2975 = vrot.lane.b32.xlu0 %v3283_v50, %s3482_s25 }
 0xeca   :  { %v2996_v2 = vld [vmem:[#allocation1 + $0x1] ss:$4 sm:$0xff] }
 0xecb   :  { %2997 = vrot.lane.b32.xlu2 %v2996_v2, %s3487_s2  ;;  %3003 = vst.sshfl [vmem:[#allocation1] sm:$0xff pattern:$0x73625140] %v2910_v32 }
 0xed2   :  { %v3005_v62 = vld [vmem:[#allocation1 + $0x1] ss:$4 sm:$0xff] }
 0xed3   :  { %v3285_v25 = vrot.slane %v3005_v62, 9  ;;  %3014 = vst.sshfl [vmem:[#allocation1] sm:$0xff pattern:$0x73625140] %v2910_v32 }
 0xed5   :  { %3008 = vrot.lane.b32.xlu0 %v3285_v25, %s3488_s24 }
 0xeda   :  { %v3016_v54 = vld [vmem:[#allocation1 + $0x2] ss:$4 sm:$0xff] }
 0xedb   :  { %3017 = vrot.lane.b32.xlu1 %v3016_v54, %s3483_s26  ;;  %3023 = vst.sshfl [vmem:[#allocation1] sm:$0xff pattern:$0x73625140] %v2910_v32 }
 0xee2   :  { %v3025_v41 = vld [vmem:[#allocation1 + $0x2] ss:$4 sm:$0xff] }
 0xee3   :  { %v3286_v24 = vrot.slane %v3025_v41, 9  ;;  %3034 = vst.sshfl [vmem:[#allocation1] sm:$0xff pattern:$0x73625140] %v2910_v32 }
 0xee5   :  { %3028 = vrot.lane.b32.xlu2 %v3286_v24, %s3489_s10 }
 0xeea   :  { %v3036_v55 = vld [vmem:[#allocation1 + $0x3] ss:$4 sm:$0xff] }
 0xeeb   :  { %3037 = vrot.lane.b32.xlu1 %v3036_v55, %s3490_s12  ;;  %3041 = vst.sshfl [vmem:[#allocation1] sm:$0xff pattern:$0x73625140] %v2910_v32 }
 0xeed   :  { %1692 = vrot.lane.b32.xlu2 %v5952_v63, %s3490_s12 }
 0xef2   :  { %v3043_v49 = vld [vmem:[#allocation1 + $0x3] ss:$4 sm:$0xff]  ;;  %v2981_v40 = vpop.permute.xlu2 %2980 }
 0xef3   :  { %v3287_v35 = vrot.slane %v3043_v49, 9  ;;  %v2982_v44 = vrot.slane %v2981_v40, 6 }
 0xef5   :  { %3046 = vrot.lane.b32.xlu0 %v3287_v35, %s5759_s3  ;;  %s3491_s3 = smov [#allocation4]  }
 0xef6   :  { %s3057_s5 = sshll.u32 %s3491_s3, 4  ;;  %s3058_s5 = int_to_ptr.vmem [resolvable:$true] %s3057_s5 }
 0xeff   :  { %v2936_v48 = vpop.permute.xlu2 %2935 }
 0xf00   :  { %v2937_v51 = vrot.slane %v2936_v48, 6 }
 0xf02   :  { %v2938_v3 = vsel %vm5955_vm13, %v2937_v51, %v2936_v48  ;;  %vm5964_vm13 = vcmask 769024  }
 0xf04   :  { %v2916_v52 = vpop.permute.xlu1 %2915 }
 0xf05   :  { %v2917_v1 = vrot.slane %v2916_v52, 6 }
 0xf07   :  { %v2918_v46 = vsel %vm5953_vm7, %v2917_v1, %v2916_v52  ;;  %vm5962_vm7 = vcmask 916480  }
 0xf08   :  { %2920 = vst.msk [vmem:[#allocation4 + $0x1] sm:$0x5] %vm5372_vm5, %v2918_v46  ;;  %vm5957_vm5 = vnez %v5932_v28  ;;  %v2983_v11 = vsel %vm5962_vm7, %v2982_v44, %v2981_v40 }
 0xf0c   :  { %v2925_v10 = vpop.permute.xlu0 %2924 }
 0xf0d   :  { %v2926_v58 = vrot.slane %v2925_v10, 6 }
 0xf0f   :  { %v2927_v61 = vsel %vm5954_vm11, %v2926_v58, %v2925_v10  ;;  %vm5963_vm11 = vcmask 909328  }
 0xf10   :  { %2929 = vst.msk [vmem:[#allocation4 + $0x3] sm:$0x5] %vm5376_vm1, %v2927_v61  ;;  %vm5960_vm1 = vcmask 162816  }
 0xf11   :  { %2940 = vst.msk [vmem:[#allocation4 + $0x5] sm:$0x5] %vm5384_vm9, %v2938_v3  ;;  %vm5961_vm9 = vnez %v5936_v45 }
 0xf14   :  { %v2989_v47 = vpop.permute.xlu0 %2988 }
 0xf15   :  { %v2990_v31 = vrot.slane %v2989_v47, 6 }
 0xf17   :  { %v2991_v8 = vsel %vm5964_vm13, %v2990_v31, %v2989_v47 }
 0xf1d   :  { %v2945_v7 = vpop.permute.xlu1 %2944 }
 0xf1e   :  { %v2946_v56 = vrot.slane %v2945_v7, 6 }
 0xf20   :  { %v2947_v22 = vsel %vm5956_vm8, %v2946_v56, %v2945_v7  ;;  %vm5965_vm8 = vnez %v5938_v23 }
 0xf21   :  { %2949 = vst.msk [vmem:[#allocation4 + $0x7] sm:$0x5] %vm5957_vm5, %v2947_v22  ;;  %vm5966_vm5 = vcmask 621568  }
 0xf25   :  { %v2998_v37 = vpop.permute.xlu2 %2997 }
 0xf26   :  { %v2999_v17 = vrot.slane %v2998_v37, 6 }
 0xf27   :  { %v2956_v34 = vpop.permute.xlu0 %2955 }
 0xf28   :  { %v2957_v20 = vrot.slane %v2956_v34, 6  ;;  %v3000_v21 = vsel %vm5966_vm5, %v2999_v17, %v2998_v37 }
 0xf2a   :  { %v2958_v27 = vsel %vm5958_vm12, %v2957_v20, %v2956_v34  ;;  %vm5967_vm12 = vnez %v5940_v33 }
 0xf2b   :  { %2960 = vst.msk [vmem:[#allocation4 + $0x9] sm:$0x5] %vm5959_vm14, %v2958_v27  ;;  %vm1707_vm14 = vcmask 1041296  }
 0xf2d   :  { %v2965_v16 = vpop.permute.xlu1 %2964 }
 0xf2e   :  { %v2966_v38 = vrot.slane %v2965_v16, 6 }
 0xf30   :  { %v2967_v26 = vsel %vm5960_vm1, %v2966_v38, %v2965_v16  ;;  %vm1708_vm1 = vcmask 780290  }
 0xf31   :  { %2969 = vst.msk [vmem:[#allocation4 + $0xb] sm:$0x5] %vm5961_vm9, %v2967_v26  ;;  %vm1695_vm9 = vcmask 925728   ;;  %vm5539_vm7 = vmor %vm1708_vm1, %vm1707_vm14 }
 0xf37   :  { %v2976_v28 = vpop.permute.xlu0 %2975 }
 0xf38   :  { %2978 = vst.msk [vmem:[#allocation4 + $0xd] sm:$0x1] %vm5963_vm11, %v2976_v28  ;;  %vm5970_vm11 = vcmask 932864  }
 0xf39   :  { %2985 = vst.msk [vmem:[#allocation4 + $0xd] sm:$0x5] %vm5965_vm8, %v2983_v11  ;;  %v1705_v6 = vsel %vm5970_vm11, %v1704_v36, %v1703_v43 }
 0xf3a   :  { %2993 = vst.msk [vmem:[#allocation4 + $0xf] sm:$0x5] %vm5967_vm12, %v2991_v8 }
 0xf3b   :  { %3002 = vst.msk [vmem:[#allocation4 + $0x11] sm:$0x5] %vm5458_vm2, %v3000_v21 }
 0xf3f   :  { %v3029_v45 = vpop.permute.xlu2 %3028 }
 0xf40   :  { %v3030_v4 = vrot.slane %v3029_v45, 6 }
 0xf42   :  { %v3031_v19 = vsel %vm1682_vm15, %v3030_v4, %v3029_v45 }
 0xf47   :  { %v1693_v32 = vpop.permute.xlu2 %1692  ;;  %v3009_v23 = vpop.permute.xlu0 %3008 }
 0xf48   :  { %1696 = vst.msk [vmem:[#allocation4 + $0x18] sm:$0x1] %vm1695_vm9, %v1693_v32  ;;  %v3010_v33 = vrot.slane %v3009_v23, 6 }
 0xf49   :  { %1710 = vst.msk [vmem:[#allocation4 + $0x18] sm:$0x5] %vm5539_vm7, %v1705_v6 }
 0xf4a   :  { %v3011_v15 = vsel %vm1654_vm10, %v3010_v33, %v3009_v23 }
 0xf4b   :  { %3013 = vst.msk [vmem:[#allocation4 + $0x13] sm:$0x5] %vm5471_vm4, %v3011_v15 }
 0xf4d   :  { %v3018_v39 = vpop.permute.xlu1 %3017 }
 0xf4e   :  { %v3019_v12 = vrot.slane %v3018_v39, 6 }
 0xf50   :  { %v3020_v18 = vsel %vm1667_vm0, %v3019_v12, %v3018_v39  ;;  %vm5971_vm0 = vmmov %vm5970_vm11 }
 0xf51   :  { %3022 = vst.msk [vmem:[#allocation4 + $0x15] sm:$0x5] %vm5477_vm6, %v3020_v18 }
 0xf52   :  { %3033 = vst.msk [vmem:[#allocation4 + $0x17] sm:$0x5] %vm5484_vm3, %v3031_v19 }
 0xf5d   :  { %v3038_v60 = vpop.permute.xlu1 %3037 }
 0xf5e   :  { %3040 = vst.msk [vmem:[#allocation4 + $0x19] sm:$0x1] %vm1695_vm9, %v3038_v60 }
 0xf67   :  { %v3047_v59 = vpop.permute.xlu0 %3046 }
 0xf68   :  { %v3048_v42 = vrot.slane %v3047_v59, 6 }
 0xf6a   :  { %v3049_v30 = vsel %vm5971_vm0, %v3048_v42, %v3047_v59 }
 0xf6b   :  { %3051 = vst.msk [vmem:[#allocation4 + $0x19] sm:$0x5] %vm5539_vm7, %v3049_v30 }
 0xf6c   :  { %3062 = dma.vmem_to_hbm [thread:$0]  %s3058_s5, 448, %s3060_s19, [#allocation5]  }
 0xf6d   :  { %3435 = dma.done.wait [#allocation5], 448  }
 0xf6e   :  { %3436 = vsyncadd [#allocation5], 4294966848 }
 0xf6f   :  { %3067 = vsyncpa [#allocation5], 1 }

</bundles_post_ra>
